<compile_context>
chip_gen: v7x
topology: tpu7x:2x2x1
jax: 0.10.0
libtpu: 0.0.40
codegen_flags: <defaults>
</compile_context>

<pallas_src>
import jax
import jax.numpy as jnp
from jax.experimental import pallas as pl
from jax.experimental.pallas import tpu as pltpu

# ---- small, TPU-friendly demo config (consistent with the module's structure) ----
BASE_HIDDEN = 32     # base_model.config.hidden_size
HIDDEN_DIM = 128     # hidden_dim (2048 in the real module)
OUTPUT_DIM = 64      # output_dim (218 in the real module)
NUM_BLOCKS = 6       # num_blocks
SEQ_LEN = 8
BATCH = 256          # two tall batch tiles -> both v7x TensorCores get work
LN_EPS = 1e-5


def _round_up(n, m):
    return ((n + m - 1) // m) * m


def _largest_divisor_leq(n, cap):
    d = max(1, min(n, cap))
    while n % d != 0:
        d -= 1
    return d


def _vmem_capacity_bytes():
    try:
        return int(pltpu.get_tpu_info().vmem_capacity_bytes)
    except Exception:
        return 64 * 1024 * 1024                      # conservative (v7x-sized) default


def _choose_tile_b(B):
    """Generation-aware batch-tile size (rows of the MXU LHS)."""
    kind = ""
    try:
        kind = jax.devices()[0].device_kind.lower()
    except Exception:
        pass
    if "v7" in kind:
        target = 512      # 2x256 MXU; compute/HBM crossover ~310 rows at H=2048
    elif "v6" in kind:
        target = 512      # crossover ~650 rows, but 512 keeps VMEM comfortable
    else:
        target = 256      # v5e: 4x128 MXU, crossover ~240 rows
    tile_b = _largest_divisor_leq(B, min(B, target))
    if tile_b != B and tile_b % 8 != 0:              # keep (8,128)-friendly tiles
        tile_b = B
    # keep >= 2 parallel batch tiles so v7x's two TensorCores both get work
    if tile_b == B and B >= 16 and B % 2 == 0 and (B // 2) % 8 == 0:
        tile_b = B // 2
    return tile_b


# --------------------------- shared in-kernel math --------------------------
def _res_block(x, ln_g, ln_b, w1, b1, w2, b2):
    """One ResidualBlock: LN -> Linear -> ReLU -> Linear -> ReLU -> +x (eval)."""
    mu = jnp.mean(x, axis=-1, keepdims=True)
    xc = x - mu
    var = jnp.mean(xc * xc, axis=-1, keepdims=True)  # biased var, matches nn.LayerNorm
    h = xc * jax.lax.rsqrt(var + LN_EPS)
    h = h * ln_g + ln_b
    h = jnp.dot(h.astype(jnp.bfloat16), w1, preferred_element_type=jnp.float32) + b1
    h = jnp.maximum(h, 0.0)                          # ReLU (+ Dropout = identity)
    h = jnp.dot(h.astype(jnp.bfloat16), w2, preferred_element_type=jnp.float32) + b2
    h = jnp.maximum(h, 0.0)
    return x + h


# ----------------------------- resident-weight path -------------------------
def _resident_kernel(cls_ref, w_in_ref, b_in_ref,
                     ln_g_ref, ln_b_ref, w1_ref, b1_ref, w2_ref, b2_ref,
                     w_out_ref, b_out_ref, out_ref):
    """grid = (batch_tile i,). All weights resident; blocks unrolled in-kernel."""
    x = (jnp.dot(cls_ref[...].astype(jnp.bfloat16), w_in_ref[...],
                 preferred_element_type=jnp.float32) + b_in_ref[...])
    nb = w1_ref.shape[0]
    for blk in range(nb):                            # static unroll (nb is small)
        x = _res_block(x, ln_g_ref[blk], ln_b_ref[blk],
                       w1_ref[blk], b1_ref[blk], w2_ref[blk], b2_ref[blk])
    out_ref[...] = (jnp.dot(x.astype(jnp.bfloat16), w_out_ref[...],
                            preferred_element_type=jnp.float32) + b_out_ref[...])


# ----------------------------- streamed-weight path -------------------------
def _streamed_kernel(cls_ref, w_in_ref, b_in_ref,
                     ln_g_ref, ln_b_ref, w1_ref, b1_ref, w2_ref, b2_ref,
                     w_out_ref, b_out_ref, out_ref, x_scr):
    """grid = (batch_tile i, residual_block k). x_scr persists across k."""
    k = pl.program_id(1)

    @pl.when(k == 0)
    def _():                                          # input_proj once per batch tile
        x_scr[...] = (jnp.dot(cls_ref[...].astype(jnp.bfloat16), w_in_ref[...],
                              preferred_element_type=jnp.float32) + b_in_ref[...])

    x = _res_block(x_scr[...], ln_g_ref[0], ln_b_ref[0],
                   w1_ref[0], b1_ref[0], w2_ref[0], b2_ref[0])
    x_scr[...] = x

    @pl.when(k == pl.num_programs(1) - 1)
    def _():                                          # output_layer once per batch tile
        out_ref[...] = (jnp.dot(x.astype(jnp.bfloat16), w_out_ref[...],
                                preferred_element_type=jnp.float32) + b_out_ref[...])


# ----------------------------- parameter prep (one-time) --------------------
def prepare_params(params):
    """Hoisted weight prep: bf16 matmul weights, lane-padded output projection."""
    H = params["w_in"].shape[1]
    nb = params["w1"].shape[0]
    out_dim = params["w_out"].shape[1]
    out_pad = _round_up(out_dim, 128)                 # lane-dense output stores
    w_out_p = (jnp.zeros((H, out_pad), jnp.float32)
               .at[:, :out_dim].set(params["w_out"]).astype(jnp.bfloat16))
    b_out_p = (jnp.zeros((1, out_pad), jnp.float32)
               .at[:, :out_dim].set(params["b_out"].reshape(1, -1)))
    return {
        "w_in": params["w_in"].astype(jnp.bfloat16),
        "b_in": params["b_in"].reshape(1, H).astype(jnp.float32),
        "ln_g": params["ln_g"].reshape(nb, 1, H).astype(jnp.float32),
        "ln_b": params["ln_b"].reshape(nb, 1, H).astype(jnp.float32),
        "w1": params["w1"].astype(jnp.bfloat16),
        "b1": params["b1"].reshape(nb, 1, H).astype(jnp.float32),
        "w2": params["w2"].astype(jnp.bfloat16),
        "b2": params["b2"].reshape(nb, 1, H).astype(jnp.float32),
        "w_out": w_out_p,
        "b_out": b_out_p,
        "out_dim": out_dim,
    }


# --------------------------------- wrapper -----------------------------------
def expression_predictor_forward(last_hidden_state, prepped, *, mode=None, tile_b=None):
    """Mirrors ExpressionPredictor.forward (eval) given the base_model output.

    last_hidden_state: [B, S, h_base] -> [B, out_dim] float32.
    """
    # TODO(synk): frozen base_model forward is not implemented; CLS row is
    #             sliced here in XLA so the kernel only DMAs [B, h_base].
    cls = last_hidden_state[:, 0].astype(jnp.float32)
    B, h_base = cls.shape
    H = prepped["w_in"].shape[1]
    nb = prepped["w1"].shape[0]
    out_pad = prepped["w_out"].shape[1]
    out_dim = prepped["out_dim"]

    vmem_cap = _vmem_capacity_bytes()
    # ~3/4 of physical VMEM: ~96 MiB on v5e/v6e (128 MiB), ~48 MiB on v7x (64 MiB).
    vmem_limit = max(32 << 20, min(int(vmem_cap * 3 // 4), 100 << 20))

    if tile_b is None:
        tile_b = _choose_tile_b(B)
    assert B % tile_b == 0
    n_bt = B // tile_b

    resident_weight_bytes = 2 * nb * H * H * 2        # bf16 w1+w2, all blocks
    if mode is None:
        mode = "resident" if resident_weight_bytes <= vmem_limit // 4 else "streamed"

    if mode == "resident":
        res = lambda shape: pl.BlockSpec(shape, lambda i: tuple(0 for _ in shape))
        out = pl.pallas_call(
            _resident_kernel,
            out_shape=jax.ShapeDtypeStruct((B, out_pad), jnp.float32),
            grid=(n_bt,),
            in_specs=[
                pl.BlockSpec((tile_b, h_base), lambda i: (i, 0)),   # CLS rows
                res((h_base, H)), res((1, H)),                      # input_proj
                res((nb, 1, H)), res((nb, 1, H)),                   # LN gamma/beta
                res((nb, H, H)), res((nb, 1, H)),                   # w1 / b1
                res((nb, H, H)), res((nb, 1, H)),                   # w2 / b2
                res((H, out_pad)), res((1, out_pad)),               # output_layer
            ],
            out_specs=pl.BlockSpec((tile_b, out_pad), lambda i: (i, 0)),
            compiler_params=pltpu.CompilerParams(
                dimension_semantics=("parallel",),
                vmem_limit_bytes=vmem_limit),
        )(cls, prepped["w_in"], prepped["b_in"], prepped["ln_g"], prepped["ln_b"],
          prepped["w1"], prepped["b1"], prepped["w2"], prepped["b2"],
          prepped["w_out"], prepped["b_out"])
    else:
        # Deeper weight prefetch only when VMEM allows it (v5e/v6e, not v7x).
        blk_bytes = 2 * H * H * 2
        use_buffered = (H >= 512) and (3 * blk_bytes <= vmem_limit // 2)
        if use_buffered:
            per_blk_mat = lambda: pl.BlockSpec((1, H, H), lambda i, k: (k, 0, 0),
                                               pipeline_mode=pl.Buffered(3))
        else:
            per_blk_mat = lambda: pl.BlockSpec((1, H, H), lambda i, k: (k, 0, 0))
        per_blk_vec = pl.BlockSpec((1, 1, H), lambda i, k: (k, 0, 0))
        resident = lambda shape: pl.BlockSpec(shape, lambda i, k: tuple(0 for _ in shape))
        out = pl.pallas_call(
            _streamed_kernel,
            out_shape=jax.ShapeDtypeStruct((B, out_pad), jnp.float32),
            grid=(n_bt, nb),
            in_specs=[
                pl.BlockSpec((tile_b, h_base), lambda i, k: (i, 0)),  # CLS rows
                resident((h_base, H)), resident((1, H)),              # input_proj
                per_blk_vec, per_blk_vec,                             # LN gamma/beta
                per_blk_mat(), per_blk_vec,                           # w1 / b1
                per_blk_mat(), per_blk_vec,                           # w2 / b2
                resident((H, out_pad)), resident((1, out_pad)),       # output_layer
            ],
            out_specs=pl.BlockSpec((tile_b, out_pad), lambda i, k: (i, 0)),
            scratch_shapes=[pltpu.VMEM((tile_b, H), jnp.float32)],    # x accumulator
            compiler_params=pltpu.CompilerParams(
                dimension_semantics=("parallel", "arbitrary"),
                vmem_limit_bytes=vmem_limit),
        )(cls, prepped["w_in"], prepped["b_in"], prepped["ln_g"], prepped["ln_b"],
          prepped["w1"], prepped["b1"], prepped["w2"], prepped["b2"],
          prepped["w_out"], prepped["b_out"])

    return out[:, :out_dim]                           # drop lane padding


# --------------------------- pure-JAX reference ------------------------------
def reference_forward(cls_embedding, params):
    """Mirrors the module in eval mode with bf16 matmul inputs / f32 accumulate
    (same numerics as the kernel; the all-f32 PyTorch module differs ~1e-2 abs)."""
    bdot = lambda a, b: jnp.dot(a.astype(jnp.bfloat16), b.astype(jnp.bfloat16),
                                preferred_element_type=jnp.float32)
    x = bdot(cls_embedding.astype(jnp.float32), params["w_in"]) + params["b_in"]
    for blk in range(params["w1"].shape[0]):
        mu = jnp.mean(x, -1, keepdims=True)
        xc = x - mu
        var = jnp.mean(xc * xc, -1, keepdims=True)
        h = xc * jax.lax.rsqrt(var + LN_EPS)
        h = h * params["ln_g"][blk] + params["ln_b"][blk]
        h = jnp.maximum(bdot(h, params["w1"][blk]) + params["b1"][blk], 0.0)
        h = jnp.maximum(bdot(h, params["w2"][blk]) + params["b2"][blk], 0.0)
        x = x + h
    return bdot(x, params["w_out"]) + params["b_out"]


def init_params(key):
    ks = jax.random.split(key, 8)
    scale = 0.05
    return {
        "w_in": scale * jax.random.normal(ks[0], (BASE_HIDDEN, HIDDEN_DIM), jnp.float32),
        "b_in": scale * jax.random.normal(ks[1], (1, HIDDEN_DIM), jnp.float32),
        "ln_g": jnp.ones((NUM_BLOCKS, HIDDEN_DIM), jnp.float32),
        "ln_b": jnp.zeros((NUM_BLOCKS, HIDDEN_DIM), jnp.float32),
        "w1": scale * jax.random.normal(ks[2], (NUM_BLOCKS, HIDDEN_DIM, HIDDEN_DIM), jnp.float32),
        "b1": scale * jax.random.normal(ks[3], (NUM_BLOCKS, HIDDEN_DIM), jnp.float32),
        "w2": scale * jax.random.normal(ks[4], (NUM_BLOCKS, HIDDEN_DIM, HIDDEN_DIM), jnp.float32),
        "b2": scale * jax.random.normal(ks[5], (NUM_BLOCKS, HIDDEN_DIM), jnp.float32),
        "w_out": scale * jax.random.normal(ks[6], (HIDDEN_DIM, OUTPUT_DIM), jnp.float32),
        "b_out": scale * jax.random.normal(ks[7], (1, OUTPUT_DIM), jnp.float32),
    }


if __name__ == "__main__":
    key = jax.random.PRNGKey(0)
    k_x, k_p = jax.random.split(key)

    # Synthetic frozen-encoder output: [B, S, BASE_HIDDEN]
    last_hidden_state = jax.random.normal(
        k_x, (BATCH, SEQ_LEN, BASE_HIDDEN), jnp.float32)
    params = init_params(k_p)
    prepped = prepare_params(params)                  # one-time weight prep (hoisted)

    ref = reference_forward(last_hidden_state[:, 0], params)

    # Default path (resident weights for this small hidden_dim).
    out_res = jax.block_until_ready(
        expression_predictor_forward(last_hidden_state, prepped))
    # Also exercise the large-hidden-dim streaming path at the toy shapes.
    out_str = jax.block_until_ready(
        expression_predictor_forward(last_hidden_state, prepped, mode="streamed"))

    assert out_res.shape == (BATCH, OUTPUT_DIM)
    assert out_str.shape == (BATCH, OUTPUT_DIM)

    # bf16 MXU inputs with f32 accumulation over 6 residual blocks: allow ~2e-2.
    tol = dict(atol=2e-2, rtol=2e-2)
    err_res = jnp.max(jnp.abs(out_res - ref))
    err_str = jnp.max(jnp.abs(out_str - ref))
    assert jnp.allclose(out_res, ref, **tol), f"resident path max err {err_res}"
    assert jnp.allclose(out_str, ref, **tol), f"streamed path max err {err_str}"

    print("KERNEL_OK")
</pallas_src>

<mosaic_0001>
module attributes {stable_mosaic.version = 11 : i64} {
  func.func @_resident_kernel(%arg0: i32, %arg1: memref<128x32xf32, #tpu.memory_space<vmem>>, %arg2: memref<32x128xbf16, #tpu.memory_space<vmem>>, %arg3: memref<1x128xf32, #tpu.memory_space<vmem>>, %arg4: memref<6x1x128xf32, #tpu.memory_space<vmem>>, %arg5: memref<6x1x128xf32, #tpu.memory_space<vmem>>, %arg6: memref<6x128x128xbf16, #tpu.memory_space<vmem>>, %arg7: memref<6x1x128xf32, #tpu.memory_space<vmem>>, %arg8: memref<6x128x128xbf16, #tpu.memory_space<vmem>>, %arg9: memref<6x1x128xf32, #tpu.memory_space<vmem>>, %arg10: memref<128x128xbf16, #tpu.memory_space<vmem>>, %arg11: memref<1x128xf32, #tpu.memory_space<vmem>>, %arg12: memref<128x128xf32, #tpu.memory_space<vmem>>) attributes {dimension_semantics = [#tpu.dimension_semantics<parallel>], iteration_bounds = array<i64: 2>, scalar_prefetch = 0 : i64, scratch_operands = 0 : i64, tpu.core_type = #tpu.core_type<tc>, window_params = [{transform_indices = @transform_0, window_bounds = array<i64: 128, 32>}, {pipeline_mode = #tpu.pipeline_mode<synchronous>, transform_indices = @transform_1, window_bounds = array<i64: 32, 128>}, {pipeline_mode = #tpu.pipeline_mode<synchronous>, transform_indices = @transform_2, window_bounds = array<i64: 1, 128>}, {pipeline_mode = #tpu.pipeline_mode<synchronous>, transform_indices = @transform_3, window_bounds = array<i64: 6, 1, 128>}, {pipeline_mode = #tpu.pipeline_mode<synchronous>, transform_indices = @transform_4, window_bounds = array<i64: 6, 1, 128>}, {pipeline_mode = #tpu.pipeline_mode<synchronous>, transform_indices = @transform_5, window_bounds = array<i64: 6, 128, 128>}, {pipeline_mode = #tpu.pipeline_mode<synchronous>, transform_indices = @transform_6, window_bounds = array<i64: 6, 1, 128>}, {pipeline_mode = #tpu.pipeline_mode<synchronous>, transform_indices = @transform_7, window_bounds = array<i64: 6, 128, 128>}, {pipeline_mode = #tpu.pipeline_mode<synchronous>, transform_indices = @transform_8, window_bounds = array<i64: 6, 1, 128>}, {pipeline_mode = #tpu.pipeline_mode<synchronous>, transform_indices = @transform_9, window_bounds = array<i64: 128, 128>}, {pipeline_mode = #tpu.pipeline_mode<synchronous>, transform_indices = @transform_10, window_bounds = array<i64: 1, 128>}, {transform_indices = @transform_11, window_bounds = array<i64: 128, 128>}]} {
    %c0 = arith.constant 0 : index
    %c0_0 = arith.constant 0 : index
    %0 = vector.load %arg1[%c0, %c0_0] : memref<128x32xf32, #tpu.memory_space<vmem>>, vector<128x32xf32>
    %1 = arith.truncf %0 : vector<128x32xf32> to vector<128x32xbf16>
    %c0_1 = arith.constant 0 : index
    %c0_2 = arith.constant 0 : index
    %2 = vector.load %arg2[%c0_1, %c0_2] : memref<32x128xbf16, #tpu.memory_space<vmem>>, vector<32x128xbf16>
    %cst = arith.constant dense<0.000000e+00> : vector<128x128xf32>
    %3 = tpu.matmul %1, %2, %cst {dimension_numbers = #tpu.dot_dimension_numbers<[1], [0], [0], [1], [0, 0, 1, 1], [], []>} : vector<128x32xbf16>, vector<32x128xbf16>, vector<128x128xf32> -> vector<128x128xf32>
    %c0_3 = arith.constant 0 : index
    %c0_4 = arith.constant 0 : index
    %4 = vector.load %arg3[%c0_3, %c0_4] : memref<1x128xf32, #tpu.memory_space<vmem>>, vector<1x128xf32>
    %5 = vector.broadcast %4 : vector<1x128xf32> to vector<128x128xf32>
    %6 = arith.addf %3, %5 : vector<128x128xf32>
    %c0_5 = arith.constant 0 : index
    %c0_6 = arith.constant 0 : index
    %c0_7 = arith.constant 0 : index
    %7 = vector.load %arg4[%c0_5, %c0_6, %c0_7] : memref<6x1x128xf32, #tpu.memory_space<vmem>>, vector<1x1x128xf32>
    %8 = vector.shape_cast %7 : vector<1x1x128xf32> to vector<1x128xf32>
    %c0_8 = arith.constant 0 : index
    %c0_9 = arith.constant 0 : index
    %c0_10 = arith.constant 0 : index
    %9 = vector.load %arg5[%c0_8, %c0_9, %c0_10] : memref<6x1x128xf32, #tpu.memory_space<vmem>>, vector<1x1x128xf32>
    %10 = vector.shape_cast %9 : vector<1x1x128xf32> to vector<1x128xf32>
    %c0_11 = arith.constant 0 : index
    %c0_12 = arith.constant 0 : index
    %c0_13 = arith.constant 0 : index
    %11 = vector.load %arg6[%c0_11, %c0_12, %c0_13] : memref<6x128x128xbf16, #tpu.memory_space<vmem>>, vector<1x128x128xbf16>
    %12 = vector.shape_cast %11 : vector<1x128x128xbf16> to vector<128x128xbf16>
    %c0_14 = arith.constant 0 : index
    %c0_15 = arith.constant 0 : index
    %c0_16 = arith.constant 0 : index
    %13 = vector.load %arg7[%c0_14, %c0_15, %c0_16] : memref<6x1x128xf32, #tpu.memory_space<vmem>>, vector<1x1x128xf32>
    %14 = vector.shape_cast %13 : vector<1x1x128xf32> to vector<1x128xf32>
    %c0_17 = arith.constant 0 : index
    %c0_18 = arith.constant 0 : index
    %c0_19 = arith.constant 0 : index
    %15 = vector.load %arg8[%c0_17, %c0_18, %c0_19] : memref<6x128x128xbf16, #tpu.memory_space<vmem>>, vector<1x128x128xbf16>
    %16 = vector.shape_cast %15 : vector<1x128x128xbf16> to vector<128x128xbf16>
    %c0_20 = arith.constant 0 : index
    %c0_21 = arith.constant 0 : index
    %c0_22 = arith.constant 0 : index
    %17 = vector.load %arg9[%c0_20, %c0_21, %c0_22] : memref<6x1x128xf32, #tpu.memory_space<vmem>>, vector<1x1x128xf32>
    %18 = vector.shape_cast %17 : vector<1x1x128xf32> to vector<1x128xf32>
    %cst_23 = arith.constant dense<0.000000e+00> : vector<128xf32>
    %19 = vector.multi_reduction <add>, %6, %cst_23 [1] : vector<128x128xf32> to vector<128xf32>
    %20 = vector.shape_cast %19 : vector<128xf32> to vector<128x1xf32>
    %cst_24 = arith.constant 1.280000e+02 : f32
    %21 = vector.broadcast %cst_24 : f32 to vector<128x1xf32>
    %22 = arith.divf %20, %21 : vector<128x1xf32>
    %23 = vector.broadcast %22 : vector<128x1xf32> to vector<128x128xf32>
    %24 = arith.subf %6, %23 : vector<128x128xf32>
    %25 = arith.mulf %24, %24 : vector<128x128xf32>
    %cst_25 = arith.constant dense<0.000000e+00> : vector<128xf32>
    %26 = vector.multi_reduction <add>, %25, %cst_25 [1] : vector<128x128xf32> to vector<128xf32>
    %27 = vector.shape_cast %26 : vector<128xf32> to vector<128x1xf32>
    %cst_26 = arith.constant 1.280000e+02 : f32
    %28 = vector.broadcast %cst_26 : f32 to vector<128x1xf32>
    %29 = arith.divf %27, %28 : vector<128x1xf32>
    %cst_27 = arith.constant 9.99999974E-6 : f32
    %30 = vector.broadcast %cst_27 : f32 to vector<128x1xf32>
    %31 = arith.addf %29, %30 : vector<128x1xf32>
    %32 = math.rsqrt %31 : vector<128x1xf32>
    %33 = vector.broadcast %32 : vector<128x1xf32> to vector<128x128xf32>
    %34 = arith.mulf %24, %33 : vector<128x128xf32>
    %35 = vector.broadcast %8 : vector<1x128xf32> to vector<128x128xf32>
    %36 = arith.mulf %34, %35 : vector<128x128xf32>
    %37 = vector.broadcast %10 : vector<1x128xf32> to vector<128x128xf32>
    %38 = arith.addf %36, %37 : vector<128x128xf32>
    %39 = arith.truncf %38 : vector<128x128xf32> to vector<128x128xbf16>
    %cst_28 = arith.constant dense<0.000000e+00> : vector<128x128xf32>
    %40 = tpu.matmul %39, %12, %cst_28 {dimension_numbers = #tpu.dot_dimension_numbers<[1], [0], [0], [1], [0, 0, 1, 1], [], []>} : vector<128x128xbf16>, vector<128x128xbf16>, vector<128x128xf32> -> vector<128x128xf32>
    %41 = vector.broadcast %14 : vector<1x128xf32> to vector<128x128xf32>
    %42 = arith.addf %40, %41 : vector<128x128xf32>
    %cst_29 = arith.constant 0.000000e+00 : f32
    %43 = vector.broadcast %cst_29 : f32 to vector<128x128xf32>
    %44 = arith.maximumf %42, %43 : vector<128x128xf32>
    %45 = arith.truncf %44 : vector<128x128xf32> to vector<128x128xbf16>
    %cst_30 = arith.constant dense<0.000000e+00> : vector<128x128xf32>
    %46 = tpu.matmul %45, %16, %cst_30 {dimension_numbers = #tpu.dot_dimension_numbers<[1], [0], [0], [1], [0, 0, 1, 1], [], []>} : vector<128x128xbf16>, vector<128x128xbf16>, vector<128x128xf32> -> vector<128x128xf32>
    %47 = vector.broadcast %18 : vector<1x128xf32> to vector<128x128xf32>
    %48 = arith.addf %46, %47 : vector<128x128xf32>
    %cst_31 = arith.constant 0.000000e+00 : f32
    %49 = vector.broadcast %cst_31 : f32 to vector<128x128xf32>
    %50 = arith.maximumf %48, %49 : vector<128x128xf32>
    %51 = arith.addf %6, %50 : vector<128x128xf32>
    %c1 = arith.constant 1 : index
    %c0_32 = arith.constant 0 : index
    %c0_33 = arith.constant 0 : index
    %52 = vector.load %arg4[%c1, %c0_32, %c0_33] : memref<6x1x128xf32, #tpu.memory_space<vmem>>, vector<1x1x128xf32>
    %53 = vector.shape_cast %52 : vector<1x1x128xf32> to vector<1x128xf32>
    %c1_34 = arith.constant 1 : index
    %c0_35 = arith.constant 0 : index
    %c0_36 = arith.constant 0 : index
    %54 = vector.load %arg5[%c1_34, %c0_35, %c0_36] : memref<6x1x128xf32, #tpu.memory_space<vmem>>, vector<1x1x128xf32>
    %55 = vector.shape_cast %54 : vector<1x1x128xf32> to vector<1x128xf32>
    %c1_37 = arith.constant 1 : index
    %c0_38 = arith.constant 0 : index
    %c0_39 = arith.constant 0 : index
    %56 = vector.load %arg6[%c1_37, %c0_38, %c0_39] : memref<6x128x128xbf16, #tpu.memory_space<vmem>>, vector<1x128x128xbf16>
    %57 = vector.shape_cast %56 : vector<1x128x128xbf16> to vector<128x128xbf16>
    %c1_40 = arith.constant 1 : index
    %c0_41 = arith.constant 0 : index
    %c0_42 = arith.constant 0 : index
    %58 = vector.load %arg7[%c1_40, %c0_41, %c0_42] : memref<6x1x128xf32, #tpu.memory_space<vmem>>, vector<1x1x128xf32>
    %59 = vector.shape_cast %58 : vector<1x1x128xf32> to vector<1x128xf32>
    %c1_43 = arith.constant 1 : index
    %c0_44 = arith.constant 0 : index
    %c0_45 = arith.constant 0 : index
    %60 = vector.load %arg8[%c1_43, %c0_44, %c0_45] : memref<6x128x128xbf16, #tpu.memory_space<vmem>>, vector<1x128x128xbf16>
    %61 = vector.shape_cast %60 : vector<1x128x128xbf16> to vector<128x128xbf16>
    %c1_46 = arith.constant 1 : index
    %c0_47 = arith.constant 0 : index
    %c0_48 = arith.constant 0 : index
    %62 = vector.load %arg9[%c1_46, %c0_47, %c0_48] : memref<6x1x128xf32, #tpu.memory_space<vmem>>, vector<1x1x128xf32>
    %63 = vector.shape_cast %62 : vector<1x1x128xf32> to vector<1x128xf32>
    %cst_49 = arith.constant dense<0.000000e+00> : vector<128xf32>
    %64 = vector.multi_reduction <add>, %51, %cst_49 [1] : vector<128x128xf32> to vector<128xf32>
    %65 = vector.shape_cast %64 : vector<128xf32> to vector<128x1xf32>
    %cst_50 = arith.constant 1.280000e+02 : f32
    %66 = vector.broadcast %cst_50 : f32 to vector<128x1xf32>
    %67 = arith.divf %65, %66 : vector<128x1xf32>
    %68 = vector.broadcast %67 : vector<128x1xf32> to vector<128x128xf32>
    %69 = arith.subf %51, %68 : vector<128x128xf32>
    %70 = arith.mulf %69, %69 : vector<128x128xf32>
    %cst_51 = arith.constant dense<0.000000e+00> : vector<128xf32>
    %71 = vector.multi_reduction <add>, %70, %cst_51 [1] : vector<128x128xf32> to vector<128xf32>
    %72 = vector.shape_cast %71 : vector<128xf32> to vector<128x1xf32>
    %cst_52 = arith.constant 1.280000e+02 : f32
    %73 = vector.broadcast %cst_52 : f32 to vector<128x1xf32>
    %74 = arith.divf %72, %73 : vector<128x1xf32>
    %cst_53 = arith.constant 9.99999974E-6 : f32
    %75 = vector.broadcast %cst_53 : f32 to vector<128x1xf32>
    %76 = arith.addf %74, %75 : vector<128x1xf32>
    %77 = math.rsqrt %76 : vector<128x1xf32>
    %78 = vector.broadcast %77 : vector<128x1xf32> to vector<128x128xf32>
    %79 = arith.mulf %69, %78 : vector<128x128xf32>
    %80 = vector.broadcast %53 : vector<1x128xf32> to vector<128x128xf32>
    %81 = arith.mulf %79, %80 : vector<128x128xf32>
    %82 = vector.broadcast %55 : vector<1x128xf32> to vector<128x128xf32>
    %83 = arith.addf %81, %82 : vector<128x128xf32>
    %84 = arith.truncf %83 : vector<128x128xf32> to vector<128x128xbf16>
    %cst_54 = arith.constant dense<0.000000e+00> : vector<128x128xf32>
    %85 = tpu.matmul %84, %57, %cst_54 {dimension_numbers = #tpu.dot_dimension_numbers<[1], [0], [0], [1], [0, 0, 1, 1], [], []>} : vector<128x128xbf16>, vector<128x128xbf16>, vector<128x128xf32> -> vector<128x128xf32>
    %86 = vector.broadcast %59 : vector<1x128xf32> to vector<128x128xf32>
    %87 = arith.addf %85, %86 : vector<128x128xf32>
    %cst_55 = arith.constant 0.000000e+00 : f32
    %88 = vector.broadcast %cst_55 : f32 to vector<128x128xf32>
    %89 = arith.maximumf %87, %88 : vector<128x128xf32>
    %90 = arith.truncf %89 : vector<128x128xf32> to vector<128x128xbf16>
    %cst_56 = arith.constant dense<0.000000e+00> : vector<128x128xf32>
    %91 = tpu.matmul %90, %61, %cst_56 {dimension_numbers = #tpu.dot_dimension_numbers<[1], [0], [0], [1], [0, 0, 1, 1], [], []>} : vector<128x128xbf16>, vector<128x128xbf16>, vector<128x128xf32> -> vector<128x128xf32>
    %92 = vector.broadcast %63 : vector<1x128xf32> to vector<128x128xf32>
    %93 = arith.addf %91, %92 : vector<128x128xf32>
    %cst_57 = arith.constant 0.000000e+00 : f32
    %94 = vector.broadcast %cst_57 : f32 to vector<128x128xf32>
    %95 = arith.maximumf %93, %94 : vector<128x128xf32>
    %96 = arith.addf %51, %95 : vector<128x128xf32>
    %c2 = arith.constant 2 : index
    %c0_58 = arith.constant 0 : index
    %c0_59 = arith.constant 0 : index
    %97 = vector.load %arg4[%c2, %c0_58, %c0_59] : memref<6x1x128xf32, #tpu.memory_space<vmem>>, vector<1x1x128xf32>
    %98 = vector.shape_cast %97 : vector<1x1x128xf32> to vector<1x128xf32>
    %c2_60 = arith.constant 2 : index
    %c0_61 = arith.constant 0 : index
    %c0_62 = arith.constant 0 : index
    %99 = vector.load %arg5[%c2_60, %c0_61, %c0_62] : memref<6x1x128xf32, #tpu.memory_space<vmem>>, vector<1x1x128xf32>
    %100 = vector.shape_cast %99 : vector<1x1x128xf32> to vector<1x128xf32>
    %c2_63 = arith.constant 2 : index
    %c0_64 = arith.constant 0 : index
    %c0_65 = arith.constant 0 : index
    %101 = vector.load %arg6[%c2_63, %c0_64, %c0_65] : memref<6x128x128xbf16, #tpu.memory_space<vmem>>, vector<1x128x128xbf16>
    %102 = vector.shape_cast %101 : vector<1x128x128xbf16> to vector<128x128xbf16>
    %c2_66 = arith.constant 2 : index
    %c0_67 = arith.constant 0 : index
    %c0_68 = arith.constant 0 : index
    %103 = vector.load %arg7[%c2_66, %c0_67, %c0_68] : memref<6x1x128xf32, #tpu.memory_space<vmem>>, vector<1x1x128xf32>
    %104 = vector.shape_cast %103 : vector<1x1x128xf32> to vector<1x128xf32>
    %c2_69 = arith.constant 2 : index
    %c0_70 = arith.constant 0 : index
    %c0_71 = arith.constant 0 : index
    %105 = vector.load %arg8[%c2_69, %c0_70, %c0_71] : memref<6x128x128xbf16, #tpu.memory_space<vmem>>, vector<1x128x128xbf16>
    %106 = vector.shape_cast %105 : vector<1x128x128xbf16> to vector<128x128xbf16>
    %c2_72 = arith.constant 2 : index
    %c0_73 = arith.constant 0 : index
    %c0_74 = arith.constant 0 : index
    %107 = vector.load %arg9[%c2_72, %c0_73, %c0_74] : memref<6x1x128xf32, #tpu.memory_space<vmem>>, vector<1x1x128xf32>
    %108 = vector.shape_cast %107 : vector<1x1x128xf32> to vector<1x128xf32>
    %cst_75 = arith.constant dense<0.000000e+00> : vector<128xf32>
    %109 = vector.multi_reduction <add>, %96, %cst_75 [1] : vector<128x128xf32> to vector<128xf32>
    %110 = vector.shape_cast %109 : vector<128xf32> to vector<128x1xf32>
    %cst_76 = arith.constant 1.280000e+02 : f32
    %111 = vector.broadcast %cst_76 : f32 to vector<128x1xf32>
    %112 = arith.divf %110, %111 : vector<128x1xf32>
    %113 = vector.broadcast %112 : vector<128x1xf32> to vector<128x128xf32>
    %114 = arith.subf %96, %113 : vector<128x128xf32>
    %115 = arith.mulf %114, %114 : vector<128x128xf32>
    %cst_77 = arith.constant dense<0.000000e+00> : vector<128xf32>
    %116 = vector.multi_reduction <add>, %115, %cst_77 [1] : vector<128x128xf32> to vector<128xf32>
    %117 = vector.shape_cast %116 : vector<128xf32> to vector<128x1xf32>
    %cst_78 = arith.constant 1.280000e+02 : f32
    %118 = vector.broadcast %cst_78 : f32 to vector<128x1xf32>
    %119 = arith.divf %117, %118 : vector<128x1xf32>
    %cst_79 = arith.constant 9.99999974E-6 : f32
    %120 = vector.broadcast %cst_79 : f32 to vector<128x1xf32>
    %121 = arith.addf %119, %120 : vector<128x1xf32>
    %122 = math.rsqrt %121 : vector<128x1xf32>
    %123 = vector.broadcast %122 : vector<128x1xf32> to vector<128x128xf32>
    %124 = arith.mulf %114, %123 : vector<128x128xf32>
    %125 = vector.broadcast %98 : vector<1x128xf32> to vector<128x128xf32>
    %126 = arith.mulf %124, %125 : vector<128x128xf32>
    %127 = vector.broadcast %100 : vector<1x128xf32> to vector<128x128xf32>
    %128 = arith.addf %126, %127 : vector<128x128xf32>
    %129 = arith.truncf %128 : vector<128x128xf32> to vector<128x128xbf16>
    %cst_80 = arith.constant dense<0.000000e+00> : vector<128x128xf32>
    %130 = tpu.matmul %129, %102, %cst_80 {dimension_numbers = #tpu.dot_dimension_numbers<[1], [0], [0], [1], [0, 0, 1, 1], [], []>} : vector<128x128xbf16>, vector<128x128xbf16>, vector<128x128xf32> -> vector<128x128xf32>
    %131 = vector.broadcast %104 : vector<1x128xf32> to vector<128x128xf32>
    %132 = arith.addf %130, %131 : vector<128x128xf32>
    %cst_81 = arith.constant 0.000000e+00 : f32
    %133 = vector.broadcast %cst_81 : f32 to vector<128x128xf32>
    %134 = arith.maximumf %132, %133 : vector<128x128xf32>
    %135 = arith.truncf %134 : vector<128x128xf32> to vector<128x128xbf16>
    %cst_82 = arith.constant dense<0.000000e+00> : vector<128x128xf32>
    %136 = tpu.matmul %135, %106, %cst_82 {dimension_numbers = #tpu.dot_dimension_numbers<[1], [0], [0], [1], [0, 0, 1, 1], [], []>} : vector<128x128xbf16>, vector<128x128xbf16>, vector<128x128xf32> -> vector<128x128xf32>
    %137 = vector.broadcast %108 : vector<1x128xf32> to vector<128x128xf32>
    %138 = arith.addf %136, %137 : vector<128x128xf32>
    %cst_83 = arith.constant 0.000000e+00 : f32
    %139 = vector.broadcast %cst_83 : f32 to vector<128x128xf32>
    %140 = arith.maximumf %138, %139 : vector<128x128xf32>
    %141 = arith.addf %96, %140 : vector<128x128xf32>
    %c3 = arith.constant 3 : index
    %c0_84 = arith.constant 0 : index
    %c0_85 = arith.constant 0 : index
    %142 = vector.load %arg4[%c3, %c0_84, %c0_85] : memref<6x1x128xf32, #tpu.memory_space<vmem>>, vector<1x1x128xf32>
    %143 = vector.shape_cast %142 : vector<1x1x128xf32> to vector<1x128xf32>
    %c3_86 = arith.constant 3 : index
    %c0_87 = arith.constant 0 : index
    %c0_88 = arith.constant 0 : index
    %144 = vector.load %arg5[%c3_86, %c0_87, %c0_88] : memref<6x1x128xf32, #tpu.memory_space<vmem>>, vector<1x1x128xf32>
    %145 = vector.shape_cast %144 : vector<1x1x128xf32> to vector<1x128xf32>
    %c3_89 = arith.constant 3 : index
    %c0_90 = arith.constant 0 : index
    %c0_91 = arith.constant 0 : index
    %146 = vector.load %arg6[%c3_89, %c0_90, %c0_91] : memref<6x128x128xbf16, #tpu.memory_space<vmem>>, vector<1x128x128xbf16>
    %147 = vector.shape_cast %146 : vector<1x128x128xbf16> to vector<128x128xbf16>
    %c3_92 = arith.constant 3 : index
    %c0_93 = arith.constant 0 : index
    %c0_94 = arith.constant 0 : index
    %148 = vector.load %arg7[%c3_92, %c0_93, %c0_94] : memref<6x1x128xf32, #tpu.memory_space<vmem>>, vector<1x1x128xf32>
    %149 = vector.shape_cast %148 : vector<1x1x128xf32> to vector<1x128xf32>
    %c3_95 = arith.constant 3 : index
    %c0_96 = arith.constant 0 : index
    %c0_97 = arith.constant 0 : index
    %150 = vector.load %arg8[%c3_95, %c0_96, %c0_97] : memref<6x128x128xbf16, #tpu.memory_space<vmem>>, vector<1x128x128xbf16>
    %151 = vector.shape_cast %150 : vector<1x128x128xbf16> to vector<128x128xbf16>
    %c3_98 = arith.constant 3 : index
    %c0_99 = arith.constant 0 : index
    %c0_100 = arith.constant 0 : index
    %152 = vector.load %arg9[%c3_98, %c0_99, %c0_100] : memref<6x1x128xf32, #tpu.memory_space<vmem>>, vector<1x1x128xf32>
    %153 = vector.shape_cast %152 : vector<1x1x128xf32> to vector<1x128xf32>
    %cst_101 = arith.constant dense<0.000000e+00> : vector<128xf32>
    %154 = vector.multi_reduction <add>, %141, %cst_101 [1] : vector<128x128xf32> to vector<128xf32>
    %155 = vector.shape_cast %154 : vector<128xf32> to vector<128x1xf32>
    %cst_102 = arith.constant 1.280000e+02 : f32
    %156 = vector.broadcast %cst_102 : f32 to vector<128x1xf32>
    %157 = arith.divf %155, %156 : vector<128x1xf32>
    %158 = vector.broadcast %157 : vector<128x1xf32> to vector<128x128xf32>
    %159 = arith.subf %141, %158 : vector<128x128xf32>
    %160 = arith.mulf %159, %159 : vector<128x128xf32>
    %cst_103 = arith.constant dense<0.000000e+00> : vector<128xf32>
    %161 = vector.multi_reduction <add>, %160, %cst_103 [1] : vector<128x128xf32> to vector<128xf32>
    %162 = vector.shape_cast %161 : vector<128xf32> to vector<128x1xf32>
    %cst_104 = arith.constant 1.280000e+02 : f32
    %163 = vector.broadcast %cst_104 : f32 to vector<128x1xf32>
    %164 = arith.divf %162, %163 : vector<128x1xf32>
    %cst_105 = arith.constant 9.99999974E-6 : f32
    %165 = vector.broadcast %cst_105 : f32 to vector<128x1xf32>
    %166 = arith.addf %164, %165 : vector<128x1xf32>
    %167 = math.rsqrt %166 : vector<128x1xf32>
    %168 = vector.broadcast %167 : vector<128x1xf32> to vector<128x128xf32>
    %169 = arith.mulf %159, %168 : vector<128x128xf32>
    %170 = vector.broadcast %143 : vector<1x128xf32> to vector<128x128xf32>
    %171 = arith.mulf %169, %170 : vector<128x128xf32>
    %172 = vector.broadcast %145 : vector<1x128xf32> to vector<128x128xf32>
    %173 = arith.addf %171, %172 : vector<128x128xf32>
    %174 = arith.truncf %173 : vector<128x128xf32> to vector<128x128xbf16>
    %cst_106 = arith.constant dense<0.000000e+00> : vector<128x128xf32>
    %175 = tpu.matmul %174, %147, %cst_106 {dimension_numbers = #tpu.dot_dimension_numbers<[1], [0], [0], [1], [0, 0, 1, 1], [], []>} : vector<128x128xbf16>, vector<128x128xbf16>, vector<128x128xf32> -> vector<128x128xf32>
    %176 = vector.broadcast %149 : vector<1x128xf32> to vector<128x128xf32>
    %177 = arith.addf %175, %176 : vector<128x128xf32>
    %cst_107 = arith.constant 0.000000e+00 : f32
    %178 = vector.broadcast %cst_107 : f32 to vector<128x128xf32>
    %179 = arith.maximumf %177, %178 : vector<128x128xf32>
    %180 = arith.truncf %179 : vector<128x128xf32> to vector<128x128xbf16>
    %cst_108 = arith.constant dense<0.000000e+00> : vector<128x128xf32>
    %181 = tpu.matmul %180, %151, %cst_108 {dimension_numbers = #tpu.dot_dimension_numbers<[1], [0], [0], [1], [0, 0, 1, 1], [], []>} : vector<128x128xbf16>, vector<128x128xbf16>, vector<128x128xf32> -> vector<128x128xf32>
    %182 = vector.broadcast %153 : vector<1x128xf32> to vector<128x128xf32>
    %183 = arith.addf %181, %182 : vector<128x128xf32>
    %cst_109 = arith.constant 0.000000e+00 : f32
    %184 = vector.broadcast %cst_109 : f32 to vector<128x128xf32>
    %185 = arith.maximumf %183, %184 : vector<128x128xf32>
    %186 = arith.addf %141, %185 : vector<128x128xf32>
    %c4 = arith.constant 4 : index
    %c0_110 = arith.constant 0 : index
    %c0_111 = arith.constant 0 : index
    %187 = vector.load %arg4[%c4, %c0_110, %c0_111] : memref<6x1x128xf32, #tpu.memory_space<vmem>>, vector<1x1x128xf32>
    %188 = vector.shape_cast %187 : vector<1x1x128xf32> to vector<1x128xf32>
    %c4_112 = arith.constant 4 : index
    %c0_113 = arith.constant 0 : index
    %c0_114 = arith.constant 0 : index
    %189 = vector.load %arg5[%c4_112, %c0_113, %c0_114] : memref<6x1x128xf32, #tpu.memory_space<vmem>>, vector<1x1x128xf32>
    %190 = vector.shape_cast %189 : vector<1x1x128xf32> to vector<1x128xf32>
    %c4_115 = arith.constant 4 : index
    %c0_116 = arith.constant 0 : index
    %c0_117 = arith.constant 0 : index
    %191 = vector.load %arg6[%c4_115, %c0_116, %c0_117] : memref<6x128x128xbf16, #tpu.memory_space<vmem>>, vector<1x128x128xbf16>
    %192 = vector.shape_cast %191 : vector<1x128x128xbf16> to vector<128x128xbf16>
    %c4_118 = arith.constant 4 : index
    %c0_119 = arith.constant 0 : index
    %c0_120 = arith.constant 0 : index
    %193 = vector.load %arg7[%c4_118, %c0_119, %c0_120] : memref<6x1x128xf32, #tpu.memory_space<vmem>>, vector<1x1x128xf32>
    %194 = vector.shape_cast %193 : vector<1x1x128xf32> to vector<1x128xf32>
    %c4_121 = arith.constant 4 : index
    %c0_122 = arith.constant 0 : index
    %c0_123 = arith.constant 0 : index
    %195 = vector.load %arg8[%c4_121, %c0_122, %c0_123] : memref<6x128x128xbf16, #tpu.memory_space<vmem>>, vector<1x128x128xbf16>
    %196 = vector.shape_cast %195 : vector<1x128x128xbf16> to vector<128x128xbf16>
    %c4_124 = arith.constant 4 : index
    %c0_125 = arith.constant 0 : index
    %c0_126 = arith.constant 0 : index
    %197 = vector.load %arg9[%c4_124, %c0_125, %c0_126] : memref<6x1x128xf32, #tpu.memory_space<vmem>>, vector<1x1x128xf32>
    %198 = vector.shape_cast %197 : vector<1x1x128xf32> to vector<1x128xf32>
    %cst_127 = arith.constant dense<0.000000e+00> : vector<128xf32>
    %199 = vector.multi_reduction <add>, %186, %cst_127 [1] : vector<128x128xf32> to vector<128xf32>
    %200 = vector.shape_cast %199 : vector<128xf32> to vector<128x1xf32>
    %cst_128 = arith.constant 1.280000e+02 : f32
    %201 = vector.broadcast %cst_128 : f32 to vector<128x1xf32>
    %202 = arith.divf %200, %201 : vector<128x1xf32>
    %203 = vector.broadcast %202 : vector<128x1xf32> to vector<128x128xf32>
    %204 = arith.subf %186, %203 : vector<128x128xf32>
    %205 = arith.mulf %204, %204 : vector<128x128xf32>
    %cst_129 = arith.constant dense<0.000000e+00> : vector<128xf32>
    %206 = vector.multi_reduction <add>, %205, %cst_129 [1] : vector<128x128xf32> to vector<128xf32>
    %207 = vector.shape_cast %206 : vector<128xf32> to vector<128x1xf32>
    %cst_130 = arith.constant 1.280000e+02 : f32
    %208 = vector.broadcast %cst_130 : f32 to vector<128x1xf32>
    %209 = arith.divf %207, %208 : vector<128x1xf32>
    %cst_131 = arith.constant 9.99999974E-6 : f32
    %210 = vector.broadcast %cst_131 : f32 to vector<128x1xf32>
    %211 = arith.addf %209, %210 : vector<128x1xf32>
    %212 = math.rsqrt %211 : vector<128x1xf32>
    %213 = vector.broadcast %212 : vector<128x1xf32> to vector<128x128xf32>
    %214 = arith.mulf %204, %213 : vector<128x128xf32>
    %215 = vector.broadcast %188 : vector<1x128xf32> to vector<128x128xf32>
    %216 = arith.mulf %214, %215 : vector<128x128xf32>
    %217 = vector.broadcast %190 : vector<1x128xf32> to vector<128x128xf32>
    %218 = arith.addf %216, %217 : vector<128x128xf32>
    %219 = arith.truncf %218 : vector<128x128xf32> to vector<128x128xbf16>
    %cst_132 = arith.constant dense<0.000000e+00> : vector<128x128xf32>
    %220 = tpu.matmul %219, %192, %cst_132 {dimension_numbers = #tpu.dot_dimension_numbers<[1], [0], [0], [1], [0, 0, 1, 1], [], []>} : vector<128x128xbf16>, vector<128x128xbf16>, vector<128x128xf32> -> vector<128x128xf32>
    %221 = vector.broadcast %194 : vector<1x128xf32> to vector<128x128xf32>
    %222 = arith.addf %220, %221 : vector<128x128xf32>
    %cst_133 = arith.constant 0.000000e+00 : f32
    %223 = vector.broadcast %cst_133 : f32 to vector<128x128xf32>
    %224 = arith.maximumf %222, %223 : vector<128x128xf32>
    %225 = arith.truncf %224 : vector<128x128xf32> to vector<128x128xbf16>
    %cst_134 = arith.constant dense<0.000000e+00> : vector<128x128xf32>
    %226 = tpu.matmul %225, %196, %cst_134 {dimension_numbers = #tpu.dot_dimension_numbers<[1], [0], [0], [1], [0, 0, 1, 1], [], []>} : vector<128x128xbf16>, vector<128x128xbf16>, vector<128x128xf32> -> vector<128x128xf32>
    %227 = vector.broadcast %198 : vector<1x128xf32> to vector<128x128xf32>
    %228 = arith.addf %226, %227 : vector<128x128xf32>
    %cst_135 = arith.constant 0.000000e+00 : f32
    %229 = vector.broadcast %cst_135 : f32 to vector<128x128xf32>
    %230 = arith.maximumf %228, %229 : vector<128x128xf32>
    %231 = arith.addf %186, %230 : vector<128x128xf32>
    %c5 = arith.constant 5 : index
    %c0_136 = arith.constant 0 : index
    %c0_137 = arith.constant 0 : index
    %232 = vector.load %arg4[%c5, %c0_136, %c0_137] : memref<6x1x128xf32, #tpu.memory_space<vmem>>, vector<1x1x128xf32>
    %233 = vector.shape_cast %232 : vector<1x1x128xf32> to vector<1x128xf32>
    %c5_138 = arith.constant 5 : index
    %c0_139 = arith.constant 0 : index
    %c0_140 = arith.constant 0 : index
    %234 = vector.load %arg5[%c5_138, %c0_139, %c0_140] : memref<6x1x128xf32, #tpu.memory_space<vmem>>, vector<1x1x128xf32>
    %235 = vector.shape_cast %234 : vector<1x1x128xf32> to vector<1x128xf32>
    %c5_141 = arith.constant 5 : index
    %c0_142 = arith.constant 0 : index
    %c0_143 = arith.constant 0 : index
    %236 = vector.load %arg6[%c5_141, %c0_142, %c0_143] : memref<6x128x128xbf16, #tpu.memory_space<vmem>>, vector<1x128x128xbf16>
    %237 = vector.shape_cast %236 : vector<1x128x128xbf16> to vector<128x128xbf16>
    %c5_144 = arith.constant 5 : index
    %c0_145 = arith.constant 0 : index
    %c0_146 = arith.constant 0 : index
    %238 = vector.load %arg7[%c5_144, %c0_145, %c0_146] : memref<6x1x128xf32, #tpu.memory_space<vmem>>, vector<1x1x128xf32>
    %239 = vector.shape_cast %238 : vector<1x1x128xf32> to vector<1x128xf32>
    %c5_147 = arith.constant 5 : index
    %c0_148 = arith.constant 0 : index
    %c0_149 = arith.constant 0 : index
    %240 = vector.load %arg8[%c5_147, %c0_148, %c0_149] : memref<6x128x128xbf16, #tpu.memory_space<vmem>>, vector<1x128x128xbf16>
    %241 = vector.shape_cast %240 : vector<1x128x128xbf16> to vector<128x128xbf16>
    %c5_150 = arith.constant 5 : index
    %c0_151 = arith.constant 0 : index
    %c0_152 = arith.constant 0 : index
    %242 = vector.load %arg9[%c5_150, %c0_151, %c0_152] : memref<6x1x128xf32, #tpu.memory_space<vmem>>, vector<1x1x128xf32>
    %243 = vector.shape_cast %242 : vector<1x1x128xf32> to vector<1x128xf32>
    %cst_153 = arith.constant dense<0.000000e+00> : vector<128xf32>
    %244 = vector.multi_reduction <add>, %231, %cst_153 [1] : vector<128x128xf32> to vector<128xf32>
    %245 = vector.shape_cast %244 : vector<128xf32> to vector<128x1xf32>
    %cst_154 = arith.constant 1.280000e+02 : f32
    %246 = vector.broadcast %cst_154 : f32 to vector<128x1xf32>
    %247 = arith.divf %245, %246 : vector<128x1xf32>
    %248 = vector.broadcast %247 : vector<128x1xf32> to vector<128x128xf32>
    %249 = arith.subf %231, %248 : vector<128x128xf32>
    %250 = arith.mulf %249, %249 : vector<128x128xf32>
    %cst_155 = arith.constant dense<0.000000e+00> : vector<128xf32>
    %251 = vector.multi_reduction <add>, %250, %cst_155 [1] : vector<128x128xf32> to vector<128xf32>
    %252 = vector.shape_cast %251 : vector<128xf32> to vector<128x1xf32>
    %cst_156 = arith.constant 1.280000e+02 : f32
    %253 = vector.broadcast %cst_156 : f32 to vector<128x1xf32>
    %254 = arith.divf %252, %253 : vector<128x1xf32>
    %cst_157 = arith.constant 9.99999974E-6 : f32
    %255 = vector.broadcast %cst_157 : f32 to vector<128x1xf32>
    %256 = arith.addf %254, %255 : vector<128x1xf32>
    %257 = math.rsqrt %256 : vector<128x1xf32>
    %258 = vector.broadcast %257 : vector<128x1xf32> to vector<128x128xf32>
    %259 = arith.mulf %249, %258 : vector<128x128xf32>
    %260 = vector.broadcast %233 : vector<1x128xf32> to vector<128x128xf32>
    %261 = arith.mulf %259, %260 : vector<128x128xf32>
    %262 = vector.broadcast %235 : vector<1x128xf32> to vector<128x128xf32>
    %263 = arith.addf %261, %262 : vector<128x128xf32>
    %264 = arith.truncf %263 : vector<128x128xf32> to vector<128x128xbf16>
    %cst_158 = arith.constant dense<0.000000e+00> : vector<128x128xf32>
    %265 = tpu.matmul %264, %237, %cst_158 {dimension_numbers = #tpu.dot_dimension_numbers<[1], [0], [0], [1], [0, 0, 1, 1], [], []>} : vector<128x128xbf16>, vector<128x128xbf16>, vector<128x128xf32> -> vector<128x128xf32>
    %266 = vector.broadcast %239 : vector<1x128xf32> to vector<128x128xf32>
    %267 = arith.addf %265, %266 : vector<128x128xf32>
    %cst_159 = arith.constant 0.000000e+00 : f32
    %268 = vector.broadcast %cst_159 : f32 to vector<128x128xf32>
    %269 = arith.maximumf %267, %268 : vector<128x128xf32>
    %270 = arith.truncf %269 : vector<128x128xf32> to vector<128x128xbf16>
    %cst_160 = arith.constant dense<0.000000e+00> : vector<128x128xf32>
    %271 = tpu.matmul %270, %241, %cst_160 {dimension_numbers = #tpu.dot_dimension_numbers<[1], [0], [0], [1], [0, 0, 1, 1], [], []>} : vector<128x128xbf16>, vector<128x128xbf16>, vector<128x128xf32> -> vector<128x128xf32>
    %272 = vector.broadcast %243 : vector<1x128xf32> to vector<128x128xf32>
    %273 = arith.addf %271, %272 : vector<128x128xf32>
    %cst_161 = arith.constant 0.000000e+00 : f32
    %274 = vector.broadcast %cst_161 : f32 to vector<128x128xf32>
    %275 = arith.maximumf %273, %274 : vector<128x128xf32>
    %276 = arith.addf %231, %275 : vector<128x128xf32>
    %277 = arith.truncf %276 : vector<128x128xf32> to vector<128x128xbf16>
    %c0_162 = arith.constant 0 : index
    %c0_163 = arith.constant 0 : index
    %278 = vector.load %arg10[%c0_162, %c0_163] : memref<128x128xbf16, #tpu.memory_space<vmem>>, vector<128x128xbf16>
    %cst_164 = arith.constant dense<0.000000e+00> : vector<128x128xf32>
    %279 = tpu.matmul %277, %278, %cst_164 {dimension_numbers = #tpu.dot_dimension_numbers<[1], [0], [0], [1], [0, 0, 1, 1], [], []>} : vector<128x128xbf16>, vector<128x128xbf16>, vector<128x128xf32> -> vector<128x128xf32>
    %c0_165 = arith.constant 0 : index
    %c0_166 = arith.constant 0 : index
    %280 = vector.load %arg11[%c0_165, %c0_166] : memref<1x128xf32, #tpu.memory_space<vmem>>, vector<1x128xf32>
    %281 = vector.broadcast %280 : vector<1x128xf32> to vector<128x128xf32>
    %282 = arith.addf %279, %281 : vector<128x128xf32>
    %c0_167 = arith.constant 0 : index
    %c0_168 = arith.constant 0 : index
    %283 = vector.load %arg12[%c0_167, %c0_168] : memref<128x128xf32, #tpu.memory_space<vmem>>, vector<128x128xf32>
    tpu.vector_store %arg12[%c0_167, %c0_168], %282 {strides = array<i32>} : memref<128x128xf32, #tpu.memory_space<vmem>>, vector<128x128xf32>,
    return
  }
  func.func @transform_0(%arg0: i32) -> (i32, i32) {
    %c0_i32 = arith.constant 0 : i32
    %c0_i32_0 = arith.constant 0 : i32
    return %arg0, %c0_i32 : i32, i32
  }
  func.func @transform_1(%arg0: i32) -> (i32, i32) {
    %c0_i32 = arith.constant 0 : i32
    %c0_i32_0 = arith.constant 0 : i32
    %c0_i32_1 = arith.constant 0 : i32
    return %c0_i32, %c0_i32_0 : i32, i32
  }
  func.func @transform_2(%arg0: i32) -> (i32, i32) {
    %c0_i32 = arith.constant 0 : i32
    %c0_i32_0 = arith.constant 0 : i32
    %c0_i32_1 = arith.constant 0 : i32
    return %c0_i32, %c0_i32_0 : i32, i32
  }
  func.func @transform_3(%arg0: i32) -> (i32, i32, i32) {
    %c0_i32 = arith.constant 0 : i32
    %c0_i32_0 = arith.constant 0 : i32
    %c0_i32_1 = arith.constant 0 : i32
    %c0_i32_2 = arith.constant 0 : i32
    return %c0_i32, %c0_i32_0, %c0_i32_1 : i32, i32, i32
  }
  func.func @transform_4(%arg0: i32) -> (i32, i32, i32) {
    %c0_i32 = arith.constant 0 : i32
    %c0_i32_0 = arith.constant 0 : i32
    %c0_i32_1 = arith.constant 0 : i32
    %c0_i32_2 = arith.constant 0 : i32
    return %c0_i32, %c0_i32_0, %c0_i32_1 : i32, i32, i32
  }
  func.func @transform_5(%arg0: i32) -> (i32, i32, i32) {
    %c0_i32 = arith.constant 0 : i32
    %c0_i32_0 = arith.constant 0 : i32
    %c0_i32_1 = arith.constant 0 : i32
    %c0_i32_2 = arith.constant 0 : i32
    return %c0_i32, %c0_i32_0, %c0_i32_1 : i32, i32, i32
  }
  func.func @transform_6(%arg0: i32) -> (i32, i32, i32) {
    %c0_i32 = arith.constant 0 : i32
    %c0_i32_0 = arith.constant 0 : i32
    %c0_i32_1 = arith.constant 0 : i32
    %c0_i32_2 = arith.constant 0 : i32
    return %c0_i32, %c0_i32_0, %c0_i32_1 : i32, i32, i32
  }
  func.func @transform_7(%arg0: i32) -> (i32, i32, i32) {
    %c0_i32 = arith.constant 0 : i32
    %c0_i32_0 = arith.constant 0 : i32
    %c0_i32_1 = arith.constant 0 : i32
    %c0_i32_2 = arith.constant 0 : i32
    return %c0_i32, %c0_i32_0, %c0_i32_1 : i32, i32, i32
  }
  func.func @transform_8(%arg0: i32) -> (i32, i32, i32) {
    %c0_i32 = arith.constant 0 : i32
    %c0_i32_0 = arith.constant 0 : i32
    %c0_i32_1 = arith.constant 0 : i32
    %c0_i32_2 = arith.constant 0 : i32
    return %c0_i32, %c0_i32_0, %c0_i32_1 : i32, i32, i32
  }
  func.func @transform_9(%arg0: i32) -> (i32, i32) {
    %c0_i32 = arith.constant 0 : i32
    %c0_i32_0 = arith.constant 0 : i32
    %c0_i32_1 = arith.constant 0 : i32
    return %c0_i32, %c0_i32_0 : i32, i32
  }
  func.func @transform_10(%arg0: i32) -> (i32, i32) {
    %c0_i32 = arith.constant 0 : i32
    %c0_i32_0 = arith.constant 0 : i32
    %c0_i32_1 = arith.constant 0 : i32
    return %c0_i32, %c0_i32_0 : i32, i32
  }
  func.func @transform_11(%arg0: i32) -> (i32, i32) {
    %c0_i32 = arith.constant 0 : i32
    %c0_i32_0 = arith.constant 0 : i32
    return %arg0, %c0_i32 : i32, i32
  }
}

</mosaic_0001>

<bundles_post_ra>
// kernel: tpu_custom_call.1
= control target key start
LH: loop header
LB: loop body
LE: loop exit
PB: predicated region body
PF: predicated region fallthrough
CT: control target
= control target key end

     0   :  { %16 = vsyncpa [#allocation3], 0  ;;  %s7684_s0 = inlined_call_operand.vmem [shape: f32[256,32], index: 0, kind: input, shape index: {}]   ;;  %s7685_s1 = inlined_call_operand.vmem [shape: bf16[32,128], index: 1, kind: input, shape index: {}]   ;;  %s7686_s2 = inlined_call_operand.vmem [shape: f32[1,128], index: 2, kind: input, shape index: {}]   ;;  %s7687_s3 = inlined_call_operand.vmem [shape: f32[6,1,128], index: 3, kind: input, shape index: {}]   ;;  %s7688_s4 = inlined_call_operand.vmem [shape: f32[6,1,128], index: 4, kind: input, shape index: {}]   ;;  %s7689_s5 = inlined_call_operand.hbm [shape: bf16[6,128,128], index: 5, kind: input, shape index: {}]   ;;  %s7690_s6 = inlined_call_operand.vmem [shape: f32[6,1,128], index: 6, kind: input, shape index: {}]   ;;  %s7691_s7 = inlined_call_operand.hbm [shape: bf16[6,128,128], index: 7, kind: input, shape index: {}]   ;;  %s7692_s8 = inlined_call_operand.vmem [shape: f32[6,1,128], index: 8, kind: input, shape index: {}]   ;;  %s7693_s9 = inlined_call_operand.vmem [shape: bf16[128,128], index: 9, kind: input, shape index: {}]   ;;  %s7694_s10 = inlined_call_operand.vmem [shape: f32[1,128], index: 10, kind: input, shape index: {}]   ;;  %s7695_s11 = inlined_call_operand.hbm [shape: f32[256,128], index: 11, kind: output, shape index: {}]  }
   0x1   :  { %17 = vsyncpa [#allocation6], 0 }
   0x2   :  { %18 = vsyncpa [#allocation4], 0 }
   0x3   :  { %20 = vsyncpa [#allocation4 + $0x1], 0  ;;  %s6045_s17 = smov 0   ;;  %s6047_s18 = smov 0  }
   0x4   :  { %s6049_s19 = smov 0   ;;  %s6051_s20 = smov 0  }
   0x5 LB: > { %7704 = sst [smem:[#allocation11_spill]] %s5964_s17  ;;  %s6066_s21 = sadd.s32 4294967295, %s5976_s20   ;;  %s5976_s20 = sphi %s6051_s20, %s7722_s20   ;;  %s5972_s19 = sphi %s6049_s19, %s7724_s19   ;;  %s5968_s18 = sphi %s6047_s18, %s7726_s18   ;;  %s5964_s17 = sphi %s6045_s17, %s7725_s17  }
   0x6   : > { %7705 = sst [smem:[#allocation12_spill]] %s5972_s19  ;;  %s4641_s22 = sadd.s32 4294967294, %s5976_s20  }
   0x7   : > { %s6070_s23 = sadd.s32 1, %s5976_s20   ;;  %s269_s24 = sadd.s32 1, %s5972_s19 }
   0x8   : > { %7706 = sst [smem:[#allocation13_spill]] %s6070_s23  ;;  %s266_s25 = ssub.s32 %s5976_s20, %s6070_s23 }
   0x9   : > { %p279_p0 = scmp.ne.s32.totalorder %s5972_s19, %s5968_s18  ;;  %p267_p1 = scmp.eq.s32.totalorder %s266_s25, 0 }
   0xa   : > { %p280_p2 = scmp.eq.s32.totalorder %s6066_s21, 1  ;;  %p285_p3 = scmp.ne.s32.totalorder %s5968_s18, %s5964_s17 }
   0xb   : > { %p286_p4 = scmp.eq.s32.totalorder %s4641_s22, 1  ;;  %p4642_p7 = scmp.ge.s32.totalorder %s5976_s20, 1 }
   0xc   : > { %s6081_s26 = scalar_select %p267_p1, %s5972_s19, %s269_s24  }
   0xd   : > { %p6083_p5 = por %p280_p2, %p279_p0  ;;  %p6087_p6 = por %p286_p4, %p285_p3 }
   0xe   : > { %7707 = sst [smem:[#allocation14_spill]] %s6081_s26  ;;  %p293_p8 = scmp.lt.s32.totalorder %s5976_s20, 3 }
   0xf   : > { %s7708_s27 = scalar_select %p6083_p5, 1, 0 }
  0x10   : > { %s7709_s28 = scalar_select %p6087_p6, 1, 0 }
  0x11   : > { %p7697_p9 = scmp.eq.s32.totalorder %s6066_s21, 0  ;;  %p6094_p10 = pnand %p4642_p7, %p293_p8 }
  0x12   : > { %7710 = sst [smem:[#allocation15_spill]] %s7709_s28  ;;  %s5978_s30 = smov [#allocation2]  }
  0x13   : > { %s7711_s29 = scalar_select %p6094_p10, 1, 0 }
  0x14   : > { %s317_s12 = sshll.u32 %s5978_s30, 4  ;;  %p5498_p11 = pneg %p6094_p10  ;;  %s318_s12 = int_to_ptr.vmem [resolvable:$true] %s317_s12 }
  0x15   : > { %s5979_s14 = smov [#allocation5]   ;;  %s5850_s24 = scalar_lea.hbm %s7689_s5, 6144 }
  0x16   : > { %p6102_p12 = pnand %p7697_p9, %p5498_p11  ;;  %s333_s15 = sshll.u32 %s5979_s14, 4  ;;  %s6106_s15 = int_to_ptr.vmem [resolvable:$true] %s333_s15 }
  0x17   : > { %p5851_p13 = scmp.ne.s32.totalorder %s7689_s5, %s5850_s24  ;;  %p5857_p3 = scmp.lt.u32.totalorder %s5850_s24, %s7689_s5 }
  0x18   : > { %p5852_p0 = pneg %p6102_p12 }
  0x1a   : > { %p5853_p1 = pnand %p5852_p0, %p5851_p13 }
  0x1c   : > { %p5854_p2 = pneg %p5853_p1 }
  0x1e   : > { %p5859_p4 = pnand %p5857_p3, %p5854_p2 }
  0x20   : > { %5862 = shalt.err (!%p5859_p4)
}
  0x21   : > { %s5863_s14 = scalar_lea.vmem %s318_s12, 6144  ;;  %p5871_p9 = scmp.lt.s32.totalorder %s318_s12, %s318_s12 }
  0x22   : > { %p5864_p7 = scmp.ne.s32.totalorder %s318_s12, %s5863_s14  ;;  %p5872_p6 = scmp.lt.s32.totalorder %s5863_s14, %s5863_s14 }
  0x24   : > { %p5866_p8 = pnand %p5864_p7, %p5852_p0  ;;  %p5873_p5 = por %p5872_p6, %p5871_p9 }
  0x26   : > { %p5867_p11 = pneg %p5866_p8 }
  0x28   : > { %p5874_p10 = pnand %p5873_p5, %p5867_p11 }
  0x2a   : > { %5877 = shalt.err (!%p5874_p10)
}
  0x2b   : > { %s5980_s16 = smov 64   ;;  %s5981_s22 = smov 4  }
  0x2c   : > { %5501 = dma.hbm_to_vmem [thread:$0]  (!%p6102_p12), %s7689_s5, 6144, %s318_s12, [#allocation3], %s5980_s16, %s5980_s16, %s5981_s22  }
  0x2d   : > { %s5878_s30 = scalar_lea.hbm %s7691_s7, 6144 }
  0x2e   : > { %p5879_p13 = scmp.ne.s32.totalorder %s7691_s7, %s5878_s30  ;;  %p5885_p9 = scmp.lt.u32.totalorder %s5878_s30, %s7691_s7 }
  0x30   : > { %p5881_p5 = pnand %p5879_p13, %p5852_p0 }
  0x32   : > { %p5882_p6 = pneg %p5881_p5 }
  0x34   : > { %p5887_p10 = pnand %p5885_p9, %p5882_p6 }
  0x36   : > { %5890 = shalt.err (!%p5887_p10)
}
  0x37   : > { %s5891_s12 = scalar_lea.vmem %s6106_s15, 6144  ;;  %p5899_p4 = scmp.lt.s32.totalorder %s6106_s15, %s6106_s15 }
  0x38   : > { %p5892_p1 = scmp.ne.s32.totalorder %s6106_s15, %s5891_s12  ;;  %p5900_p7 = scmp.lt.s32.totalorder %s5891_s12, %s5891_s12 }
  0x3a   : > { %p5894_p2 = pnand %p5892_p1, %p5852_p0  ;;  %p5901_p8 = por %p5900_p7, %p5899_p4 }
  0x3c   : > { %p5895_p3 = pneg %p5894_p2 }
  0x3e   : > { %p5902_p11 = pnand %p5901_p8, %p5895_p3 }
  0x40   : > { %5905 = shalt.err (!%p5902_p11)
}
  0x41   : > { %5504 = dma.hbm_to_vmem [thread:$0]  (!%p6102_p12), %s7691_s7, 6144, %s6106_s15, [#allocation6], %s5980_s16, %s5980_s16, %s5981_s22  }
  0x42   : > { %p7713_p13 = scmp.ne.s32.totalorder %s7711_s29, 0 }
  0x43   : > { %p7714_p5 = scmp.eq.s32.totalorder (!%p7713_p13), %s6066_s21, 0 }
  0x44   : > { %367 = sbr.rel (%p7713_p13) target bundleno = 5128 (0x1408), region = 64 }
  0x4b   : > { %5951 = dma.done.wait (%p7714_p5), [#allocation3], 6144   ;;  %p7715_p0 = pmov %p7714_p5 }
  0x4d   : > { %5953 = vsyncadd (%p7715_p0), [#allocation3], 4294961152  ;;  %p7716_p6 = pmov %p7715_p0 }
  0x4e   : > { %p7717_p9 = pmov %p7715_p0 }
  0x4f   : > { %5955 = dma.done.wait (%p7716_p6), [#allocation6], 6144  }
  0x50   : > { %5957 = vsyncadd (%p7717_p9), [#allocation6], 4294961152  ;;  %s4650_s28 = sshll.u32 %s6066_s21, 4  ;;  %v5552_v0 = vld [vmem:[%s7685_s1] sm:$0xff]   ;;  %v5553_v1 = vld [vmem:[%s7685_s1 + $0x8] sm:$0xff]   ;;  %vm466_vm0 = vcmask 261120  }
  0x51   : > { %p412_p10 = scmp.lt.s32.totalorder %s4650_s28, 31  ;;  %5036 = vmatprep.subr.bf16.mxu0 %v5552_v0  ;;  %v4652_v26 = vld [vmem:[%s7686_s2] ss:$0 sm:$0xff]  ;;  %s4817_s22 = sshll.u32 %s6066_s21, 11 }
  0x52   : > { %5037 = vmatpush3.bf16.msra.mxu0 %v5552_v0  ;;  %v5554_v59 = vld [vmem:[#allocation2] sm:$0xff]   ;;  %s7634_s25 = scalar_lea.hbm %s7695_s11, %s4817_s22  ;;  %p7718_p1 = scmp.ne.s32.totalorder %s7708_s27, 0 }
  0x53   : > { %s7728_s28 = smov (!%p412_p10, %s4650_s28), 31  ;;  %5038 = vmatprep.subr.bf16.mxu0 %v5553_v1  ;;  %5056 = vmatprep.subr.bf16.mxu1 %v5554_v59  ;;  %s5982_s14 = smov [#allocation7]  }
  0x54   : > { %s4651_s13 = sshll.u32 %s7728_s28, 3  ;;  %5057 = vmatpush3.bf16.msra.mxu1 %v5554_v59  ;;  %s408_s28 = sand.u32 1, %s5968_s18  }
  0x55   : > { %s6169_s16 = scalar_lea.vmem %s7684_s0, %s4651_s13  ;;  %s4649_s13 = sshll.u32 %s408_s28, 7 }
  0x56   : > { %v419_v2 = vld [vmem:[%s6169_s16] sm:$0xff]  ;;  %v420_v3 = vld [vmem:[%s6169_s16 + $0x8] sm:$0xff]  ;;  %v421_v5 = vld [vmem:[%s6169_s16 + $0x10] sm:$0xff]  ;;  %5039 = vmatpush3.bf16.msra.mxu0 %v5553_v1  ;;  %s7643_s21 = scalar_lea.sflag [#allocation4], %s408_s28  ;;  %s5910_s12 = sshll.u32 %s5982_s14, 4  ;;  %s5911_s12 = int_to_ptr.vmem [resolvable:$false] %s5910_s12 }
  0x57   : > { %v435_v4 = vpack.c.bf16 %v420_v3, %v419_v2  ;;  %v422_v6 = vld [vmem:[%s6169_s16 + $0x18] sm:$0xff]  ;;  %v423_v7 = vld [vmem:[%s6169_s16 + $0x20] sm:$0xff]  ;;  %v424_v8 = vld [vmem:[%s6169_s16 + $0x28] sm:$0xff]  ;;  %s5912_s17 = scalar_lea.vmem %s5911_s12, 4096 }
  0x58   : > { %v436_v9 = vpack.c.bf16 %v422_v6, %v421_v5  ;;  %v437_v10 = vpack.c.bf16 %v424_v8, %v423_v7  ;;  %v425_v11 = vld [vmem:[%s6169_s16 + $0x30] sm:$0xff]  ;;  %v426_v12 = vld [vmem:[%s6169_s16 + $0x38] sm:$0xff]  ;;  %v427_v13 = vld [vmem:[%s6169_s16 + $0x40] sm:$0xff] }
  0x59   : > { %5040 = vmatprep.mubr.msk.bf16.mxu0 %vm466_vm0, %v435_v4  ;;  %v428_v14 = vld [vmem:[%s6169_s16 + $0x48] sm:$0xff]  ;;  %v438_v15 = vpack.c.bf16 %v426_v12, %v425_v11  ;;  %v429_v17 = vld [vmem:[%s6169_s16 + $0x50] sm:$0xff]  ;;  %v430_v18 = vld [vmem:[%s6169_s16 + $0x58] sm:$0xff] }
  0x5a   : > { %5041 = vmatmul.mubr.msk.bf16.vlgmr.msra.gmra.mrb[0].mxu0 %vm466_vm0, %v436_v9  ;;  %v439_v16 = vpack.c.bf16 %v428_v14, %v427_v13  ;;  %v431_v19 = vld [vmem:[%s6169_s16 + $0x60] sm:$0xff]  ;;  %v432_v20 = vld [vmem:[%s6169_s16 + $0x68] sm:$0xff]  ;;  %v440_v21 = vpack.c.bf16 %v430_v18, %v429_v17  ;;  %v433_v23 = vld [vmem:[%s6169_s16 + $0x70] sm:$0xff] }
  0x5b   : > { %5044 = vmatprep.mubr.msk.bf16.mxu0 %vm466_vm0, %v437_v10  ;;  %v441_v22 = vpack.c.bf16 %v432_v20, %v431_v19  ;;  %v434_v24 = vld [vmem:[%s6169_s16 + $0x78] sm:$0xff]  ;;  %s7614_s16 = scalar_lea.vmem [#allocation7], %s4649_s13 }
  0x5c   : > { %v442_v25 = vpack.c.bf16 %v434_v24, %v433_v23  ;;  %s4557_s19 = sshll.u32 %s7614_s16, 4  ;;  %s7636_s19 = int_to_ptr.vmem [resolvable:$true] %s4557_s19 }
  0x5d   : > { %s5906_s30 = scalar_lea.vmem %s7636_s19, 2048  ;;  %p5913_p4 = scmp.lt.s32.totalorder %s7636_s19, %s5911_s12 }
  0x5e   : > { %p5907_p12 = scmp.ne.s32.totalorder %s7636_s19, %s5906_s30  ;;  %p5914_p7 = scmp.lt.s32.totalorder %s5912_s17, %s5906_s30 }
  0x60   : > { %p5908_p2 = pnand %p5907_p12, %p7718_p1  ;;  %p5915_p8 = por %p5914_p7, %p5913_p4 }
  0x62   : > { %5045 = vmatmul.mubr.msk.bf16.gmra.mrb[4].mxu0 %vm466_vm0, %v438_v15  ;;  %p5909_p3 = pneg %p5908_p2 }
  0x63   : > { %5048 = vmatprep.mubr.msk.bf16.mxu0 %vm466_vm0, %v439_v16 }
  0x64   : > { %p5916_p11 = pnand %p5915_p8, %p5909_p3 }
  0x6a   : > { %5049 = vmatmul.mubr.msk.bf16.gmra.mrb[8].mxu0 %vm466_vm0, %v440_v21 }
  0x6b   : > { %5052 = vmatprep.mubr.msk.bf16.mxu0 %vm466_vm0, %v441_v22 }
  0x72   : > { %5053 = vmatmul.mubr.msk.bf16.gmra.mrb[12].mxu0 %vm466_vm0, %v442_v25 }
 0x12d   : > { %v5042_v27 = vpop.f32.mrb[0].mxu0 }
 0x12e   : > { %v6204_v28 = vadd.f32 %v5042_v27, %v4652_v26  ;;  %v525_v29 = vpop.f32.mrb[1].mxu0 }
 0x12f   : > { %v6206_v30 = vadd.f32 %v4652_v26, %v525_v29  ;;  %v5043_v31 = vpop.f32.mrb[2].mxu0 }
 0x130   : > { %628 = vadd.xlane.f32.xlu1 %v6204_v28  ;;  %v528_v32 = vpop.f32.mrb[3].mxu0  ;;  %v6210_v33 = vadd.f32 %v5043_v31, %v4652_v26 }
 0x131   : > { %624 = vadd.xlane.f32.xlu0 %v6206_v30  ;;  %v6212_v34 = vadd.f32 %v4652_v26, %v528_v32 }
 0x134   : > { %630 = vadd.xlane.f32.xlu1 %v6210_v33 }
 0x135   : > { %v5046_v35 = vpop.f32.mrb[4].mxu0  ;;  %626 = vadd.xlane.f32.xlu0 %v6212_v34 }
 0x136   : > { %v541_v36 = vpop.f32.mrb[5].mxu0  ;;  %v6221_v41 = vadd.f32 %v5046_v35, %v4652_v26 }
 0x137   : > { %v6216_v37 = vadd.f32 %v4652_v26, %v541_v36  ;;  %v5047_v38 = vpop.f32.mrb[6].mxu0 }
 0x138   : > { %v544_v39 = vpop.f32.mrb[7].mxu0  ;;  %v6224_v42 = vadd.f32 %v5047_v38, %v4652_v26 }
 0x139   : > { %v6218_v40 = vadd.f32 %v4652_v26, %v544_v39  ;;  %632 = vadd.xlane.f32.xlu0 %v6216_v37 }
 0x13b   : > { %634 = vadd.xlane.f32.xlu1 %v6218_v40 }
 0x13d   : > { %v5050_v43 = vpop.f32.mrb[8].mxu0  ;;  %636 = vadd.xlane.f32.xlu0 %v6221_v41 }
 0x13e   : > { %v557_v44 = vpop.f32.mrb[9].mxu0  ;;  %v6233_v49 = vadd.f32 %v5050_v43, %v4652_v26 }
 0x13f   : > { %v6227_v45 = vadd.f32 %v4652_v26, %v557_v44  ;;  %v5051_v46 = vpop.f32.mrb[10].mxu0  ;;  %638 = vadd.xlane.f32.xlu1 %v6224_v42 }
 0x140   : > { %v560_v47 = vpop.f32.mrb[11].mxu0  ;;  %v6236_v50 = vadd.f32 %v5051_v46, %v4652_v26 }
 0x141   : > { %v6230_v48 = vadd.f32 %v4652_v26, %v560_v47  ;;  %640 = vadd.xlane.f32.xlu0 %v6227_v45  ;;  %v5555_v47 = vld [vmem:[#allocation2 + $0x8] sm:$0xff]  }
 0x142   : > { %5058 = vmatprep.subr.bf16.mxu1 %v5555_v47 }
 0x143   : > { %642 = vadd.xlane.f32.xlu1 %v6230_v48  ;;  %5059 = vmatpush3.bf16.msra.mxu1 %v5555_v47 }
 0x145   : > { %v5054_v51 = vpop.f32.mrb[12].mxu0  ;;  %644 = vadd.xlane.f32.xlu0 %v6233_v49 }
 0x146   : > { %v573_v52 = vpop.f32.mrb[13].mxu0  ;;  %v6245_v57 = vadd.f32 %v5054_v51, %v4652_v26 }
 0x147   : > { %v6239_v53 = vadd.f32 %v4652_v26, %v573_v52  ;;  %v5055_v54 = vpop.f32.mrb[14].mxu0  ;;  %646 = vadd.xlane.f32.xlu1 %v6236_v50 }
 0x148   : > { %v576_v55 = vpop.f32.mrb[15].mxu0  ;;  %v6248_v58 = vadd.f32 %v5055_v54, %v4652_v26 }
 0x149   : > { %v6242_v56 = vadd.f32 %v4652_v26, %v576_v55  ;;  %648 = vadd.xlane.f32.xlu0 %v6239_v53 }
 0x14b   : > { %650 = vadd.xlane.f32.xlu1 %v6242_v56 }
 0x14d   : > { %652 = vadd.xlane.f32.xlu0 %v6245_v57 }
 0x14f   : > { %654 = vadd.xlane.f32.xlu1 %v6248_v58 }
 0x1bd   : > { %v629_v60 = vpop.xlane.xlu1 %628 }
 0x1be   : > { %v625_v61 = vpop.xlane.xlu0 %624  ;;  %v659_v62 = vmul.f32 0.0078125, %v629_v60 }
 0x1bf   : > { %v657_v63 = vmul.f32 0.0078125, %v625_v61 }
 0x1c0   : > { %v6258_v6 = vsub.f32 %v6204_v28, %v659_v62 }
 0x1c1   : > { %v631_v0 = vpop.xlane.xlu1 %630  ;;  %v6253_v1 = vsub.f32 %v6206_v30, %v657_v63 }
 0x1c2   : > { %v627_v2 = vpop.xlane.xlu0 %626  ;;  %v660_v3 = vmul.f32 0.0078125, %v631_v0  ;;  %v691_v10 = vmul.f32 %v6258_v6, %v6258_v6 }
 0x1c3   : > { %v658_v4 = vmul.f32 0.0078125, %v627_v2  ;;  %v689_v5 = vmul.f32 %v6253_v1, %v6253_v1  ;;  %v5556_v2 = vld [vmem:[#allocation2 + $0x10] sm:$0xff]  }
 0x1c4   : > { %v6268_v12 = vsub.f32 %v6210_v33, %v660_v3  ;;  %5060 = vmatprep.subr.bf16.mxu1 %v5556_v2 }
 0x1c5   : > { %705 = vadd.xlane.f32.xlu0 %v689_v5  ;;  %v6261_v7 = vsub.f32 %v6212_v34, %v658_v4  ;;  %5061 = vmatpush3.bf16.msra.mxu1 %v5556_v2 }
 0x1c6   : > { %v633_v8 = vpop.xlane.xlu0 %632  ;;  %v692_v18 = vmul.f32 %v6268_v12, %v6268_v12 }
 0x1c7   : > { %v661_v9 = vmul.f32 0.0078125, %v633_v8  ;;  %v690_v11 = vmul.f32 %v6261_v7, %v6261_v7 }
 0x1c8   : > { %v635_v13 = vpop.xlane.xlu1 %634 }
 0x1c9   : > { %v662_v14 = vmul.f32 0.0078125, %v635_v13  ;;  %709 = vadd.xlane.f32.xlu0 %v691_v10  ;;  %707 = vadd.xlane.f32.xlu1 %v690_v11  ;;  %v6271_v15 = vsub.f32 %v6216_v37, %v661_v9 }
 0x1ca   : > { %v637_v16 = vpop.xlane.xlu0 %636 }
 0x1cb   : > { %v663_v17 = vmul.f32 0.0078125, %v637_v16  ;;  %v693_v19 = vmul.f32 %v6271_v15, %v6271_v15  ;;  %v6278_v20 = vsub.f32 %v6218_v40, %v662_v14  ;;  %v5557_v14 = vld [vmem:[#allocation2 + $0x18] sm:$0xff]  }
 0x1cc   : > { %v639_v21 = vpop.xlane.xlu1 %638  ;;  %5062 = vmatprep.subr.bf16.mxu1 %v5557_v14 }
 0x1cd   : > { %v664_v22 = vmul.f32 0.0078125, %v639_v21  ;;  %711 = vadd.xlane.f32.xlu1 %v692_v18  ;;  %713 = vadd.xlane.f32.xlu0 %v693_v19  ;;  %v6281_v23 = vsub.f32 %v6221_v41, %v663_v17  ;;  %v694_v26 = vmul.f32 %v6278_v20, %v6278_v20  ;;  %v5558_v19 = vld [vmem:[#allocation2 + $0x20] sm:$0xff]  }
 0x1ce   : > { %v641_v24 = vpop.xlane.xlu0 %640  ;;  %5063 = vmatpush3.bf16.msra.mxu1 %v5557_v14 }
 0x1cf   : > { %v665_v25 = vmul.f32 0.0078125, %v641_v24  ;;  %v695_v27 = vmul.f32 %v6281_v23, %v6281_v23  ;;  %v6288_v29 = vsub.f32 %v6224_v42, %v664_v22  ;;  %5064 = vmatprep.subr.bf16.mxu1 %v5558_v19  ;;  %v5559_v22 = vld [vmem:[#allocation2 + $0x28] sm:$0xff]   ;;  %v5560_v24 = vld [vmem:[#allocation2 + $0x30] sm:$0xff]  }
 0x1d0   : > { %v643_v31 = vpop.xlane.xlu1 %642 }
 0x1d1   : > { %v666_v32 = vmul.f32 0.0078125, %v643_v31  ;;  %715 = vadd.xlane.f32.xlu1 %v694_v26  ;;  %717 = vadd.xlane.f32.xlu0 %v695_v27  ;;  %v6291_v35 = vsub.f32 %v6227_v45, %v665_v25  ;;  %v696_v39 = vmul.f32 %v6288_v29, %v6288_v29  ;;  %v5561_v25 = vld [vmem:[#allocation2 + $0x38] sm:$0xff]   ;;  %v5562_v26 = vld [vmem:[#allocation5] sm:$0xff]   ;;  %v5563_v27 = vld [vmem:[#allocation5 + $0x8] sm:$0xff]  }
 0x1d2   : > { %v645_v36 = vpop.xlane.xlu0 %644  ;;  %5065 = vmatpush3.bf16.msra.mxu1 %v5558_v19  ;;  %5088 = vmatprep.subr.bf16.mxu0 %v5562_v26  ;;  %v5564_v31 = vld [vmem:[#allocation5 + $0x10] sm:$0xff]  }
 0x1d3   : > { %v667_v38 = vmul.f32 0.0078125, %v645_v36  ;;  %v697_v43 = vmul.f32 %v6291_v35, %v6291_v35  ;;  %v6298_v44 = vsub.f32 %v6230_v48, %v666_v32  ;;  %5066 = vmatprep.subr.bf16.mxu1 %v5559_v22  ;;  %5089 = vmatpush3.bf16.msra.mxu0 %v5562_v26  ;;  %v5565_v32 = vld [vmem:[#allocation5 + $0x18] sm:$0xff]   ;;  %v5566_v36 = vld [vmem:[#allocation5 + $0x20] sm:$0xff]  }
 0x1d4   : > { %v647_v46 = vpop.xlane.xlu1 %646  ;;  %5090 = vmatprep.subr.bf16.mxu0 %v5563_v27 }
 0x1d5   : > { %v668_v51 = vmul.f32 0.0078125, %v647_v46  ;;  %719 = vadd.xlane.f32.xlu1 %v696_v39  ;;  %721 = vadd.xlane.f32.xlu0 %v697_v43  ;;  %v6301_v52 = vsub.f32 %v6233_v49, %v667_v38  ;;  %v698_v59 = vmul.f32 %v6298_v44, %v6298_v44  ;;  %v5567_v38 = vld [vmem:[#allocation5 + $0x28] sm:$0xff]  }
 0x1d6   : > { %v649_v54 = vpop.xlane.xlu0 %648  ;;  %5067 = vmatpush3.bf16.msra.mxu1 %v5559_v22 }
 0x1d7   : > { %v669_v55 = vmul.f32 0.0078125, %v649_v54  ;;  %v699_v60 = vmul.f32 %v6301_v52, %v6301_v52  ;;  %v6308_v61 = vsub.f32 %v6236_v50, %v668_v51  ;;  %5068 = vmatprep.subr.bf16.mxu1 %v5560_v24  ;;  %5091 = vmatpush3.bf16.msra.mxu0 %v5563_v27  ;;  %v6336_v27 = vld [vmem:[%s7687_s3] ss:$0 sm:$0xff] }
 0x1d8   : > { %v651_v62 = vpop.xlane.xlu1 %650  ;;  %5092 = vmatprep.subr.bf16.mxu0 %v5564_v31 }
 0x1d9   : > { %v670_v63 = vmul.f32 0.0078125, %v651_v62  ;;  %723 = vadd.xlane.f32.xlu1 %v698_v59  ;;  %725 = vadd.xlane.f32.xlu0 %v699_v60  ;;  %v6311_v0 = vsub.f32 %v6239_v53, %v669_v55  ;;  %v700_v5 = vmul.f32 %v6308_v61, %v6308_v61 }
 0x1da   : > { %v653_v3 = vpop.xlane.xlu0 %652  ;;  %5069 = vmatpush3.bf16.msra.mxu1 %v5560_v24 }
 0x1db   : > { %v671_v4 = vmul.f32 0.0078125, %v653_v3  ;;  %v701_v8 = vmul.f32 %v6311_v0, %v6311_v0  ;;  %v6318_v9 = vsub.f32 %v6242_v56, %v670_v63  ;;  %5070 = vmatprep.subr.bf16.mxu1 %v5561_v25  ;;  %5093 = vmatpush3.bf16.msra.mxu0 %v5564_v31 }
 0x1dc   : > { %v655_v10 = vpop.xlane.xlu1 %654  ;;  %5094 = vmatprep.subr.bf16.mxu0 %v5565_v32 }
 0x1dd   : > { %v672_v11 = vmul.f32 0.0078125, %v655_v10  ;;  %727 = vadd.xlane.f32.xlu1 %v700_v5  ;;  %729 = vadd.xlane.f32.xlu0 %v701_v8  ;;  %v6321_v13 = vsub.f32 %v6245_v57, %v671_v4  ;;  %v702_v16 = vmul.f32 %v6318_v9, %v6318_v9 }
 0x1de   : > { %5071 = vmatpush3.bf16.msra.mxu1 %v5561_v25 }
 0x1df   : > { %v703_v17 = vmul.f32 %v6321_v13, %v6321_v13  ;;  %v6328_v18 = vsub.f32 %v6248_v58, %v672_v11  ;;  %5095 = vmatpush3.bf16.msra.mxu0 %v5565_v32 }
 0x1e0   : > { %5096 = vmatprep.subr.bf16.mxu0 %v5566_v36 }
 0x1e1   : > { %731 = vadd.xlane.f32.xlu1 %v702_v16  ;;  %733 = vadd.xlane.f32.xlu0 %v703_v17  ;;  %v704_v21 = vmul.f32 %v6328_v18, %v6328_v18 }
 0x1e3   : > { %5097 = vmatpush3.bf16.msra.mxu0 %v5566_v36 }
 0x1e4   : > { %5098 = vmatprep.subr.bf16.mxu0 %v5567_v38 }
 0x1e5   : > { %735 = vadd.xlane.f32.xlu1 %v704_v21 }
 0x1e7   : > { %5099 = vmatpush3.bf16.msra.mxu0 %v5567_v38 }
 0x252   : > { %v706_v39 = vpop.xlane.xlu0 %705 }
 0x253   : > { %v737_v43 = vmul.f32 0.0078125, %v706_v39 }
 0x255   : > { %v753_v46 = vadd.f32 1e-05, %v737_v43 }
 0x256   : > { %v708_v47 = vpop.xlane.xlu1 %707  ;;  %v710_v51 = vpop.xlane.xlu0 %709 }
 0x257   : > { %5658 = vrsqrt.f32 %v753_v46  ;;  %v738_v54 = vmul.f32 0.0078125, %v708_v47  ;;  %v739_v55 = vmul.f32 0.0078125, %v710_v51 }
 0x259   : > { %v754_v59 = vadd.f32 1e-05, %v738_v54  ;;  %v755_v60 = vadd.f32 1e-05, %v739_v55  ;;  %v6343_v54 = vld [vmem:[%s7688_s4] ss:$0 sm:$0xff] }
 0x25a   : > { %v712_v62 = vpop.xlane.xlu1 %711  ;;  %v714_v63 = vpop.xlane.xlu0 %713 }
 0x25b   : > { %5660 = vrsqrt.f32 %v754_v59  ;;  %v740_v2 = vmul.f32 0.0078125, %v712_v62  ;;  %v741_v3 = vmul.f32 0.0078125, %v714_v63 }
 0x25c   : > { %5662 = vrsqrt.f32 %v755_v60 }
 0x25d   : > { %v756_v4 = vadd.f32 1e-05, %v740_v2  ;;  %v757_v5 = vadd.f32 1e-05, %v741_v3 }
 0x25e   : > { %v716_v8 = vpop.xlane.xlu1 %715  ;;  %v718_v10 = vpop.xlane.xlu0 %717 }
 0x25f   : > { %5664 = vrsqrt.f32 %v756_v4  ;;  %v742_v11 = vmul.f32 0.0078125, %v716_v8  ;;  %v743_v14 = vmul.f32 0.0078125, %v718_v10 }
 0x260   : > { %5666 = vrsqrt.f32 %v757_v5 }
 0x261   : > { %v5659_v16 = vpop.eup %5658  ;;  %v758_v17 = vadd.f32 1e-05, %v742_v11  ;;  %v759_v19 = vadd.f32 1e-05, %v743_v14 }
 0x262   : > { %v720_v21 = vpop.xlane.xlu1 %719  ;;  %v722_v22 = vpop.xlane.xlu0 %721  ;;  %v785_v24 = vmul.f32 %v5659_v16, %v6253_v1 }
 0x263   : > { %5668 = vrsqrt.f32 %v758_v17  ;;  %v744_v25 = vmul.f32 0.0078125, %v720_v21  ;;  %v745_v26 = vmul.f32 0.0078125, %v722_v22 }
 0x264   : > { %5670 = vrsqrt.f32 %v759_v19  ;;  %v807_v47 = vmul.f32 %v6336_v27, %v785_v24 }
 0x265   : > { %v5661_v31 = vpop.eup %5660  ;;  %v760_v32 = vadd.f32 1e-05, %v744_v25  ;;  %v761_v36 = vadd.f32 1e-05, %v745_v26 }
 0x266   : > { %v5663_v38 = vpop.eup %5662  ;;  %v724_v39 = vpop.xlane.xlu1 %723  ;;  %v786_v46 = vmul.f32 %v5661_v31, %v6261_v7  ;;  %v829_v4 = vadd.f32 %v6343_v54, %v807_v47 }
 0x267   : > { %v726_v43 = vpop.xlane.xlu0 %725  ;;  %5672 = vrsqrt.f32 %v760_v32  ;;  %v746_v1 = vmul.f32 0.0078125, %v724_v39  ;;  %v787_v55 = vmul.f32 %v5663_v38, %v6258_v6 }
 0x268   : > { %v747_v51 = vmul.f32 0.0078125, %v726_v43  ;;  %5674 = vrsqrt.f32 %v761_v36  ;;  %v808_v59 = vmul.f32 %v6336_v27, %v786_v46 }
 0x269   : > { %v5665_v60 = vpop.eup %5664  ;;  %v762_v62 = vadd.f32 1e-05, %v746_v1  ;;  %v809_v10 = vmul.f32 %v6336_v27, %v787_v55 }
 0x26a   : > { %v763_v63 = vadd.f32 1e-05, %v747_v51  ;;  %v5667_v2 = vpop.eup %5666  ;;  %v728_v7 = vpop.xlane.xlu1 %727  ;;  %v830_v5 = vadd.f32 %v6343_v54, %v808_v59  ;;  %v788_v8 = vmul.f32 %v5665_v60, %v6268_v12 }
 0x26b   : > { %v730_v3 = vpop.xlane.xlu0 %729  ;;  %5676 = vrsqrt.f32 %v762_v62  ;;  %v748_v11 = vmul.f32 0.0078125, %v728_v7  ;;  %v789_v17 = vmul.f32 %v5667_v2, %v6271_v15  ;;  %v831_v12 = vadd.f32 %v6343_v54, %v809_v10 }
 0x26c   : > { %v749_v6 = vmul.f32 0.0078125, %v730_v3  ;;  %5678 = vrsqrt.f32 %v763_v63  ;;  %v845_v14 = vpack.c.bf16 %v830_v5, %v829_v4  ;;  %v810_v16 = vmul.f32 %v6336_v27, %v788_v8 }
 0x26d   : > { %v5669_v19 = vpop.eup %5668  ;;  %v764_v21 = vadd.f32 1e-05, %v748_v11  ;;  %v811_v36 = vmul.f32 %v6336_v27, %v789_v17 }
 0x26e   : > { %v765_v22 = vadd.f32 1e-05, %v749_v6  ;;  %v5671_v24 = vpop.eup %5670  ;;  %v732_v25 = vpop.xlane.xlu1 %731  ;;  %5072 = vmatprep.mubr.bf16.mxu1 %v845_v14  ;;  %v832_v31 = vadd.f32 %v6343_v54, %v810_v16  ;;  %v790_v32 = vmul.f32 %v5669_v19, %v6278_v20 }
 0x26f   : > { %v734_v26 = vpop.xlane.xlu0 %733  ;;  %5680 = vrsqrt.f32 %v764_v21  ;;  %v750_v38 = vmul.f32 0.0078125, %v732_v25  ;;  %v791_v15 = vmul.f32 %v5671_v24, %v6281_v23  ;;  %v833_v60 = vadd.f32 %v6343_v54, %v811_v36 }
 0x270   : > { %v751_v39 = vmul.f32 0.0078125, %v734_v26  ;;  %5682 = vrsqrt.f32 %v765_v22  ;;  %v846_v43 = vpack.c.bf16 %v832_v31, %v831_v12  ;;  %v812_v46 = vmul.f32 %v6336_v27, %v790_v32 }
 0x271   : > { %v5673_v47 = vpop.eup %5672  ;;  %v766_v1 = vadd.f32 1e-05, %v750_v38  ;;  %v813_v63 = vmul.f32 %v6336_v27, %v791_v15 }
 0x272   : > { %v767_v51 = vadd.f32 1e-05, %v751_v39  ;;  %v5675_v55 = vpop.eup %5674  ;;  %v736_v59 = vpop.xlane.xlu1 %735  ;;  %5073 = vmatmul.mubr.bf16.vlgmr.msra.gmra.mrb[0].mxu1 %v846_v43  ;;  %v834_v20 = vadd.f32 %v6343_v54, %v812_v46  ;;  %v792_v62 = vmul.f32 %v5673_v47, %v6288_v29 }
 0x273   : > { %5684 = vrsqrt.f32 %v766_v1  ;;  %v752_v23 = vmul.f32 0.0078125, %v736_v59  ;;  %v793_v2 = vmul.f32 %v5675_v55, %v6291_v35  ;;  %v835_v10 = vadd.f32 %v6343_v54, %v813_v63 }
 0x274   : > { %5686 = vrsqrt.f32 %v767_v51  ;;  %v847_v7 = vpack.c.bf16 %v834_v20, %v833_v60  ;;  %v814_v3 = vmul.f32 %v6336_v27, %v792_v62  ;;  %v5568_v20 = vld [vmem:[#allocation5 + $0x30] sm:$0xff]   ;;  %v5569_v62 = vld [vmem:[#allocation5 + $0x38] sm:$0xff]  }
 0x275   : > { %v5677_v4 = vpop.eup %5676  ;;  %v768_v5 = vadd.f32 1e-05, %v752_v23  ;;  %v815_v6 = vmul.f32 %v6336_v27, %v793_v2  ;;  %5100 = vmatprep.subr.bf16.mxu0 %v5568_v20 }
 0x276   : > { %v5679_v8 = vpop.eup %5678  ;;  %5076 = vmatprep.mubr.bf16.mxu1 %v847_v7  ;;  %v836_v11 = vadd.f32 %v6343_v54, %v814_v3  ;;  %v794_v29 = vmul.f32 %v5677_v4, %v6298_v44  ;;  %5101 = vmatpush3.bf16.msra.mxu0 %v5568_v20 }
 0x277   : > { %5688 = vrsqrt.f32 %v768_v5  ;;  %v795_v14 = vmul.f32 %v5679_v8, %v6301_v52  ;;  %v837_v21 = vadd.f32 %v6343_v54, %v815_v6  ;;  %5102 = vmatprep.subr.bf16.mxu0 %v5569_v62 }
 0x278   : > { %v848_v35 = vpack.c.bf16 %v836_v11, %v835_v10  ;;  %v816_v16 = vmul.f32 %v6336_v27, %v794_v29 }
 0x279   : > { %v5681_v17 = vpop.eup %5680  ;;  %v817_v25 = vmul.f32 %v6336_v27, %v795_v14 }
 0x27a   : > { %v5683_v19 = vpop.eup %5682  ;;  %5077 = vmatmul.mubr.bf16.gmra.mrb[4].mxu1 %v848_v35  ;;  %v838_v22 = vadd.f32 %v6343_v54, %v816_v16  ;;  %v796_v24 = vmul.f32 %v5681_v17, %v6308_v61  ;;  %5103 = vmatpush3.bf16.msra.mxu0 %v5569_v62 }
 0x27b   : > { %v797_v44 = vmul.f32 %v5683_v19, %v6311_v0  ;;  %v839_v32 = vadd.f32 %v6343_v54, %v817_v25 }
 0x27c   : > { %v849_v26 = vpack.c.bf16 %v838_v22, %v837_v21  ;;  %v818_v12 = vmul.f32 %v6336_v27, %v796_v24 }
 0x27d   : > { %v5685_v52 = vpop.eup %5684  ;;  %v819_v39 = vmul.f32 %v6336_v27, %v797_v44 }
 0x27e   : > { %v5687_v31 = vpop.eup %5686  ;;  %5080 = vmatprep.mubr.bf16.mxu1 %v849_v26  ;;  %v840_v36 = vadd.f32 %v6343_v54, %v818_v12  ;;  %v798_v38 = vmul.f32 %v5685_v52, %v6318_v9 }
 0x27f   : > { %v799_v61 = vmul.f32 %v5687_v31, %v6321_v13  ;;  %v841_v46 = vadd.f32 %v6343_v54, %v819_v39 }
 0x280   : > { %v850_v15 = vpack.c.bf16 %v840_v36, %v839_v32  ;;  %v820_v43 = vmul.f32 %v6336_v27, %v798_v38 }
 0x281   : > { %v5689_v0 = vpop.eup %5688  ;;  %v821_v51 = vmul.f32 %v6336_v27, %v799_v61 }
 0x282   : > { %5081 = vmatmul.mubr.bf16.gmra.mrb[8].mxu1 %v850_v15  ;;  %v842_v47 = vadd.f32 %v6343_v54, %v820_v43  ;;  %v800_v1 = vmul.f32 %v5689_v0, %v6328_v18  ;;  %v4665_v18 = vld [vmem:[%s7690_s6] ss:$0 sm:$0xff] }
 0x283   : > { %v843_v59 = vadd.f32 %v6343_v54, %v821_v51 }
 0x284   : > { %v851_v55 = vpack.c.bf16 %v842_v47, %v841_v46  ;;  %v822_v9 = vmul.f32 %v6336_v27, %v800_v1 }
 0x286   : > { %5084 = vmatprep.mubr.bf16.mxu1 %v851_v55  ;;  %v844_v13 = vadd.f32 %v6343_v54, %v822_v9 }
 0x288   : > { %v852_v60 = vpack.c.bf16 %v844_v13, %v843_v59 }
 0x28a   : > { %5085 = vmatmul.mubr.bf16.gmra.mrb[12].mxu1 %v852_v60 }
 0x345   : > { %v5074_v63 = vpop.f32.mrb[0].mxu1 }
 0x346   : > { %v950_v23 = vadd.f32 %v5074_v63, %v4665_v18  ;;  %v941_v27 = vpop.f32.mrb[1].mxu1 }
 0x347   : > { %v942_v2 = vadd.f32 %v4665_v18, %v941_v27  ;;  %v5075_v7 = vpop.f32.mrb[2].mxu1 }
 0x348   : > { %v953_v3 = vadd.f32 %v5075_v7, %v4665_v18  ;;  %v944_v4 = vpop.f32.mrb[3].mxu1  ;;  %v1006_v5 = vmax.f32 %v950_v23, 0.0 }
 0x349   : > { %v945_v54 = vadd.f32 %v4665_v18, %v944_v4  ;;  %v1004_v10 = vmax.f32 %v942_v2, 0.0 }
 0x34a   : > { %v1007_v8 = vmax.f32 %v953_v3, 0.0 }
 0x34b   : > { %v1005_v11 = vmax.f32 %v945_v54, 0.0 }
 0x34c   : > { %v1021_v29 = vpack.c.bf16 %v1007_v8, %v1006_v5  ;;  %v6396_v8 = vld [vmem:[%s7692_s8] ss:$0 sm:$0xff] }
 0x34d   : > { %v1020_v6 = vpack.c.bf16 %v1005_v11, %v1004_v10  ;;  %v5078_v14 = vpop.f32.mrb[4].mxu1 }
 0x34e   : > { %v966_v35 = vadd.f32 %v5078_v14, %v4665_v18  ;;  %v957_v16 = vpop.f32.mrb[5].mxu1 }
 0x34f   : > { %v958_v17 = vadd.f32 %v4665_v18, %v957_v16  ;;  %v5079_v19 = vpop.f32.mrb[6].mxu1  ;;  %5104 = vmatprep.mubr.bf16.mxu0 %v1020_v6 }
 0x350   : > { %v969_v21 = vadd.f32 %v5079_v19, %v4665_v18  ;;  %v960_v22 = vpop.f32.mrb[7].mxu1  ;;  %5105 = vmatmul.mubr.bf16.vlgmr.msra.gmra.mrb[16].mxu0 %v1021_v29  ;;  %v1010_v25 = vmax.f32 %v966_v35, 0.0 }
 0x351   : > { %v961_v24 = vadd.f32 %v4665_v18, %v960_v22  ;;  %v1008_v26 = vmax.f32 %v958_v17, 0.0 }
 0x352   : > { %v1011_v44 = vmax.f32 %v969_v21, 0.0 }
 0x353   : > { %v1009_v12 = vmax.f32 %v961_v24, 0.0 }
 0x354   : > { %v1023_v52 = vpack.c.bf16 %v1011_v44, %v1010_v25 }
 0x355   : > { %v1022_v31 = vpack.c.bf16 %v1009_v12, %v1008_v26  ;;  %v5082_v32 = vpop.f32.mrb[8].mxu1 }
 0x356   : > { %v982_v36 = vadd.f32 %v5082_v32, %v4665_v18  ;;  %v973_v38 = vpop.f32.mrb[9].mxu1 }
 0x357   : > { %v974_v39 = vadd.f32 %v4665_v18, %v973_v38  ;;  %v5083_v61 = vpop.f32.mrb[10].mxu1  ;;  %5108 = vmatprep.mubr.bf16.mxu0 %v1022_v31 }
 0x358   : > { %v985_v15 = vadd.f32 %v5083_v61, %v4665_v18  ;;  %v976_v43 = vpop.f32.mrb[11].mxu1  ;;  %5109 = vmatmul.mubr.bf16.gmra.mrb[20].mxu0 %v1023_v52  ;;  %v1014_v46 = vmax.f32 %v982_v36, 0.0 }
 0x359   : > { %v977_v0 = vadd.f32 %v4665_v18, %v976_v43  ;;  %v1012_v1 = vmax.f32 %v974_v39, 0.0 }
 0x35a   : > { %v1015_v47 = vmax.f32 %v985_v15, 0.0 }
 0x35b   : > { %v1013_v51 = vmax.f32 %v977_v0, 0.0 }
 0x35c   : > { %v1025_v55 = vpack.c.bf16 %v1015_v47, %v1014_v46 }
 0x35d   : > { %v1024_v9 = vpack.c.bf16 %v1013_v51, %v1012_v1  ;;  %v5086_v59 = vpop.f32.mrb[12].mxu1 }
 0x35e   : > { %v998_v13 = vadd.f32 %v5086_v59, %v4665_v18  ;;  %v989_v60 = vpop.f32.mrb[13].mxu1 }
 0x35f   : > { %v990_v20 = vadd.f32 %v4665_v18, %v989_v60  ;;  %v5087_v62 = vpop.f32.mrb[14].mxu1  ;;  %5112 = vmatprep.mubr.bf16.mxu0 %v1024_v9 }
 0x360   : > { %v1001_v63 = vadd.f32 %v5087_v62, %v4665_v18  ;;  %v992_v23 = vpop.f32.mrb[15].mxu1  ;;  %5113 = vmatmul.mubr.bf16.gmra.mrb[24].mxu0 %v1025_v55  ;;  %v1018_v2 = vmax.f32 %v998_v13, 0.0 }
 0x361   : > { %v993_v27 = vadd.f32 %v4665_v18, %v992_v23  ;;  %v1016_v3 = vmax.f32 %v990_v20, 0.0 }
 0x362   : > { %v1019_v7 = vmax.f32 %v1001_v63, 0.0 }
 0x363   : > { %v1017_v4 = vmax.f32 %v993_v27, 0.0 }
 0x364   : > { %v1027_v54 = vpack.c.bf16 %v1019_v7, %v1018_v2 }
 0x365   : > { %v1026_v5 = vpack.c.bf16 %v1017_v4, %v1016_v3 }
 0x367   : > { %5116 = vmatprep.mubr.bf16.mxu0 %v1026_v5 }
 0x368   : > { %5117 = vmatmul.mubr.bf16.gmra.mrb[28].mxu0 %v1027_v54 }
 0x423   : > { %v5106_v10 = vpop.f32.mrb[16].mxu0 }
 0x424   : > { %v1116_v11 = vpop.f32.mrb[17].mxu0  ;;  %v1125_v29 = vadd.f32 %v5106_v10, %v6396_v8 }
 0x425   : > { %v1117_v6 = vadd.f32 %v6396_v8, %v1116_v11  ;;  %v5107_v18 = vpop.f32.mrb[18].mxu0 }
 0x426   : > { %v1119_v14 = vpop.f32.mrb[19].mxu0  ;;  %v1128_v16 = vadd.f32 %v5107_v18, %v6396_v8  ;;  %v1181_v19 = vmax.f32 %v1125_v29, 0.0 }
 0x427   : > { %v1179_v35 = vmax.f32 %v1117_v6, 0.0  ;;  %v1120_v17 = vadd.f32 %v6396_v8, %v1119_v14 }
 0x428   : > { %v1182_v24 = vmax.f32 %v1128_v16, 0.0  ;;  %v6410_v12 = vadd.f32 %v1181_v19, %v6204_v28 }
 0x429   : > { %v6403_v21 = vadd.f32 %v1179_v35, %v6206_v30  ;;  %v1180_v22 = vmax.f32 %v1120_v17, 0.0 }
 0x42a   : > { %v6416_v36 = vadd.f32 %v1182_v24, %v6210_v33 }
 0x42b   : > { %v6406_v25 = vadd.f32 %v1180_v22, %v6212_v34  ;;  %1253 = vadd.xlane.f32.xlu0 %v6403_v21  ;;  %v5110_v44 = vpop.f32.mrb[20].mxu0 }
 0x42c   : > { %v1132_v26 = vpop.f32.mrb[21].mxu0  ;;  %v1141_v52 = vadd.f32 %v5110_v44, %v6396_v8 }
 0x42d   : > { %v1133_v31 = vadd.f32 %v6396_v8, %v1132_v26  ;;  %1255 = vadd.xlane.f32.xlu1 %v6406_v25  ;;  %v5111_v30 = vpop.f32.mrb[22].mxu0 }
 0x42e   : > { %v1135_v32 = vpop.f32.mrb[23].mxu0  ;;  %v1144_v38 = vadd.f32 %v5111_v30, %v6396_v8  ;;  %v1185_v28 = vmax.f32 %v1141_v52, 0.0 }
 0x42f   : > { %v1183_v34 = vmax.f32 %v1133_v31, 0.0  ;;  %v1136_v39 = vadd.f32 %v6396_v8, %v1135_v32  ;;  %1257 = vadd.xlane.f32.xlu0 %v6410_v12 }
 0x430   : > { %v1186_v43 = vmax.f32 %v1144_v38, 0.0  ;;  %v6430_v47 = vadd.f32 %v1185_v28, %v6221_v41 }
 0x431   : > { %v6422_v61 = vadd.f32 %v1183_v34, %v6216_v37  ;;  %v1184_v15 = vmax.f32 %v1136_v39, 0.0  ;;  %1259 = vadd.xlane.f32.xlu1 %v6416_v36 }
 0x432   : > { %v6436_v9 = vadd.f32 %v1186_v43, %v6224_v42 }
 0x433   : > { %v6426_v0 = vadd.f32 %v1184_v15, %v6218_v40  ;;  %1261 = vadd.xlane.f32.xlu0 %v6422_v61  ;;  %v5114_v33 = vpop.f32.mrb[24].mxu0 }
 0x434   : > { %v1148_v46 = vpop.f32.mrb[25].mxu0  ;;  %v1157_v1 = vadd.f32 %v5114_v33, %v6396_v8 }
 0x435   : > { %v1149_v51 = vadd.f32 %v6396_v8, %v1148_v46  ;;  %1263 = vadd.xlane.f32.xlu1 %v6426_v0  ;;  %v5115_v37 = vpop.f32.mrb[26].mxu0 }
 0x436   : > { %v1151_v55 = vpop.f32.mrb[27].mxu0  ;;  %v1160_v59 = vadd.f32 %v5115_v37, %v6396_v8  ;;  %v1189_v41 = vmax.f32 %v1157_v1, 0.0 }
 0x437   : > { %v1187_v40 = vmax.f32 %v1149_v51, 0.0  ;;  %v1152_v13 = vadd.f32 %v6396_v8, %v1151_v55  ;;  %1265 = vadd.xlane.f32.xlu0 %v6430_v47 }
 0x438   : > { %v1190_v62 = vmax.f32 %v1160_v59, 0.0  ;;  %v6450_v27 = vadd.f32 %v1189_v41, %v6233_v49 }
 0x439   : > { %v6442_v60 = vadd.f32 %v1187_v40, %v6227_v45  ;;  %v1188_v20 = vmax.f32 %v1152_v13, 0.0  ;;  %1267 = vadd.xlane.f32.xlu1 %v6436_v9 }
 0x43a   : > { %v6456_v4 = vadd.f32 %v1190_v62, %v6236_v50 }
 0x43b   : > { %v6446_v63 = vadd.f32 %v1188_v20, %v6230_v48  ;;  %1269 = vadd.xlane.f32.xlu0 %v6442_v60  ;;  %v5118_v42 = vpop.f32.mrb[28].mxu0 }
 0x43c   : > { %v1164_v23 = vpop.f32.mrb[29].mxu0  ;;  %v1173_v2 = vadd.f32 %v5118_v42, %v6396_v8 }
 0x43d   : > { %v1165_v7 = vadd.f32 %v6396_v8, %v1164_v23  ;;  %1271 = vadd.xlane.f32.xlu1 %v6446_v63  ;;  %v5119_v45 = vpop.f32.mrb[30].mxu0 }
 0x43e   : > { %v1167_v3 = vpop.f32.mrb[31].mxu0  ;;  %v1176_v54 = vadd.f32 %v5119_v45, %v6396_v8  ;;  %v1193_v49 = vmax.f32 %v1173_v2, 0.0 }
 0x43f   : > { %v1191_v48 = vmax.f32 %v1165_v7, 0.0  ;;  %v1168_v5 = vadd.f32 %v6396_v8, %v1167_v3  ;;  %1273 = vadd.xlane.f32.xlu0 %v6450_v27 }
 0x440   : > { %v1194_v29 = vmax.f32 %v1176_v54, 0.0  ;;  %v6470_v50 = vadd.f32 %v1193_v49, %v6245_v57  ;;  %v5571_v54 = vld [vmem:[#allocation2 + $0x48] sm:$0xff]  }
 0x441   : > { %v6462_v10 = vadd.f32 %v1191_v48, %v6239_v53  ;;  %v1192_v11 = vmax.f32 %v1168_v5, 0.0  ;;  %1275 = vadd.xlane.f32.xlu1 %v6456_v4  ;;  %v5570_v53 = vld [vmem:[#allocation2 + $0x40] sm:$0xff]  }
 0x442   : > { %v6474_v8 = vadd.f32 %v1194_v29, %v6248_v58  ;;  %5120 = vmatprep.subr.bf16.mxu1 %v5570_v53 }
 0x443   : > { %v6466_v6 = vadd.f32 %v1192_v11, %v6242_v56  ;;  %1277 = vadd.xlane.f32.xlu0 %v6462_v10  ;;  %5121 = vmatpush3.bf16.msra.mxu1 %v5570_v53 }
 0x444   : > { %5122 = vmatprep.subr.bf16.mxu1 %v5571_v54 }
 0x445   : > { %1279 = vadd.xlane.f32.xlu1 %v6466_v6 }
 0x447   : > { %1281 = vadd.xlane.f32.xlu0 %v6470_v50  ;;  %5123 = vmatpush3.bf16.msra.mxu1 %v5571_v54 }
 0x449   : > { %1283 = vadd.xlane.f32.xlu1 %v6474_v8 }
 0x4b8   : > { %v1254_v18 = vpop.xlane.xlu0 %1253 }
 0x4b9   : > { %v1285_v56 = vmul.f32 0.0078125, %v1254_v18 }
 0x4ba   : > { %v1256_v14 = vpop.xlane.xlu1 %1255 }
 0x4bb   : > { %v1286_v35 = vmul.f32 0.0078125, %v1256_v14  ;;  %v6479_v16 = vsub.f32 %v6403_v21, %v1285_v56 }
 0x4bc   : > { %v1258_v57 = vpop.xlane.xlu0 %1257 }
 0x4bd   : > { %v1287_v17 = vmul.f32 0.0078125, %v1258_v57  ;;  %v1317_v58 = vmul.f32 %v6479_v16, %v6479_v16  ;;  %v6484_v19 = vsub.f32 %v6406_v25, %v1286_v35  ;;  %v5572_v35 = vld [vmem:[#allocation2 + $0x50] sm:$0xff]  }
 0x4be   : > { %v1260_v22 = vpop.xlane.xlu1 %1259  ;;  %5124 = vmatprep.subr.bf16.mxu1 %v5572_v35 }
 0x4bf   : > { %v1288_v24 = vmul.f32 0.0078125, %v1260_v22  ;;  %1333 = vadd.xlane.f32.xlu0 %v1317_v58  ;;  %v1318_v44 = vmul.f32 %v6484_v19, %v6484_v19  ;;  %v6489_v26 = vsub.f32 %v6410_v12, %v1287_v17  ;;  %5125 = vmatpush3.bf16.msra.mxu1 %v5572_v35 }
 0x4c0   : > { %v1262_v52 = vpop.xlane.xlu0 %1261 }
 0x4c1   : > { %v1289_v31 = vmul.f32 0.0078125, %v1262_v52  ;;  %1335 = vadd.xlane.f32.xlu1 %v1318_v44  ;;  %v1319_v30 = vmul.f32 %v6489_v26, %v6489_v26  ;;  %v6494_v32 = vsub.f32 %v6416_v36, %v1288_v24 }
 0x4c2   : > { %v1264_v34 = vpop.xlane.xlu1 %1263 }
 0x4c3   : > { %v1290_v38 = vmul.f32 0.0078125, %v1264_v34  ;;  %1337 = vadd.xlane.f32.xlu0 %v1319_v30  ;;  %v1320_v39 = vmul.f32 %v6494_v32, %v6494_v32  ;;  %v6499_v28 = vsub.f32 %v6422_v61, %v1289_v31  ;;  %v5573_v30 = vld [vmem:[#allocation2 + $0x58] sm:$0xff]  }
 0x4c4   : > { %v1266_v15 = vpop.xlane.xlu0 %1265  ;;  %5126 = vmatprep.subr.bf16.mxu1 %v5573_v30 }
 0x4c5   : > { %v1291_v43 = vmul.f32 0.0078125, %v1266_v15  ;;  %1339 = vadd.xlane.f32.xlu1 %v1320_v39  ;;  %v1321_v33 = vmul.f32 %v6499_v28, %v6499_v28  ;;  %v6504_v46 = vsub.f32 %v6426_v0, %v1290_v38  ;;  %5127 = vmatpush3.bf16.msra.mxu1 %v5573_v30 }
 0x4c6   : > { %v1268_v1 = vpop.xlane.xlu1 %1267 }
 0x4c7   : > { %v1292_v51 = vmul.f32 0.0078125, %v1268_v1  ;;  %1341 = vadd.xlane.f32.xlu0 %v1321_v33  ;;  %v1322_v37 = vmul.f32 %v6504_v46, %v6504_v46  ;;  %v6509_v55 = vsub.f32 %v6430_v47, %v1291_v43  ;;  %v5574_v33 = vld [vmem:[#allocation2 + $0x60] sm:$0xff]  }
 0x4c8   : > { %v1270_v40 = vpop.xlane.xlu0 %1269  ;;  %5128 = vmatprep.subr.bf16.mxu1 %v5574_v33 }
 0x4c9   : > { %v1293_v59 = vmul.f32 0.0078125, %v1270_v40  ;;  %1343 = vadd.xlane.f32.xlu1 %v1322_v37  ;;  %v1323_v13 = vmul.f32 %v6509_v55, %v6509_v55  ;;  %v6514_v41 = vsub.f32 %v6436_v9, %v1292_v51  ;;  %5129 = vmatpush3.bf16.msra.mxu1 %v5574_v33  ;;  %v5575_v51 = vld [vmem:[#allocation2 + $0x68] sm:$0xff]   ;;  %v5576_v37 = vld [vmem:[#allocation2 + $0x70] sm:$0xff]   ;;  %v5577_v40 = vld [vmem:[#allocation2 + $0x78] sm:$0xff]  }
 0x4ca   : > { %v1272_v20 = vpop.xlane.xlu1 %1271  ;;  %5130 = vmatprep.subr.bf16.mxu1 %v5575_v51 }
 0x4cb   : > { %v1294_v62 = vmul.f32 0.0078125, %v1272_v20  ;;  %1345 = vadd.xlane.f32.xlu0 %v1323_v13  ;;  %v1324_v42 = vmul.f32 %v6514_v41, %v6514_v41  ;;  %v6519_v23 = vsub.f32 %v6442_v60, %v1293_v59  ;;  %v5578_v59 = vld [vmem:[#allocation5 + $0x40] sm:$0xff]   ;;  %v5579_v13 = vld [vmem:[#allocation5 + $0x48] sm:$0xff]   ;;  %v5580_v20 = vld [vmem:[#allocation5 + $0x50] sm:$0xff]  }
 0x4cc   : > { %v1274_v2 = vpop.xlane.xlu0 %1273  ;;  %5152 = vmatprep.subr.bf16.mxu0 %v5578_v59 }
 0x4cd   : > { %v1295_v7 = vmul.f32 0.0078125, %v1274_v2  ;;  %1347 = vadd.xlane.f32.xlu1 %v1324_v42  ;;  %v1325_v45 = vmul.f32 %v6519_v23, %v6519_v23  ;;  %v6524_v3 = vsub.f32 %v6446_v63, %v1294_v62  ;;  %5131 = vmatpush3.bf16.msra.mxu1 %v5575_v51  ;;  %v5581_v62 = vld [vmem:[#allocation5 + $0x58] sm:$0xff]   ;;  %v5582_v42 = vld [vmem:[#allocation5 + $0x60] sm:$0xff]   ;;  %v5583_v2 = vld [vmem:[#allocation5 + $0x68] sm:$0xff]  }
 0x4ce   : > { %v1276_v48 = vpop.xlane.xlu1 %1275  ;;  %5132 = vmatprep.subr.bf16.mxu1 %v5576_v37  ;;  %5153 = vmatpush3.bf16.msra.mxu0 %v5578_v59 }
 0x4cf   : > { %v1296_v5 = vmul.f32 0.0078125, %v1276_v48  ;;  %1349 = vadd.xlane.f32.xlu0 %v1325_v45  ;;  %v1326_v49 = vmul.f32 %v6524_v3, %v6524_v3  ;;  %v6529_v11 = vsub.f32 %v6450_v27, %v1295_v7  ;;  %5154 = vmatprep.subr.bf16.mxu0 %v5579_v13 }
 0x4d0   : > { %v1278_v29 = vpop.xlane.xlu0 %1277 }
 0x4d1   : > { %v1297_v53 = vmul.f32 0.0078125, %v1278_v29  ;;  %1351 = vadd.xlane.f32.xlu1 %v1326_v49  ;;  %v1327_v18 = vmul.f32 %v6529_v11, %v6529_v11  ;;  %v6534_v56 = vsub.f32 %v6456_v4, %v1296_v5  ;;  %5133 = vmatpush3.bf16.msra.mxu1 %v5576_v37 }
 0x4d2   : > { %v1280_v14 = vpop.xlane.xlu1 %1279  ;;  %5134 = vmatprep.subr.bf16.mxu1 %v5577_v40  ;;  %5155 = vmatpush3.bf16.msra.mxu0 %v5579_v13 }
 0x4d3   : > { %v1298_v57 = vmul.f32 0.0078125, %v1280_v14  ;;  %1353 = vadd.xlane.f32.xlu0 %v1327_v18  ;;  %v1328_v17 = vmul.f32 %v6534_v56, %v6534_v56  ;;  %v6539_v58 = vsub.f32 %v6462_v10, %v1297_v53  ;;  %5156 = vmatprep.subr.bf16.mxu0 %v5580_v20 }
 0x4d4   : > { %v1282_v22 = vpop.xlane.xlu0 %1281 }
 0x4d5   : > { %v1299_v24 = vmul.f32 0.0078125, %v1282_v22  ;;  %1355 = vadd.xlane.f32.xlu1 %v1328_v17  ;;  %v1329_v44 = vmul.f32 %v6539_v58, %v6539_v58  ;;  %v6544_v52 = vsub.f32 %v6466_v6, %v1298_v57  ;;  %5135 = vmatpush3.bf16.msra.mxu1 %v5577_v40 }
 0x4d6   : > { %v1284_v31 = vpop.xlane.xlu1 %1283  ;;  %5157 = vmatpush3.bf16.msra.mxu0 %v5580_v20 }
 0x4d7   : > { %v1300_v34 = vmul.f32 0.0078125, %v1284_v31  ;;  %1357 = vadd.xlane.f32.xlu0 %v1329_v44  ;;  %v1330_v38 = vmul.f32 %v6544_v52, %v6544_v52  ;;  %v6549_v39 = vsub.f32 %v6470_v50, %v1299_v24  ;;  %5158 = vmatprep.subr.bf16.mxu0 %v5581_v62 }
 0x4d9   : > { %1359 = vadd.xlane.f32.xlu1 %v1330_v38  ;;  %v1331_v15 = vmul.f32 %v6549_v39, %v6549_v39  ;;  %v6554_v43 = vsub.f32 %v6474_v8, %v1300_v34 }
 0x4da   : > { %5159 = vmatpush3.bf16.msra.mxu0 %v5581_v62 }
 0x4db   : > { %1361 = vadd.xlane.f32.xlu0 %v1331_v15  ;;  %v1332_v1 = vmul.f32 %v6554_v43, %v6554_v43  ;;  %5160 = vmatprep.subr.bf16.mxu0 %v5582_v42 }
 0x4dd   : > { %1363 = vadd.xlane.f32.xlu1 %v1332_v1  ;;  %v6561_v1 = vld [vmem:[%s7687_s3 + $0x1] ss:$0 sm:$0xff] }
 0x4de   : > { %5161 = vmatpush3.bf16.msra.mxu0 %v5582_v42 }
 0x4df   : > { %5162 = vmatprep.subr.bf16.mxu0 %v5583_v2 }
 0x4e2   : > { %5163 = vmatpush3.bf16.msra.mxu0 %v5583_v2 }
 0x54c   : > { %v1334_v7 = vpop.xlane.xlu0 %1333 }
 0x54d   : > { %v1365_v45 = vmul.f32 0.0078125, %v1334_v7 }
 0x54e   : > { %v1336_v48 = vpop.xlane.xlu1 %1335 }
 0x54f   : > { %v1381_v54 = vadd.f32 1e-05, %v1365_v45  ;;  %v1366_v5 = vmul.f32 0.0078125, %v1336_v48 }
 0x550   : > { %v1338_v49 = vpop.xlane.xlu0 %1337 }
 0x551   : > { %5690 = vrsqrt.f32 %v1381_v54  ;;  %v1382_v29 = vadd.f32 1e-05, %v1366_v5  ;;  %v1367_v53 = vmul.f32 0.0078125, %v1338_v49  ;;  %v6569_v5 = vld [vmem:[%s7688_s4 + $0x1] ss:$0 sm:$0xff] }
 0x552   : > { %v1340_v18 = vpop.xlane.xlu1 %1339 }
 0x553   : > { %5692 = vrsqrt.f32 %v1382_v29  ;;  %v1383_v14 = vadd.f32 1e-05, %v1367_v53  ;;  %v1368_v35 = vmul.f32 0.0078125, %v1340_v18 }
 0x554   : > { %v1342_v57 = vpop.xlane.xlu0 %1341 }
 0x555   : > { %5694 = vrsqrt.f32 %v1383_v14  ;;  %v1384_v17 = vadd.f32 1e-05, %v1368_v35  ;;  %v1369_v22 = vmul.f32 0.0078125, %v1342_v57 }
 0x556   : > { %v1344_v24 = vpop.xlane.xlu1 %1343 }
 0x557   : > { %5696 = vrsqrt.f32 %v1384_v17  ;;  %v1385_v44 = vadd.f32 1e-05, %v1369_v22  ;;  %v1370_v31 = vmul.f32 0.0078125, %v1344_v24 }
 0x558   : > { %v1346_v30 = vpop.xlane.xlu0 %1345 }
 0x559   : > { %5698 = vrsqrt.f32 %v1385_v44  ;;  %v1386_v34 = vadd.f32 1e-05, %v1370_v31  ;;  %v1371_v38 = vmul.f32 0.0078125, %v1346_v30 }
 0x55a   : > { %v1348_v15 = vpop.xlane.xlu1 %1347 }
 0x55b   : > { %v5691_v33 = vpop.eup %5690  ;;  %5700 = vrsqrt.f32 %v1386_v34  ;;  %v1387_v51 = vadd.f32 1e-05, %v1371_v38  ;;  %v1372_v37 = vmul.f32 0.0078125, %v1348_v15 }
 0x55c   : > { %v1350_v40 = vpop.xlane.xlu0 %1349  ;;  %v1413_v59 = vmul.f32 %v5691_v33, %v6479_v16 }
 0x55d   : > { %v5693_v13 = vpop.eup %5692  ;;  %5702 = vrsqrt.f32 %v1387_v51  ;;  %v1388_v20 = vadd.f32 1e-05, %v1372_v37  ;;  %v1373_v62 = vmul.f32 0.0078125, %v1350_v40 }
 0x55e   : > { %v1352_v42 = vpop.xlane.xlu1 %1351  ;;  %v1414_v2 = vmul.f32 %v5693_v13, %v6484_v19  ;;  %v1435_v7 = vmul.f32 %v6561_v1, %v1413_v59 }
 0x55f   : > { %v5695_v45 = vpop.eup %5694  ;;  %5704 = vrsqrt.f32 %v1388_v20  ;;  %v1389_v48 = vadd.f32 1e-05, %v1373_v62  ;;  %v1374_v54 = vmul.f32 0.0078125, %v1352_v42 }
 0x560   : > { %v1415_v16 = vmul.f32 %v5695_v45, %v6489_v26  ;;  %v1354_v49 = vpop.xlane.xlu0 %1353  ;;  %v1436_v29 = vmul.f32 %v6561_v1, %v1414_v2  ;;  %v1457_v17 = vadd.f32 %v6569_v5, %v1435_v7 }
 0x561   : > { %v5697_v53 = vpop.eup %5696  ;;  %5706 = vrsqrt.f32 %v1389_v48  ;;  %v1390_v18 = vadd.f32 1e-05, %v1374_v54  ;;  %v1375_v19 = vmul.f32 0.0078125, %v1354_v49 }
 0x562   : > { %v1437_v14 = vmul.f32 %v6561_v1, %v1415_v16  ;;  %v1416_v35 = vmul.f32 %v5697_v53, %v6494_v32  ;;  %v1356_v57 = vpop.xlane.xlu1 %1355  ;;  %v1458_v22 = vadd.f32 %v6569_v5, %v1436_v29 }
 0x563   : > { %v5699_v24 = vpop.eup %5698  ;;  %5708 = vrsqrt.f32 %v1390_v18  ;;  %v1391_v44 = vadd.f32 1e-05, %v1375_v19  ;;  %v1376_v26 = vmul.f32 0.0078125, %v1356_v57 }
 0x564   : > { %v1438_v31 = vmul.f32 %v6561_v1, %v1416_v35  ;;  %v1358_v30 = vpop.xlane.xlu0 %1357  ;;  %v1473_v34 = vpack.c.bf16 %v1458_v22, %v1457_v17  ;;  %v1417_v38 = vmul.f32 %v5699_v24, %v6499_v28  ;;  %v1459_v37 = vadd.f32 %v6569_v5, %v1437_v14 }
 0x565   : > { %v5701_v15 = vpop.eup %5700  ;;  %5710 = vrsqrt.f32 %v1391_v44  ;;  %v1392_v33 = vadd.f32 1e-05, %v1376_v26  ;;  %v1377_v51 = vmul.f32 0.0078125, %v1358_v30 }
 0x566   : > { %v1360_v32 = vpop.xlane.xlu1 %1359  ;;  %5136 = vmatprep.mubr.bf16.mxu1 %v1473_v34  ;;  %v1460_v40 = vadd.f32 %v6569_v5, %v1438_v31  ;;  %v1418_v59 = vmul.f32 %v5701_v15, %v6504_v46  ;;  %v1439_v13 = vmul.f32 %v6561_v1, %v1417_v38 }
 0x567   : > { %v5703_v20 = vpop.eup %5702  ;;  %5712 = vrsqrt.f32 %v1392_v33  ;;  %v1393_v62 = vadd.f32 1e-05, %v1377_v51  ;;  %v1378_v42 = vmul.f32 0.0078125, %v1360_v32 }
 0x568   : > { %v1362_v2 = vpop.xlane.xlu0 %1361  ;;  %v1474_v28 = vpack.c.bf16 %v1460_v40, %v1459_v37  ;;  %v1440_v7 = vmul.f32 %v6561_v1, %v1418_v59  ;;  %v1419_v45 = vmul.f32 %v5703_v20, %v6509_v55  ;;  %v1461_v46 = vadd.f32 %v6569_v5, %v1439_v13 }
 0x569   : > { %v5705_v48 = vpop.eup %5704  ;;  %5714 = vrsqrt.f32 %v1393_v62  ;;  %v1394_v54 = vadd.f32 1e-05, %v1378_v42  ;;  %v1379_v16 = vmul.f32 0.0078125, %v1362_v2 }
 0x56a   : > { %v1364_v49 = vpop.xlane.xlu1 %1363  ;;  %5137 = vmatmul.mubr.bf16.vlgmr.msra.gmra.mrb[16].mxu1 %v1474_v28  ;;  %v1462_v29 = vadd.f32 %v6569_v5, %v1440_v7  ;;  %v1420_v53 = vmul.f32 %v5705_v48, %v6514_v41  ;;  %v1441_v18 = vmul.f32 %v6561_v1, %v1419_v45 }
 0x56b   : > { %v5707_v19 = vpop.eup %5706  ;;  %5716 = vrsqrt.f32 %v1394_v54  ;;  %v1395_v14 = vadd.f32 1e-05, %v1379_v16  ;;  %v1380_v35 = vmul.f32 0.0078125, %v1364_v49 }
 0x56c   : > { %v1475_v57 = vpack.c.bf16 %v1462_v29, %v1461_v46  ;;  %v1442_v55 = vmul.f32 %v6561_v1, %v1420_v53  ;;  %v1421_v17 = vmul.f32 %v5707_v19, %v6519_v23  ;;  %v1463_v44 = vadd.f32 %v6569_v5, %v1441_v18  ;;  %v5585_v19 = vld [vmem:[#allocation5 + $0x78] sm:$0xff]  }
 0x56d   : > { %v5709_v22 = vpop.eup %5708  ;;  %5718 = vrsqrt.f32 %v1395_v14  ;;  %v1396_v24 = vadd.f32 1e-05, %v1380_v35 }
 0x56e   : > { %5140 = vmatprep.mubr.bf16.mxu1 %v1475_v57  ;;  %v1464_v26 = vadd.f32 %v6569_v5, %v1442_v55  ;;  %v1422_v41 = vmul.f32 %v5709_v22, %v6524_v3  ;;  %v1443_v31 = vmul.f32 %v6561_v1, %v1421_v17 }
 0x56f   : > { %v5711_v30 = vpop.eup %5710  ;;  %5720 = vrsqrt.f32 %v1396_v24 }
 0x570   : > { %v1476_v34 = vpack.c.bf16 %v1464_v26, %v1463_v44  ;;  %v1444_v38 = vmul.f32 %v6561_v1, %v1422_v41  ;;  %v1423_v15 = vmul.f32 %v5711_v30, %v6529_v11  ;;  %v1465_v33 = vadd.f32 %v6569_v5, %v1443_v31 }
 0x571   : > { %v5713_v23 = vpop.eup %5712 }
 0x572   : > { %5141 = vmatmul.mubr.bf16.gmra.mrb[20].mxu1 %v1476_v34  ;;  %v1466_v51 = vadd.f32 %v6569_v5, %v1444_v38  ;;  %v1424_v32 = vmul.f32 %v5713_v23, %v6534_v56  ;;  %v1445_v37 = vmul.f32 %v6561_v1, %v1423_v15 }
 0x573   : > { %v5715_v3 = vpop.eup %5714 }
 0x574   : > { %v1477_v40 = vpack.c.bf16 %v1466_v51, %v1465_v33  ;;  %v1446_v59 = vmul.f32 %v6561_v1, %v1424_v32  ;;  %v1425_v13 = vmul.f32 %v5715_v3, %v6539_v58  ;;  %v1467_v11 = vadd.f32 %v6569_v5, %v1445_v37 }
 0x575   : > { %v5717_v20 = vpop.eup %5716 }
 0x576   : > { %5144 = vmatprep.mubr.bf16.mxu1 %v1477_v40  ;;  %v1468_v62 = vadd.f32 %v6569_v5, %v1446_v59  ;;  %v1426_v42 = vmul.f32 %v5717_v20, %v6544_v52  ;;  %v1447_v2 = vmul.f32 %v6561_v1, %v1425_v13 }
 0x577   : > { %v5719_v28 = vpop.eup %5718 }
 0x578   : > { %v1478_v56 = vpack.c.bf16 %v1468_v62, %v1467_v11  ;;  %v1448_v7 = vmul.f32 %v6561_v1, %v1426_v42  ;;  %v1427_v45 = vmul.f32 %v5719_v28, %v6549_v39  ;;  %v1469_v58 = vadd.f32 %v6569_v5, %v1447_v2  ;;  %v5584_v39 = vld [vmem:[#allocation5 + $0x70] sm:$0xff]  }
 0x579   : > { %v5721_v48 = vpop.eup %5720  ;;  %5164 = vmatprep.subr.bf16.mxu0 %v5584_v39 }
 0x57a   : > { %5145 = vmatmul.mubr.bf16.gmra.mrb[24].mxu1 %v1478_v56  ;;  %v1470_v54 = vadd.f32 %v6569_v5, %v1448_v7  ;;  %v1428_v16 = vmul.f32 %v5721_v48, %v6554_v43  ;;  %v1449_v49 = vmul.f32 %v6561_v1, %v1427_v45  ;;  %5165 = vmatpush3.bf16.msra.mxu0 %v5584_v39  ;;  %v4689_v43 = vld [vmem:[%s7690_s6 + $0x1] ss:$0 sm:$0xff] }
 0x57b   : > { %5166 = vmatprep.subr.bf16.mxu0 %v5585_v19 }
 0x57c   : > { %v1479_v46 = vpack.c.bf16 %v1470_v54, %v1469_v58  ;;  %v1450_v52 = vmul.f32 %v6561_v1, %v1428_v16  ;;  %v1471_v29 = vadd.f32 %v6569_v5, %v1449_v49 }
 0x57e   : > { %5148 = vmatprep.mubr.bf16.mxu1 %v1479_v46  ;;  %v1472_v53 = vadd.f32 %v6569_v5, %v1450_v52  ;;  %5167 = vmatpush3.bf16.msra.mxu0 %v5585_v19 }
 0x580   : > { %v1480_v18 = vpack.c.bf16 %v1472_v53, %v1471_v29 }
 0x582   : > { %5149 = vmatmul.mubr.bf16.gmra.mrb[28].mxu1 %v1480_v18 }
 0x63d   : > { %v5138_v14 = vpop.f32.mrb[16].mxu1 }
 0x63e   : > { %v1578_v35 = vadd.f32 %v5138_v14, %v4689_v43  ;;  %v1569_v1 = vpop.f32.mrb[17].mxu1 }
 0x63f   : > { %v1570_v57 = vadd.f32 %v4689_v43, %v1569_v1  ;;  %v5139_v55 = vpop.f32.mrb[18].mxu1 }
 0x640   : > { %v1581_v17 = vadd.f32 %v5139_v55, %v4689_v43  ;;  %v1572_v22 = vpop.f32.mrb[19].mxu1  ;;  %v1634_v24 = vmax.f32 %v1578_v35, 0.0 }
 0x641   : > { %v1573_v5 = vadd.f32 %v4689_v43, %v1572_v22  ;;  %v1632_v26 = vmax.f32 %v1570_v57, 0.0 }
 0x642   : > { %v1635_v44 = vmax.f32 %v1581_v17, 0.0 }
 0x643   : > { %v1633_v41 = vmax.f32 %v1573_v5, 0.0 }
 0x644   : > { %v1649_v31 = vpack.c.bf16 %v1635_v44, %v1634_v24  ;;  %v6622_v44 = vld [vmem:[%s7692_s8 + $0x1] ss:$0 sm:$0xff] }
 0x645   : > { %v1648_v30 = vpack.c.bf16 %v1633_v41, %v1632_v26  ;;  %v5142_v34 = vpop.f32.mrb[20].mxu1 }
 0x646   : > { %v1594_v38 = vadd.f32 %v5142_v34, %v4689_v43  ;;  %v1585_v15 = vpop.f32.mrb[21].mxu1 }
 0x647   : > { %v1586_v23 = vadd.f32 %v4689_v43, %v1585_v15  ;;  %v5143_v33 = vpop.f32.mrb[22].mxu1  ;;  %5168 = vmatprep.mubr.bf16.mxu0 %v1648_v30 }
 0x648   : > { %v1597_v51 = vadd.f32 %v5143_v33, %v4689_v43  ;;  %v1588_v32 = vpop.f32.mrb[23].mxu1  ;;  %5169 = vmatmul.mubr.bf16.vlgmr.msra.gmra.mrb[32].mxu0 %v1649_v31  ;;  %v1638_v3 = vmax.f32 %v1594_v38, 0.0 }
 0x649   : > { %v1589_v37 = vadd.f32 %v4689_v43, %v1588_v32  ;;  %v1636_v59 = vmax.f32 %v1586_v23, 0.0 }
 0x64a   : > { %v1639_v40 = vmax.f32 %v1597_v51, 0.0 }
 0x64b   : > { %v1637_v13 = vmax.f32 %v1589_v37, 0.0 }
 0x64c   : > { %v1651_v20 = vpack.c.bf16 %v1639_v40, %v1638_v3 }
 0x64d   : > { %v1650_v11 = vpack.c.bf16 %v1637_v13, %v1636_v59  ;;  %v5146_v62 = vpop.f32.mrb[24].mxu1 }
 0x64e   : > { %v1610_v42 = vadd.f32 %v5146_v62, %v4689_v43  ;;  %v1601_v2 = vpop.f32.mrb[25].mxu1 }
 0x64f   : > { %v1602_v28 = vadd.f32 %v4689_v43, %v1601_v2  ;;  %v5147_v56 = vpop.f32.mrb[26].mxu1  ;;  %5172 = vmatprep.mubr.bf16.mxu0 %v1650_v11 }
 0x650   : > { %v1613_v7 = vadd.f32 %v5147_v56, %v4689_v43  ;;  %v1604_v45 = vpop.f32.mrb[27].mxu1  ;;  %5173 = vmatmul.mubr.bf16.gmra.mrb[36].mxu0 %v1651_v20  ;;  %v1642_v58 = vmax.f32 %v1610_v42, 0.0 }
 0x651   : > { %v1605_v48 = vadd.f32 %v4689_v43, %v1604_v45  ;;  %v1640_v16 = vmax.f32 %v1602_v28, 0.0 }
 0x652   : > { %v1643_v54 = vmax.f32 %v1613_v7, 0.0 }
 0x653   : > { %v1641_v49 = vmax.f32 %v1605_v48, 0.0 }
 0x654   : > { %v1653_v46 = vpack.c.bf16 %v1643_v54, %v1642_v58 }
 0x655   : > { %v1652_v52 = vpack.c.bf16 %v1641_v49, %v1640_v16  ;;  %v5150_v29 = vpop.f32.mrb[28].mxu1 }
 0x656   : > { %v1626_v53 = vadd.f32 %v5150_v29, %v4689_v43  ;;  %v1617_v18 = vpop.f32.mrb[29].mxu1 }
 0x657   : > { %v1618_v39 = vadd.f32 %v4689_v43, %v1617_v18  ;;  %v5151_v19 = vpop.f32.mrb[30].mxu1  ;;  %5176 = vmatprep.mubr.bf16.mxu0 %v1652_v52 }
 0x658   : > { %v1629_v14 = vadd.f32 %v5151_v19, %v4689_v43  ;;  %v1620_v35 = vpop.f32.mrb[31].mxu1  ;;  %5177 = vmatmul.mubr.bf16.gmra.mrb[40].mxu0 %v1653_v46  ;;  %v1646_v57 = vmax.f32 %v1626_v53, 0.0 }
 0x659   : > { %v1621_v1 = vadd.f32 %v4689_v43, %v1620_v35  ;;  %v1644_v17 = vmax.f32 %v1618_v39, 0.0 }
 0x65a   : > { %v1647_v55 = vmax.f32 %v1629_v14, 0.0 }
 0x65b   : > { %v1645_v22 = vmax.f32 %v1621_v1, 0.0 }
 0x65c   : > { %v1655_v5 = vpack.c.bf16 %v1647_v55, %v1646_v57 }
 0x65d   : > { %v1654_v24 = vpack.c.bf16 %v1645_v22, %v1644_v17 }
 0x65f   : > { %5180 = vmatprep.mubr.bf16.mxu0 %v1654_v24 }
 0x660   : > { %5181 = vmatmul.mubr.bf16.gmra.mrb[44].mxu0 %v1655_v5 }
 0x71b   : > { %v5170_v26 = vpop.f32.mrb[32].mxu0 }
 0x71c   : > { %v1744_v41 = vpop.f32.mrb[33].mxu0  ;;  %v1753_v31 = vadd.f32 %v5170_v26, %v6622_v44 }
 0x71d   : > { %v1745_v30 = vadd.f32 %v6622_v44, %v1744_v41  ;;  %v5171_v43 = vpop.f32.mrb[34].mxu0 }
 0x71e   : > { %v1747_v34 = vpop.f32.mrb[35].mxu0  ;;  %v1756_v15 = vadd.f32 %v5171_v43, %v6622_v44  ;;  %v1809_v33 = vmax.f32 %v1753_v31, 0.0 }
 0x71f   : > { %v1807_v38 = vmax.f32 %v1745_v30, 0.0  ;;  %v1748_v23 = vadd.f32 %v6622_v44, %v1747_v34 }
 0x720   : > { %v1810_v37 = vmax.f32 %v1756_v15, 0.0  ;;  %v6636_v13 = vadd.f32 %v1809_v33, %v6410_v12 }
 0x721   : > { %v6629_v51 = vadd.f32 %v1807_v38, %v6403_v21  ;;  %v1808_v32 = vmax.f32 %v1748_v23, 0.0 }
 0x722   : > { %v6642_v42 = vadd.f32 %v1810_v37, %v6416_v36 }
 0x723   : > { %v6632_v3 = vadd.f32 %v1808_v32, %v6406_v25  ;;  %1881 = vadd.xlane.f32.xlu0 %v6629_v51  ;;  %v5174_v40 = vpop.f32.mrb[36].mxu0 }
 0x724   : > { %v1760_v59 = vpop.f32.mrb[37].mxu0  ;;  %v1769_v20 = vadd.f32 %v5174_v40, %v6622_v44 }
 0x725   : > { %v1761_v11 = vadd.f32 %v6622_v44, %v1760_v59  ;;  %1883 = vadd.xlane.f32.xlu1 %v6632_v3  ;;  %v5175_v21 = vpop.f32.mrb[38].mxu0 }
 0x726   : > { %v1763_v62 = vpop.f32.mrb[39].mxu0  ;;  %v1772_v2 = vadd.f32 %v5175_v21, %v6622_v44  ;;  %v1813_v12 = vmax.f32 %v1769_v20, 0.0 }
 0x727   : > { %v1811_v25 = vmax.f32 %v1761_v11, 0.0  ;;  %v1764_v28 = vadd.f32 %v6622_v44, %v1763_v62  ;;  %1885 = vadd.xlane.f32.xlu0 %v6636_v13 }
 0x728   : > { %v1814_v45 = vmax.f32 %v1772_v2, 0.0  ;;  %v6656_v54 = vadd.f32 %v1813_v12, %v6430_v47 }
 0x729   : > { %v6648_v56 = vadd.f32 %v1811_v25, %v6422_v61  ;;  %v1812_v7 = vmax.f32 %v1764_v28, 0.0  ;;  %1887 = vadd.xlane.f32.xlu1 %v6642_v42 }
 0x72a   : > { %v6662_v52 = vadd.f32 %v1814_v45, %v6436_v9 }
 0x72b   : > { %v6652_v48 = vadd.f32 %v1812_v7, %v6426_v0  ;;  %1889 = vadd.xlane.f32.xlu0 %v6648_v56  ;;  %v5178_v36 = vpop.f32.mrb[40].mxu0 }
 0x72c   : > { %v1776_v58 = vpop.f32.mrb[41].mxu0  ;;  %v1785_v16 = vadd.f32 %v5178_v36, %v6622_v44 }
 0x72d   : > { %v1777_v49 = vadd.f32 %v6622_v44, %v1776_v58  ;;  %1891 = vadd.xlane.f32.xlu1 %v6652_v48  ;;  %v5179_v61 = vpop.f32.mrb[42].mxu0 }
 0x72e   : > { %v1779_v46 = vpop.f32.mrb[43].mxu0  ;;  %v1788_v29 = vadd.f32 %v5179_v61, %v6622_v44  ;;  %v1817_v47 = vmax.f32 %v1785_v16, 0.0 }
 0x72f   : > { %v1815_v0 = vmax.f32 %v1777_v49, 0.0  ;;  %v1780_v53 = vadd.f32 %v6622_v44, %v1779_v46  ;;  %1893 = vadd.xlane.f32.xlu0 %v6656_v54 }
 0x730   : > { %v1818_v19 = vmax.f32 %v1788_v29, 0.0  ;;  %v6676_v1 = vadd.f32 %v1817_v47, %v6450_v27 }
 0x731   : > { %v6668_v18 = vadd.f32 %v1815_v0, %v6442_v60  ;;  %v1816_v39 = vmax.f32 %v1780_v53, 0.0  ;;  %1895 = vadd.xlane.f32.xlu1 %v6662_v52 }
 0x732   : > { %v6682_v22 = vadd.f32 %v1818_v19, %v6456_v4 }
 0x733   : > { %v6672_v14 = vadd.f32 %v1816_v39, %v6446_v63  ;;  %1897 = vadd.xlane.f32.xlu0 %v6668_v18  ;;  %v5182_v9 = vpop.f32.mrb[44].mxu0 }
 0x734   : > { %v1792_v35 = vpop.f32.mrb[45].mxu0  ;;  %v1801_v57 = vadd.f32 %v5182_v9, %v6622_v44 }
 0x735   : > { %v1793_v55 = vadd.f32 %v6622_v44, %v1792_v35  ;;  %1899 = vadd.xlane.f32.xlu1 %v6672_v14  ;;  %v5183_v60 = vpop.f32.mrb[46].mxu0 }
 0x736   : > { %v1795_v17 = vpop.f32.mrb[47].mxu0  ;;  %v1804_v5 = vadd.f32 %v5183_v60, %v6622_v44  ;;  %v1821_v27 = vmax.f32 %v1801_v57, 0.0 }
 0x737   : > { %v1819_v63 = vmax.f32 %v1793_v55, 0.0  ;;  %v1796_v24 = vadd.f32 %v6622_v44, %v1795_v17  ;;  %1901 = vadd.xlane.f32.xlu0 %v6676_v1 }
 0x738   : > { %v1822_v31 = vmax.f32 %v1804_v5, 0.0  ;;  %v6696_v4 = vadd.f32 %v1821_v27, %v6470_v50  ;;  %v5587_v5 = vld [vmem:[#allocation2 + $0x88] sm:$0xff]  }
 0x739   : > { %v6688_v26 = vadd.f32 %v1819_v63, %v6462_v10  ;;  %v1820_v41 = vmax.f32 %v1796_v24, 0.0  ;;  %1903 = vadd.xlane.f32.xlu1 %v6682_v22  ;;  %v5586_v10 = vld [vmem:[#allocation2 + $0x80] sm:$0xff]  }
 0x73a   : > { %v6700_v44 = vadd.f32 %v1822_v31, %v6474_v8  ;;  %5184 = vmatprep.subr.bf16.mxu1 %v5586_v10 }
 0x73b   : > { %v6692_v30 = vadd.f32 %v1820_v41, %v6466_v6  ;;  %1905 = vadd.xlane.f32.xlu0 %v6688_v26  ;;  %5185 = vmatpush3.bf16.msra.mxu1 %v5586_v10 }
 0x73c   : > { %5186 = vmatprep.subr.bf16.mxu1 %v5587_v5 }
 0x73d   : > { %1907 = vadd.xlane.f32.xlu1 %v6692_v30 }
 0x73f   : > { %1909 = vadd.xlane.f32.xlu0 %v6696_v4  ;;  %5187 = vmatpush3.bf16.msra.mxu1 %v5587_v5 }
 0x741   : > { %1911 = vadd.xlane.f32.xlu1 %v6700_v44 }
 0x7b0   : > { %v1882_v43 = vpop.xlane.xlu0 %1881 }
 0x7b1   : > { %v1913_v6 = vmul.f32 0.0078125, %v1882_v43 }
 0x7b2   : > { %v1884_v34 = vpop.xlane.xlu1 %1883 }
 0x7b3   : > { %v1914_v38 = vmul.f32 0.0078125, %v1884_v34  ;;  %v6705_v15 = vsub.f32 %v6629_v51, %v1913_v6 }
 0x7b4   : > { %v1886_v50 = vpop.xlane.xlu0 %1885 }
 0x7b5   : > { %v1915_v23 = vmul.f32 0.0078125, %v1886_v50  ;;  %v1945_v8 = vmul.f32 %v6705_v15, %v6705_v15  ;;  %v6710_v33 = vsub.f32 %v6632_v3, %v1914_v38  ;;  %v5588_v38 = vld [vmem:[#allocation2 + $0x90] sm:$0xff]  }
 0x7b6   : > { %v1888_v32 = vpop.xlane.xlu1 %1887  ;;  %5188 = vmatprep.subr.bf16.mxu1 %v5588_v38 }
 0x7b7   : > { %v1916_v37 = vmul.f32 0.0078125, %v1888_v32  ;;  %1961 = vadd.xlane.f32.xlu0 %v1945_v8  ;;  %v1946_v40 = vmul.f32 %v6710_v33, %v6710_v33  ;;  %v6715_v59 = vsub.f32 %v6636_v13, %v1915_v23  ;;  %5189 = vmatpush3.bf16.msra.mxu1 %v5588_v38 }
 0x7b8   : > { %v1890_v20 = vpop.xlane.xlu0 %1889 }
 0x7b9   : > { %v1917_v11 = vmul.f32 0.0078125, %v1890_v20  ;;  %1963 = vadd.xlane.f32.xlu1 %v1946_v40  ;;  %v1947_v21 = vmul.f32 %v6715_v59, %v6715_v59  ;;  %v6720_v62 = vsub.f32 %v6642_v42, %v1916_v37 }
 0x7ba   : > { %v1892_v25 = vpop.xlane.xlu1 %1891 }
 0x7bb   : > { %v1918_v2 = vmul.f32 0.0078125, %v1892_v25  ;;  %1965 = vadd.xlane.f32.xlu0 %v1947_v21  ;;  %v1948_v28 = vmul.f32 %v6720_v62, %v6720_v62  ;;  %v6725_v12 = vsub.f32 %v6648_v56, %v1917_v11  ;;  %v5589_v21 = vld [vmem:[#allocation2 + $0x98] sm:$0xff]  }
 0x7bc   : > { %v1894_v7 = vpop.xlane.xlu0 %1893  ;;  %5190 = vmatprep.subr.bf16.mxu1 %v5589_v21 }
 0x7bd   : > { %v1919_v45 = vmul.f32 0.0078125, %v1894_v7  ;;  %1967 = vadd.xlane.f32.xlu1 %v1948_v28  ;;  %v1949_v36 = vmul.f32 %v6725_v12, %v6725_v12  ;;  %v6730_v58 = vsub.f32 %v6652_v48, %v1918_v2  ;;  %5191 = vmatpush3.bf16.msra.mxu1 %v5589_v21 }
 0x7be   : > { %v1896_v16 = vpop.xlane.xlu1 %1895 }
 0x7bf   : > { %v1920_v49 = vmul.f32 0.0078125, %v1896_v16  ;;  %1969 = vadd.xlane.f32.xlu0 %v1949_v36  ;;  %v1950_v61 = vmul.f32 %v6730_v58, %v6730_v58  ;;  %v6735_v46 = vsub.f32 %v6656_v54, %v1919_v45  ;;  %v5590_v36 = vld [vmem:[#allocation2 + $0xa0] sm:$0xff]  }
 0x7c0   : > { %v1898_v0 = vpop.xlane.xlu0 %1897  ;;  %5192 = vmatprep.subr.bf16.mxu1 %v5590_v36 }
 0x7c1   : > { %v1921_v29 = vmul.f32 0.0078125, %v1898_v0  ;;  %1971 = vadd.xlane.f32.xlu1 %v1950_v61  ;;  %v1951_v53 = vmul.f32 %v6735_v46, %v6735_v46  ;;  %v6740_v47 = vsub.f32 %v6662_v52, %v1920_v49  ;;  %5193 = vmatpush3.bf16.msra.mxu1 %v5590_v36  ;;  %v5591_v49 = vld [vmem:[#allocation2 + $0xa8] sm:$0xff]   ;;  %v5592_v61 = vld [vmem:[#allocation2 + $0xb0] sm:$0xff]   ;;  %v5593_v0 = vld [vmem:[#allocation2 + $0xb8] sm:$0xff]  }
 0x7c2   : > { %v1900_v39 = vpop.xlane.xlu1 %1899  ;;  %5194 = vmatprep.subr.bf16.mxu1 %v5591_v49 }
 0x7c3   : > { %v1922_v19 = vmul.f32 0.0078125, %v1900_v39  ;;  %1973 = vadd.xlane.f32.xlu0 %v1951_v53  ;;  %v1952_v9 = vmul.f32 %v6740_v47, %v6740_v47  ;;  %v6745_v35 = vsub.f32 %v6668_v18, %v1921_v29  ;;  %v5594_v29 = vld [vmem:[#allocation5 + $0x80] sm:$0xff]   ;;  %v5595_v53 = vld [vmem:[#allocation5 + $0x88] sm:$0xff]   ;;  %v5596_v39 = vld [vmem:[#allocation5 + $0x90] sm:$0xff]  }
 0x7c4   : > { %v1902_v57 = vpop.xlane.xlu0 %1901  ;;  %5216 = vmatprep.subr.bf16.mxu0 %v5594_v29 }
 0x7c5   : > { %v1923_v55 = vmul.f32 0.0078125, %v1902_v57  ;;  %1975 = vadd.xlane.f32.xlu1 %v1952_v9  ;;  %v1953_v60 = vmul.f32 %v6745_v35, %v6745_v35  ;;  %v6750_v17 = vsub.f32 %v6672_v14, %v1922_v19  ;;  %5195 = vmatpush3.bf16.msra.mxu1 %v5591_v49  ;;  %v5597_v19 = vld [vmem:[#allocation5 + $0x98] sm:$0xff]   ;;  %v5598_v9 = vld [vmem:[#allocation5 + $0xa0] sm:$0xff]   ;;  %v5599_v57 = vld [vmem:[#allocation5 + $0xa8] sm:$0xff]  }
 0x7c6   : > { %v1904_v63 = vpop.xlane.xlu1 %1903  ;;  %5196 = vmatprep.subr.bf16.mxu1 %v5592_v61  ;;  %5217 = vmatpush3.bf16.msra.mxu0 %v5594_v29 }
 0x7c7   : > { %v1924_v24 = vmul.f32 0.0078125, %v1904_v63  ;;  %1977 = vadd.xlane.f32.xlu0 %v1953_v60  ;;  %v1954_v27 = vmul.f32 %v6750_v17, %v6750_v17  ;;  %v6755_v41 = vsub.f32 %v6676_v1, %v1923_v55  ;;  %5218 = vmatprep.subr.bf16.mxu0 %v5595_v53 }
 0x7c8   : > { %v1906_v31 = vpop.xlane.xlu0 %1905 }
 0x7c9   : > { %v1925_v10 = vmul.f32 0.0078125, %v1906_v31  ;;  %1979 = vadd.xlane.f32.xlu1 %v1954_v27  ;;  %v1955_v43 = vmul.f32 %v6755_v41, %v6755_v41  ;;  %v6760_v6 = vsub.f32 %v6682_v22, %v1924_v24  ;;  %5197 = vmatpush3.bf16.msra.mxu1 %v5592_v61 }
 0x7ca   : > { %v1908_v34 = vpop.xlane.xlu1 %1907  ;;  %5198 = vmatprep.subr.bf16.mxu1 %v5593_v0  ;;  %5219 = vmatpush3.bf16.msra.mxu0 %v5595_v53 }
 0x7cb   : > { %v1926_v50 = vmul.f32 0.0078125, %v1908_v34  ;;  %1981 = vadd.xlane.f32.xlu0 %v1955_v43  ;;  %v1956_v23 = vmul.f32 %v6760_v6, %v6760_v6  ;;  %v6765_v8 = vsub.f32 %v6688_v26, %v1925_v10  ;;  %5220 = vmatprep.subr.bf16.mxu0 %v5596_v39 }
 0x7cc   : > { %v1910_v32 = vpop.xlane.xlu0 %1909 }
 0x7cd   : > { %v1927_v37 = vmul.f32 0.0078125, %v1910_v32  ;;  %1983 = vadd.xlane.f32.xlu1 %v1956_v23  ;;  %v1957_v40 = vmul.f32 %v6765_v8, %v6765_v8  ;;  %v6770_v20 = vsub.f32 %v6692_v30, %v1926_v50  ;;  %5199 = vmatpush3.bf16.msra.mxu1 %v5593_v0 }
 0x7ce   : > { %v1912_v11 = vpop.xlane.xlu1 %1911  ;;  %5221 = vmatpush3.bf16.msra.mxu0 %v5596_v39 }
 0x7cf   : > { %v1928_v25 = vmul.f32 0.0078125, %v1912_v11  ;;  %1985 = vadd.xlane.f32.xlu0 %v1957_v40  ;;  %v1958_v2 = vmul.f32 %v6770_v20, %v6770_v20  ;;  %v6775_v28 = vsub.f32 %v6696_v4, %v1927_v37  ;;  %5222 = vmatprep.subr.bf16.mxu0 %v5597_v19 }
 0x7d1   : > { %1987 = vadd.xlane.f32.xlu1 %v1958_v2  ;;  %v1959_v7 = vmul.f32 %v6775_v28, %v6775_v28  ;;  %v6780_v45 = vsub.f32 %v6700_v44, %v1928_v25 }
 0x7d2   : > { %5223 = vmatpush3.bf16.msra.mxu0 %v5597_v19 }
 0x7d3   : > { %1989 = vadd.xlane.f32.xlu0 %v1959_v7  ;;  %v1960_v16 = vmul.f32 %v6780_v45, %v6780_v45  ;;  %5224 = vmatprep.subr.bf16.mxu0 %v5598_v9 }
 0x7d5   : > { %1991 = vadd.xlane.f32.xlu1 %v1960_v16  ;;  %v6787_v16 = vld [vmem:[%s7687_s3 + $0x2] ss:$0 sm:$0xff] }
 0x7d6   : > { %5225 = vmatpush3.bf16.msra.mxu0 %v5598_v9 }
 0x7d7   : > { %5226 = vmatprep.subr.bf16.mxu0 %v5599_v57 }
 0x7da   : > { %5227 = vmatpush3.bf16.msra.mxu0 %v5599_v57 }
 0x844   : > { %v1962_v55 = vpop.xlane.xlu0 %1961 }
 0x845   : > { %v1993_v60 = vmul.f32 0.0078125, %v1962_v55 }
 0x846   : > { %v1964_v63 = vpop.xlane.xlu1 %1963 }
 0x847   : > { %v2009_v5 = vadd.f32 1e-05, %v1993_v60  ;;  %v1994_v24 = vmul.f32 0.0078125, %v1964_v63 }
 0x848   : > { %v1966_v27 = vpop.xlane.xlu0 %1965 }
 0x849   : > { %5722 = vrsqrt.f32 %v2009_v5  ;;  %v2010_v31 = vadd.f32 1e-05, %v1994_v24  ;;  %v1995_v10 = vmul.f32 0.0078125, %v1966_v27  ;;  %v6795_v24 = vld [vmem:[%s7688_s4 + $0x2] ss:$0 sm:$0xff] }
 0x84a   : > { %v1968_v43 = vpop.xlane.xlu1 %1967 }
 0x84b   : > { %5724 = vrsqrt.f32 %v2010_v31  ;;  %v2011_v34 = vadd.f32 1e-05, %v1995_v10  ;;  %v1996_v38 = vmul.f32 0.0078125, %v1968_v43 }
 0x84c   : > { %v1970_v50 = vpop.xlane.xlu0 %1969 }
 0x84d   : > { %5726 = vrsqrt.f32 %v2011_v34  ;;  %v2012_v23 = vadd.f32 1e-05, %v1996_v38  ;;  %v1997_v32 = vmul.f32 0.0078125, %v1970_v50 }
 0x84e   : > { %v1972_v37 = vpop.xlane.xlu1 %1971 }
 0x84f   : > { %5728 = vrsqrt.f32 %v2012_v23  ;;  %v2013_v40 = vadd.f32 1e-05, %v1997_v32  ;;  %v1998_v11 = vmul.f32 0.0078125, %v1972_v37 }
 0x850   : > { %v1974_v21 = vpop.xlane.xlu0 %1973 }
 0x851   : > { %5730 = vrsqrt.f32 %v2013_v40  ;;  %v2014_v25 = vadd.f32 1e-05, %v1998_v11  ;;  %v1999_v2 = vmul.f32 0.0078125, %v1974_v21 }
 0x852   : > { %v1976_v7 = vpop.xlane.xlu1 %1975 }
 0x853   : > { %v5723_v36 = vpop.eup %5722  ;;  %5732 = vrsqrt.f32 %v2014_v25  ;;  %v2015_v49 = vadd.f32 1e-05, %v1999_v2  ;;  %v2000_v61 = vmul.f32 0.0078125, %v1976_v7 }
 0x854   : > { %v1978_v0 = vpop.xlane.xlu0 %1977  ;;  %v2041_v29 = vmul.f32 %v5723_v36, %v6705_v15 }
 0x855   : > { %v5725_v53 = vpop.eup %5724  ;;  %5734 = vrsqrt.f32 %v2015_v49  ;;  %v2016_v39 = vadd.f32 1e-05, %v2000_v61  ;;  %v2001_v19 = vmul.f32 0.0078125, %v1978_v0 }
 0x856   : > { %v1980_v9 = vpop.xlane.xlu1 %1979  ;;  %v2042_v57 = vmul.f32 %v5725_v53, %v6710_v33  ;;  %v2063_v55 = vmul.f32 %v6787_v16, %v2041_v29 }
 0x857   : > { %v5727_v60 = vpop.eup %5726  ;;  %5736 = vrsqrt.f32 %v2016_v39  ;;  %v2017_v63 = vadd.f32 1e-05, %v2001_v19  ;;  %v2002_v5 = vmul.f32 0.0078125, %v1980_v9 }
 0x858   : > { %v2043_v15 = vmul.f32 %v5727_v60, %v6715_v59  ;;  %v1982_v27 = vpop.xlane.xlu0 %1981  ;;  %v2064_v31 = vmul.f32 %v6787_v16, %v2042_v57  ;;  %v2085_v23 = vadd.f32 %v6795_v24, %v2063_v55 }
 0x859   : > { %v5729_v10 = vpop.eup %5728  ;;  %5738 = vrsqrt.f32 %v2017_v63  ;;  %v2018_v43 = vadd.f32 1e-05, %v2002_v5  ;;  %v2003_v33 = vmul.f32 0.0078125, %v1982_v27 }
 0x85a   : > { %v2065_v34 = vmul.f32 %v6787_v16, %v2043_v15  ;;  %v2044_v38 = vmul.f32 %v5729_v10, %v6720_v62  ;;  %v1984_v50 = vpop.xlane.xlu1 %1983  ;;  %v2086_v32 = vadd.f32 %v6795_v24, %v2064_v31 }
 0x85b   : > { %v5731_v37 = vpop.eup %5730  ;;  %5740 = vrsqrt.f32 %v2018_v43  ;;  %v2019_v40 = vadd.f32 1e-05, %v2003_v33  ;;  %v2004_v59 = vmul.f32 0.0078125, %v1984_v50 }
 0x85c   : > { %v2066_v11 = vmul.f32 %v6787_v16, %v2044_v38  ;;  %v1986_v21 = vpop.xlane.xlu0 %1985  ;;  %v2101_v25 = vpack.c.bf16 %v2086_v32, %v2085_v23  ;;  %v2045_v2 = vmul.f32 %v5731_v37, %v6725_v12  ;;  %v2087_v61 = vadd.f32 %v6795_v24, %v2065_v34 }
 0x85d   : > { %v5733_v7 = vpop.eup %5732  ;;  %5742 = vrsqrt.f32 %v2019_v40  ;;  %v2020_v36 = vadd.f32 1e-05, %v2004_v59  ;;  %v2005_v49 = vmul.f32 0.0078125, %v1986_v21 }
 0x85e   : > { %v1988_v62 = vpop.xlane.xlu1 %1987  ;;  %5200 = vmatprep.mubr.bf16.mxu1 %v2101_v25  ;;  %v2088_v0 = vadd.f32 %v6795_v24, %v2066_v11  ;;  %v2046_v29 = vmul.f32 %v5733_v7, %v6730_v58  ;;  %v2067_v53 = vmul.f32 %v6787_v16, %v2045_v2 }
 0x85f   : > { %v5735_v39 = vpop.eup %5734  ;;  %5744 = vrsqrt.f32 %v2020_v36  ;;  %v2021_v19 = vadd.f32 1e-05, %v2005_v49  ;;  %v2006_v9 = vmul.f32 0.0078125, %v1988_v62 }
 0x860   : > { %v1990_v57 = vpop.xlane.xlu0 %1989  ;;  %v2102_v12 = vpack.c.bf16 %v2088_v0, %v2087_v61  ;;  %v2068_v55 = vmul.f32 %v6787_v16, %v2046_v29  ;;  %v2047_v60 = vmul.f32 %v5735_v39, %v6735_v46  ;;  %v2089_v58 = vadd.f32 %v6795_v24, %v2067_v53 }
 0x861   : > { %v5737_v63 = vpop.eup %5736  ;;  %5746 = vrsqrt.f32 %v2021_v19  ;;  %v2022_v5 = vadd.f32 1e-05, %v2006_v9  ;;  %v2007_v15 = vmul.f32 0.0078125, %v1990_v57 }
 0x862   : > { %v1992_v27 = vpop.xlane.xlu1 %1991  ;;  %5201 = vmatmul.mubr.bf16.vlgmr.msra.gmra.mrb[32].mxu1 %v2102_v12  ;;  %v2090_v31 = vadd.f32 %v6795_v24, %v2068_v55  ;;  %v2048_v10 = vmul.f32 %v5737_v63, %v6740_v47  ;;  %v2069_v43 = vmul.f32 %v6787_v16, %v2047_v60 }
 0x863   : > { %v5739_v33 = vpop.eup %5738  ;;  %5748 = vrsqrt.f32 %v2022_v5  ;;  %v2023_v34 = vadd.f32 1e-05, %v2007_v15  ;;  %v2008_v38 = vmul.f32 0.0078125, %v1992_v27 }
 0x864   : > { %v2103_v50 = vpack.c.bf16 %v2090_v31, %v2089_v58  ;;  %v2070_v46 = vmul.f32 %v6787_v16, %v2048_v10  ;;  %v2049_v23 = vmul.f32 %v5739_v33, %v6745_v35  ;;  %v2091_v40 = vadd.f32 %v6795_v24, %v2069_v43  ;;  %v5601_v33 = vld [vmem:[#allocation5 + $0xb8] sm:$0xff]  }
 0x865   : > { %v5741_v32 = vpop.eup %5740  ;;  %5750 = vrsqrt.f32 %v2023_v34  ;;  %v2024_v37 = vadd.f32 1e-05, %v2008_v38 }
 0x866   : > { %5204 = vmatprep.mubr.bf16.mxu1 %v2103_v50  ;;  %v2092_v59 = vadd.f32 %v6795_v24, %v2070_v46  ;;  %v2050_v47 = vmul.f32 %v5741_v32, %v6750_v17  ;;  %v2071_v11 = vmul.f32 %v6787_v16, %v2049_v23 }
 0x867   : > { %v5743_v21 = vpop.eup %5742  ;;  %5752 = vrsqrt.f32 %v2024_v37 }
 0x868   : > { %v2104_v25 = vpack.c.bf16 %v2092_v59, %v2091_v40  ;;  %v2072_v2 = vmul.f32 %v6787_v16, %v2050_v47  ;;  %v2051_v7 = vmul.f32 %v5743_v21, %v6755_v41  ;;  %v2093_v36 = vadd.f32 %v6795_v24, %v2071_v11 }
 0x869   : > { %v5745_v35 = vpop.eup %5744 }
 0x86a   : > { %5205 = vmatmul.mubr.bf16.gmra.mrb[36].mxu1 %v2104_v25  ;;  %v2094_v49 = vadd.f32 %v6795_v24, %v2072_v2  ;;  %v2052_v62 = vmul.f32 %v5745_v35, %v6760_v6  ;;  %v2073_v61 = vmul.f32 %v6787_v16, %v2051_v7 }
 0x86b   : > { %v5747_v17 = vpop.eup %5746 }
 0x86c   : > { %v2105_v0 = vpack.c.bf16 %v2094_v49, %v2093_v36  ;;  %v2074_v29 = vmul.f32 %v6787_v16, %v2052_v62  ;;  %v2053_v53 = vmul.f32 %v5747_v17, %v6765_v8  ;;  %v2095_v41 = vadd.f32 %v6795_v24, %v2073_v61 }
 0x86d   : > { %v5749_v39 = vpop.eup %5748 }
 0x86e   : > { %5208 = vmatprep.mubr.bf16.mxu1 %v2105_v0  ;;  %v2096_v19 = vadd.f32 %v6795_v24, %v2074_v29  ;;  %v2054_v9 = vmul.f32 %v5749_v39, %v6770_v20  ;;  %v2075_v57 = vmul.f32 %v6787_v16, %v2053_v53 }
 0x86f   : > { %v5751_v12 = vpop.eup %5750 }
 0x870   : > { %v2106_v6 = vpack.c.bf16 %v2096_v19, %v2095_v41  ;;  %v2076_v55 = vmul.f32 %v6787_v16, %v2054_v9  ;;  %v2055_v60 = vmul.f32 %v5751_v12, %v6775_v28  ;;  %v2097_v8 = vadd.f32 %v6795_v24, %v2075_v57  ;;  %v5600_v28 = vld [vmem:[#allocation5 + $0xb0] sm:$0xff]  }
 0x871   : > { %v5753_v63 = vpop.eup %5752  ;;  %5228 = vmatprep.subr.bf16.mxu0 %v5600_v28 }
 0x872   : > { %5209 = vmatmul.mubr.bf16.gmra.mrb[40].mxu1 %v2106_v6  ;;  %v2098_v5 = vadd.f32 %v6795_v24, %v2076_v55  ;;  %v2056_v15 = vmul.f32 %v5753_v63, %v6780_v45  ;;  %v2077_v27 = vmul.f32 %v6787_v16, %v2055_v60  ;;  %5229 = vmatpush3.bf16.msra.mxu0 %v5600_v28  ;;  %v4713_v45 = vld [vmem:[%s7690_s6 + $0x2] ss:$0 sm:$0xff] }
 0x873   : > { %5230 = vmatprep.subr.bf16.mxu0 %v5601_v33 }
 0x874   : > { %v2107_v58 = vpack.c.bf16 %v2098_v5, %v2097_v8  ;;  %v2078_v20 = vmul.f32 %v6787_v16, %v2056_v15  ;;  %v2099_v31 = vadd.f32 %v6795_v24, %v2077_v27 }
 0x876   : > { %5212 = vmatprep.mubr.bf16.mxu1 %v2107_v58  ;;  %v2100_v10 = vadd.f32 %v6795_v24, %v2078_v20  ;;  %5231 = vmatpush3.bf16.msra.mxu0 %v5601_v33 }
 0x878   : > { %v2108_v43 = vpack.c.bf16 %v2100_v10, %v2099_v31 }
 0x87a   : > { %5213 = vmatmul.mubr.bf16.gmra.mrb[44].mxu1 %v2108_v43 }
 0x935   : > { %v5202_v34 = vpop.f32.mrb[32].mxu1 }
 0x936   : > { %v2206_v38 = vadd.f32 %v5202_v34, %v4713_v45  ;;  %v2197_v16 = vpop.f32.mrb[33].mxu1 }
 0x937   : > { %v2198_v50 = vadd.f32 %v4713_v45, %v2197_v16  ;;  %v5203_v46 = vpop.f32.mrb[34].mxu1 }
 0x938   : > { %v2209_v23 = vadd.f32 %v5203_v46, %v4713_v45  ;;  %v2200_v32 = vpop.f32.mrb[35].mxu1  ;;  %v2262_v37 = vmax.f32 %v2206_v38, 0.0 }
 0x939   : > { %v2201_v24 = vadd.f32 %v4713_v45, %v2200_v32  ;;  %v2260_v59 = vmax.f32 %v2198_v50, 0.0 }
 0x93a   : > { %v2263_v40 = vmax.f32 %v2209_v23, 0.0 }
 0x93b   : > { %v2261_v47 = vmax.f32 %v2201_v24, 0.0 }
 0x93c   : > { %v2277_v11 = vpack.c.bf16 %v2263_v40, %v2262_v37  ;;  %v6848_v40 = vld [vmem:[%s7692_s8 + $0x2] ss:$0 sm:$0xff] }
 0x93d   : > { %v2276_v21 = vpack.c.bf16 %v2261_v47, %v2260_v59  ;;  %v5206_v25 = vpop.f32.mrb[36].mxu1 }
 0x93e   : > { %v2222_v2 = vadd.f32 %v5206_v25, %v4713_v45  ;;  %v2213_v7 = vpop.f32.mrb[37].mxu1 }
 0x93f   : > { %v2214_v35 = vadd.f32 %v4713_v45, %v2213_v7  ;;  %v5207_v36 = vpop.f32.mrb[38].mxu1  ;;  %5232 = vmatprep.mubr.bf16.mxu0 %v2276_v21 }
 0x940   : > { %v2225_v49 = vadd.f32 %v5207_v36, %v4713_v45  ;;  %v2216_v62 = vpop.f32.mrb[39].mxu1  ;;  %5233 = vmatmul.mubr.bf16.vlgmr.msra.gmra.mrb[48].mxu0 %v2277_v11  ;;  %v2266_v17 = vmax.f32 %v2222_v2, 0.0 }
 0x941   : > { %v2217_v61 = vadd.f32 %v4713_v45, %v2216_v62  ;;  %v2264_v29 = vmax.f32 %v2214_v35, 0.0 }
 0x942   : > { %v2267_v0 = vmax.f32 %v2225_v49, 0.0 }
 0x943   : > { %v2265_v53 = vmax.f32 %v2217_v61, 0.0 }
 0x944   : > { %v2279_v39 = vpack.c.bf16 %v2267_v0, %v2266_v17 }
 0x945   : > { %v2278_v41 = vpack.c.bf16 %v2265_v53, %v2264_v29  ;;  %v5210_v19 = vpop.f32.mrb[40].mxu1 }
 0x946   : > { %v2238_v9 = vadd.f32 %v5210_v19, %v4713_v45  ;;  %v2229_v57 = vpop.f32.mrb[41].mxu1 }
 0x947   : > { %v2230_v12 = vadd.f32 %v4713_v45, %v2229_v57  ;;  %v5211_v6 = vpop.f32.mrb[42].mxu1  ;;  %5236 = vmatprep.mubr.bf16.mxu0 %v2278_v41 }
 0x948   : > { %v2241_v55 = vadd.f32 %v5211_v6, %v4713_v45  ;;  %v2232_v60 = vpop.f32.mrb[43].mxu1  ;;  %5237 = vmatmul.mubr.bf16.gmra.mrb[52].mxu0 %v2279_v39  ;;  %v2270_v8 = vmax.f32 %v2238_v9, 0.0 }
 0x949   : > { %v2233_v63 = vadd.f32 %v4713_v45, %v2232_v60  ;;  %v2268_v15 = vmax.f32 %v2230_v12, 0.0 }
 0x94a   : > { %v2271_v5 = vmax.f32 %v2241_v55, 0.0 }
 0x94b   : > { %v2269_v27 = vmax.f32 %v2233_v63, 0.0 }
 0x94c   : > { %v2281_v58 = vpack.c.bf16 %v2271_v5, %v2270_v8 }
 0x94d   : > { %v2280_v20 = vpack.c.bf16 %v2269_v27, %v2268_v15  ;;  %v5214_v31 = vpop.f32.mrb[44].mxu1 }
 0x94e   : > { %v2254_v10 = vadd.f32 %v5214_v31, %v4713_v45  ;;  %v2245_v43 = vpop.f32.mrb[45].mxu1 }
 0x94f   : > { %v2246_v28 = vadd.f32 %v4713_v45, %v2245_v43  ;;  %v5215_v33 = vpop.f32.mrb[46].mxu1  ;;  %5240 = vmatprep.mubr.bf16.mxu0 %v2280_v20 }
 0x950   : > { %v2257_v34 = vadd.f32 %v5215_v33, %v4713_v45  ;;  %v2248_v38 = vpop.f32.mrb[47].mxu1  ;;  %5241 = vmatmul.mubr.bf16.gmra.mrb[56].mxu0 %v2281_v58  ;;  %v2274_v50 = vmax.f32 %v2254_v10, 0.0 }
 0x951   : > { %v2249_v16 = vadd.f32 %v4713_v45, %v2248_v38  ;;  %v2272_v23 = vmax.f32 %v2246_v28, 0.0 }
 0x952   : > { %v2275_v46 = vmax.f32 %v2257_v34, 0.0 }
 0x953   : > { %v2273_v32 = vmax.f32 %v2249_v16, 0.0 }
 0x954   : > { %v2283_v24 = vpack.c.bf16 %v2275_v46, %v2274_v50 }
 0x955   : > { %v2282_v37 = vpack.c.bf16 %v2273_v32, %v2272_v23 }
 0x957   : > { %5244 = vmatprep.mubr.bf16.mxu0 %v2282_v37 }
 0x958   : > { %5245 = vmatmul.mubr.bf16.gmra.mrb[60].mxu0 %v2283_v24 }
 0xa13   : > { %v5234_v59 = vpop.f32.mrb[48].mxu0 }
 0xa14   : > { %v2372_v47 = vpop.f32.mrb[49].mxu0  ;;  %v2381_v11 = vadd.f32 %v5234_v59, %v6848_v40 }
 0xa15   : > { %v2373_v21 = vadd.f32 %v6848_v40, %v2372_v47  ;;  %v5235_v45 = vpop.f32.mrb[50].mxu0 }
 0xa16   : > { %v2375_v25 = vpop.f32.mrb[51].mxu0  ;;  %v2384_v7 = vadd.f32 %v5235_v45, %v6848_v40  ;;  %v2437_v36 = vmax.f32 %v2381_v11, 0.0 }
 0xa17   : > { %v2435_v2 = vmax.f32 %v2373_v21, 0.0  ;;  %v2376_v35 = vadd.f32 %v6848_v40, %v2375_v25 }
 0xa18   : > { %v2438_v61 = vmax.f32 %v2384_v7, 0.0  ;;  %v6862_v53 = vadd.f32 %v2437_v36, %v6636_v13 }
 0xa19   : > { %v6855_v49 = vadd.f32 %v2435_v2, %v6629_v51  ;;  %v2436_v62 = vmax.f32 %v2376_v35, 0.0 }
 0xa1a   : > { %v6868_v9 = vadd.f32 %v2438_v61, %v6642_v42 }
 0xa1b   : > { %v6858_v17 = vadd.f32 %v2436_v62, %v6632_v3  ;;  %2509 = vadd.xlane.f32.xlu0 %v6855_v49  ;;  %v5238_v0 = vpop.f32.mrb[52].mxu0 }
 0xa1c   : > { %v2388_v29 = vpop.f32.mrb[53].mxu0  ;;  %v2397_v39 = vadd.f32 %v5238_v0, %v6848_v40 }
 0xa1d   : > { %v2389_v41 = vadd.f32 %v6848_v40, %v2388_v29  ;;  %2511 = vadd.xlane.f32.xlu1 %v6858_v17  ;;  %v5239_v51 = vpop.f32.mrb[54].mxu0 }
 0xa1e   : > { %v2391_v19 = vpop.f32.mrb[55].mxu0  ;;  %v2400_v57 = vadd.f32 %v5239_v51, %v6848_v40  ;;  %v2441_v13 = vmax.f32 %v2397_v39, 0.0 }
 0xa1f   : > { %v2439_v3 = vmax.f32 %v2389_v41, 0.0  ;;  %v2392_v12 = vadd.f32 %v6848_v40, %v2391_v19  ;;  %2513 = vadd.xlane.f32.xlu0 %v6862_v53 }
 0xa20   : > { %v2442_v60 = vmax.f32 %v2400_v57, 0.0  ;;  %v6882_v5 = vadd.f32 %v2441_v13, %v6656_v54 }
 0xa21   : > { %v6874_v6 = vadd.f32 %v2439_v3, %v6648_v56  ;;  %v2440_v55 = vmax.f32 %v2392_v12, 0.0  ;;  %2515 = vadd.xlane.f32.xlu1 %v6868_v9 }
 0xa22   : > { %v6888_v20 = vadd.f32 %v2442_v60, %v6662_v52 }
 0xa23   : > { %v6878_v63 = vadd.f32 %v2440_v55, %v6652_v48  ;;  %2517 = vadd.xlane.f32.xlu0 %v6874_v6  ;;  %v5242_v42 = vpop.f32.mrb[56].mxu0 }
 0xa24   : > { %v2404_v8 = vpop.f32.mrb[57].mxu0  ;;  %v2413_v15 = vadd.f32 %v5242_v42, %v6848_v40 }
 0xa25   : > { %v2405_v27 = vadd.f32 %v6848_v40, %v2404_v8  ;;  %2519 = vadd.xlane.f32.xlu1 %v6878_v63  ;;  %v5243_v56 = vpop.f32.mrb[58].mxu0 }
 0xa26   : > { %v2407_v58 = vpop.f32.mrb[59].mxu0  ;;  %v2416_v31 = vadd.f32 %v5243_v56, %v6848_v40  ;;  %v2445_v54 = vmax.f32 %v2413_v15, 0.0 }
 0xa27   : > { %v2443_v48 = vmax.f32 %v2405_v27, 0.0  ;;  %v2408_v10 = vadd.f32 %v6848_v40, %v2407_v58  ;;  %2521 = vadd.xlane.f32.xlu0 %v6882_v5 }
 0xa28   : > { %v2446_v33 = vmax.f32 %v2416_v31, 0.0  ;;  %v6902_v16 = vadd.f32 %v2445_v54, %v6676_v1 }
 0xa29   : > { %v6894_v43 = vadd.f32 %v2443_v48, %v6668_v18  ;;  %v2444_v28 = vmax.f32 %v2408_v10, 0.0  ;;  %2523 = vadd.xlane.f32.xlu1 %v6888_v20 }
 0xa2a   : > { %v6908_v32 = vadd.f32 %v2446_v33, %v6682_v22 }
 0xa2b   : > { %v6898_v34 = vadd.f32 %v2444_v28, %v6672_v14  ;;  %2525 = vadd.xlane.f32.xlu0 %v6894_v43  ;;  %v5246_v52 = vpop.f32.mrb[60].mxu0 }
 0xa2c   : > { %v2420_v38 = vpop.f32.mrb[61].mxu0  ;;  %v2429_v50 = vadd.f32 %v5246_v52, %v6848_v40 }
 0xa2d   : > { %v2421_v46 = vadd.f32 %v6848_v40, %v2420_v38  ;;  %2527 = vadd.xlane.f32.xlu1 %v6898_v34  ;;  %v5247_v18 = vpop.f32.mrb[62].mxu0 }
 0xa2e   : > { %v2423_v23 = vpop.f32.mrb[63].mxu0  ;;  %v2432_v24 = vadd.f32 %v5247_v18, %v6848_v40  ;;  %v2449_v1 = vmax.f32 %v2429_v50, 0.0 }
 0xa2f   : > { %v2447_v14 = vmax.f32 %v2421_v46, 0.0  ;;  %v2424_v37 = vadd.f32 %v6848_v40, %v2423_v23  ;;  %2529 = vadd.xlane.f32.xlu0 %v6902_v16 }
 0xa30   : > { %v2450_v11 = vmax.f32 %v2432_v24, 0.0  ;;  %v6922_v22 = vadd.f32 %v2449_v1, %v6696_v4  ;;  %v5603_v24 = vld [vmem:[#allocation2 + $0xc8] sm:$0xff]  }
 0xa31   : > { %v6914_v59 = vadd.f32 %v2447_v14, %v6688_v26  ;;  %v2448_v47 = vmax.f32 %v2424_v37, 0.0  ;;  %2531 = vadd.xlane.f32.xlu1 %v6908_v32  ;;  %v5602_v26 = vld [vmem:[#allocation2 + $0xc0] sm:$0xff]  }
 0xa32   : > { %v6926_v40 = vadd.f32 %v2450_v11, %v6700_v44  ;;  %5248 = vmatprep.subr.bf16.mxu1 %v5602_v26 }
 0xa33   : > { %v6918_v21 = vadd.f32 %v2448_v47, %v6692_v30  ;;  %2533 = vadd.xlane.f32.xlu0 %v6914_v59  ;;  %5249 = vmatpush3.bf16.msra.mxu1 %v5602_v26 }
 0xa34   : > { %5250 = vmatprep.subr.bf16.mxu1 %v5603_v24 }
 0xa35   : > { %2535 = vadd.xlane.f32.xlu1 %v6918_v21 }
 0xa37   : > { %2537 = vadd.xlane.f32.xlu0 %v6922_v22  ;;  %5251 = vmatpush3.bf16.msra.mxu1 %v5603_v24 }
 0xa39   : > { %2539 = vadd.xlane.f32.xlu1 %v6926_v40 }
 0xaa8   : > { %v2510_v45 = vpop.xlane.xlu0 %2509 }
 0xaa9   : > { %v2541_v30 = vmul.f32 0.0078125, %v2510_v45 }
 0xaaa   : > { %v2512_v25 = vpop.xlane.xlu1 %2511 }
 0xaab   : > { %v6931_v2 = vsub.f32 %v6855_v49, %v2541_v30  ;;  %v2542_v4 = vmul.f32 0.0078125, %v2512_v25 }
 0xaac   : > { %v2514_v7 = vpop.xlane.xlu0 %2513 }
 0xaad   : > { %v6934_v35 = vsub.f32 %v6858_v17, %v2542_v4  ;;  %v2543_v44 = vmul.f32 0.0078125, %v2514_v7  ;;  %v2573_v36 = vmul.f32 %v6931_v2, %v6931_v2  ;;  %v5604_v4 = vld [vmem:[#allocation2 + $0xd0] sm:$0xff]  }
 0xaae   : > { %v2516_v62 = vpop.xlane.xlu1 %2515  ;;  %5252 = vmatprep.subr.bf16.mxu1 %v5604_v4 }
 0xaaf   : > { %v6939_v61 = vsub.f32 %v6862_v53, %v2543_v44  ;;  %v2544_v0 = vmul.f32 0.0078125, %v2516_v62  ;;  %2589 = vadd.xlane.f32.xlu0 %v2573_v36  ;;  %v2574_v29 = vmul.f32 %v6934_v35, %v6934_v35  ;;  %5253 = vmatpush3.bf16.msra.mxu1 %v5604_v4 }
 0xab0   : > { %v2518_v39 = vpop.xlane.xlu0 %2517 }
 0xab1   : > { %v6944_v41 = vsub.f32 %v6868_v9, %v2544_v0  ;;  %v2545_v51 = vmul.f32 0.0078125, %v2518_v39  ;;  %2591 = vadd.xlane.f32.xlu1 %v2574_v29  ;;  %v2575_v19 = vmul.f32 %v6939_v61, %v6939_v61 }
 0xab2   : > { %v2520_v3 = vpop.xlane.xlu1 %2519 }
 0xab3   : > { %v6949_v57 = vsub.f32 %v6874_v6, %v2545_v51  ;;  %v2546_v12 = vmul.f32 0.0078125, %v2520_v3  ;;  %2593 = vadd.xlane.f32.xlu0 %v2575_v19  ;;  %v2576_v13 = vmul.f32 %v6944_v41, %v6944_v41  ;;  %v5605_v19 = vld [vmem:[#allocation2 + $0xd8] sm:$0xff]  }
 0xab4   : > { %v2522_v55 = vpop.xlane.xlu0 %2521  ;;  %5254 = vmatprep.subr.bf16.mxu1 %v5605_v19 }
 0xab5   : > { %v6954_v60 = vsub.f32 %v6878_v63, %v2546_v12  ;;  %v2547_v42 = vmul.f32 0.0078125, %v2522_v55  ;;  %2595 = vadd.xlane.f32.xlu1 %v2576_v13  ;;  %v2577_v8 = vmul.f32 %v6949_v57, %v6949_v57  ;;  %5255 = vmatpush3.bf16.msra.mxu1 %v5605_v19 }
 0xab6   : > { %v2524_v15 = vpop.xlane.xlu1 %2523 }
 0xab7   : > { %v6959_v27 = vsub.f32 %v6882_v5, %v2547_v42  ;;  %v2548_v56 = vmul.f32 0.0078125, %v2524_v15  ;;  %2597 = vadd.xlane.f32.xlu0 %v2577_v8  ;;  %v2578_v58 = vmul.f32 %v6954_v60, %v6954_v60  ;;  %v5606_v8 = vld [vmem:[#allocation2 + $0xe0] sm:$0xff]  }
 0xab8   : > { %v2526_v48 = vpop.xlane.xlu0 %2525  ;;  %5256 = vmatprep.subr.bf16.mxu1 %v5606_v8 }
 0xab9   : > { %v6964_v31 = vsub.f32 %v6888_v20, %v2548_v56  ;;  %v2549_v10 = vmul.f32 0.0078125, %v2526_v48  ;;  %2599 = vadd.xlane.f32.xlu1 %v2578_v58  ;;  %v2579_v54 = vmul.f32 %v6959_v27, %v6959_v27  ;;  %5257 = vmatpush3.bf16.msra.mxu1 %v5606_v8  ;;  %v5607_v56 = vld [vmem:[#allocation2 + $0xe8] sm:$0xff]   ;;  %v5608_v58 = vld [vmem:[#allocation2 + $0xf0] sm:$0xff]   ;;  %v5609_v48 = vld [vmem:[#allocation2 + $0xf8] sm:$0xff]  }
 0xaba   : > { %v2528_v28 = vpop.xlane.xlu1 %2527  ;;  %5258 = vmatprep.subr.bf16.mxu1 %v5607_v56 }
 0xabb   : > { %v6969_v33 = vsub.f32 %v6894_v43, %v2549_v10  ;;  %v2550_v52 = vmul.f32 0.0078125, %v2528_v28  ;;  %2601 = vadd.xlane.f32.xlu0 %v2579_v54  ;;  %v2580_v38 = vmul.f32 %v6964_v31, %v6964_v31  ;;  %v5610_v10 = vld [vmem:[#allocation5 + $0xc0] sm:$0xff]   ;;  %v5611_v54 = vld [vmem:[#allocation5 + $0xc8] sm:$0xff]   ;;  %v5612_v28 = vld [vmem:[#allocation5 + $0xd0] sm:$0xff]  }
 0xabc   : > { %v2530_v50 = vpop.xlane.xlu0 %2529  ;;  %5280 = vmatprep.subr.bf16.mxu0 %v5610_v10 }
 0xabd   : > { %v6974_v46 = vsub.f32 %v6898_v34, %v2550_v52  ;;  %v2551_v18 = vmul.f32 0.0078125, %v2530_v50  ;;  %2603 = vadd.xlane.f32.xlu1 %v2580_v38  ;;  %v2581_v23 = vmul.f32 %v6969_v33, %v6969_v33  ;;  %5259 = vmatpush3.bf16.msra.mxu1 %v5607_v56  ;;  %v5613_v52 = vld [vmem:[#allocation5 + $0xd8] sm:$0xff]   ;;  %v5614_v38 = vld [vmem:[#allocation5 + $0xe0] sm:$0xff]   ;;  %v5615_v50 = vld [vmem:[#allocation5 + $0xe8] sm:$0xff]  }
 0xabe   : > { %v2532_v14 = vpop.xlane.xlu1 %2531  ;;  %5260 = vmatprep.subr.bf16.mxu1 %v5608_v58  ;;  %5281 = vmatpush3.bf16.msra.mxu0 %v5610_v10 }
 0xabf   : > { %v6979_v37 = vsub.f32 %v6902_v16, %v2551_v18  ;;  %v2552_v1 = vmul.f32 0.0078125, %v2532_v14  ;;  %2605 = vadd.xlane.f32.xlu0 %v2581_v23  ;;  %v2582_v47 = vmul.f32 %v6974_v46, %v6974_v46  ;;  %5282 = vmatprep.subr.bf16.mxu0 %v5611_v54 }
 0xac0   : > { %v2534_v11 = vpop.xlane.xlu0 %2533 }
 0xac1   : > { %v6984_v26 = vsub.f32 %v6908_v32, %v2552_v1  ;;  %v2553_v45 = vmul.f32 0.0078125, %v2534_v11  ;;  %2607 = vadd.xlane.f32.xlu1 %v2582_v47  ;;  %v2583_v30 = vmul.f32 %v6979_v37, %v6979_v37  ;;  %5261 = vmatpush3.bf16.msra.mxu1 %v5608_v58 }
 0xac2   : > { %v2536_v25 = vpop.xlane.xlu1 %2535  ;;  %5262 = vmatprep.subr.bf16.mxu1 %v5609_v48  ;;  %5283 = vmatpush3.bf16.msra.mxu0 %v5611_v54 }
 0xac3   : > { %v6989_v7 = vsub.f32 %v6914_v59, %v2553_v45  ;;  %v2554_v44 = vmul.f32 0.0078125, %v2536_v25  ;;  %2609 = vadd.xlane.f32.xlu0 %v2583_v30  ;;  %v2584_v36 = vmul.f32 %v6984_v26, %v6984_v26  ;;  %5284 = vmatprep.subr.bf16.mxu0 %v5612_v28 }
 0xac4   : > { %v2538_v62 = vpop.xlane.xlu0 %2537 }
 0xac5   : > { %v6994_v0 = vsub.f32 %v6918_v21, %v2554_v44  ;;  %v2555_v29 = vmul.f32 0.0078125, %v2538_v62  ;;  %2611 = vadd.xlane.f32.xlu1 %v2584_v36  ;;  %v2585_v39 = vmul.f32 %v6989_v7, %v6989_v7  ;;  %5263 = vmatpush3.bf16.msra.mxu1 %v5609_v48 }
 0xac6   : > { %v2540_v51 = vpop.xlane.xlu1 %2539  ;;  %5285 = vmatpush3.bf16.msra.mxu0 %v5612_v28 }
 0xac7   : > { %v6999_v3 = vsub.f32 %v6922_v22, %v2555_v29  ;;  %v2556_v12 = vmul.f32 0.0078125, %v2540_v51  ;;  %2613 = vadd.xlane.f32.xlu0 %v2585_v39  ;;  %v2586_v13 = vmul.f32 %v6994_v0, %v6994_v0  ;;  %5286 = vmatprep.subr.bf16.mxu0 %v5613_v52 }
 0xac9   : > { %v7004_v55 = vsub.f32 %v6926_v40, %v2556_v12  ;;  %2615 = vadd.xlane.f32.xlu1 %v2586_v13  ;;  %v2587_v42 = vmul.f32 %v6999_v3, %v6999_v3 }
 0xaca   : > { %5287 = vmatpush3.bf16.msra.mxu0 %v5613_v52 }
 0xacb   : > { %2617 = vadd.xlane.f32.xlu0 %v2587_v42  ;;  %v2588_v15 = vmul.f32 %v7004_v55, %v7004_v55  ;;  %5288 = vmatprep.subr.bf16.mxu0 %v5614_v38 }
 0xacd   : > { %2619 = vadd.xlane.f32.xlu1 %v2588_v15  ;;  %v7013_v15 = vld [vmem:[%s7687_s3 + $0x3] ss:$0 sm:$0xff] }
 0xace   : > { %5289 = vmatpush3.bf16.msra.mxu0 %v5614_v38 }
 0xacf   : > { %5290 = vmatprep.subr.bf16.mxu0 %v5615_v50 }
 0xad2   : > { %5291 = vmatpush3.bf16.msra.mxu0 %v5615_v50 }
 0xb3c   : > { %v2590_v18 = vpop.xlane.xlu0 %2589 }
 0xb3d   : > { %v2621_v23 = vmul.f32 0.0078125, %v2590_v18 }
 0xb3e   : > { %v2592_v14 = vpop.xlane.xlu1 %2591 }
 0xb3f   : > { %v2637_v24 = vadd.f32 1e-05, %v2621_v23  ;;  %v2622_v1 = vmul.f32 0.0078125, %v2592_v14 }
 0xb40   : > { %v2594_v47 = vpop.xlane.xlu0 %2593 }
 0xb41   : > { %5754 = vrsqrt.f32 %v2637_v24  ;;  %v2638_v11 = vadd.f32 1e-05, %v2622_v1  ;;  %v2623_v45 = vmul.f32 0.0078125, %v2594_v47  ;;  %v7021_v1 = vld [vmem:[%s7688_s4 + $0x3] ss:$0 sm:$0xff] }
 0xb42   : > { %v2596_v30 = vpop.xlane.xlu1 %2595 }
 0xb43   : > { %5756 = vrsqrt.f32 %v2638_v11  ;;  %v2639_v25 = vadd.f32 1e-05, %v2623_v45  ;;  %v2624_v4 = vmul.f32 0.0078125, %v2596_v30 }
 0xb44   : > { %v2598_v44 = vpop.xlane.xlu0 %2597 }
 0xb45   : > { %5758 = vrsqrt.f32 %v2639_v25  ;;  %v2640_v36 = vadd.f32 1e-05, %v2624_v4  ;;  %v2625_v62 = vmul.f32 0.0078125, %v2598_v44 }
 0xb46   : > { %v2600_v29 = vpop.xlane.xlu1 %2599 }
 0xb47   : > { %5760 = vrsqrt.f32 %v2640_v36  ;;  %v2641_v39 = vadd.f32 1e-05, %v2625_v62  ;;  %v2626_v51 = vmul.f32 0.0078125, %v2600_v29 }
 0xb48   : > { %v2602_v19 = vpop.xlane.xlu0 %2601 }
 0xb49   : > { %5762 = vrsqrt.f32 %v2641_v39  ;;  %v2642_v12 = vadd.f32 1e-05, %v2626_v51  ;;  %v2627_v13 = vmul.f32 0.0078125, %v2602_v19 }
 0xb4a   : > { %v2604_v42 = vpop.xlane.xlu1 %2603 }
 0xb4b   : > { %v5755_v8 = vpop.eup %5754  ;;  %5764 = vrsqrt.f32 %v2642_v12  ;;  %v2643_v56 = vadd.f32 1e-05, %v2627_v13  ;;  %v2628_v58 = vmul.f32 0.0078125, %v2604_v42 }
 0xb4c   : > { %v2606_v48 = vpop.xlane.xlu0 %2605  ;;  %v2669_v10 = vmul.f32 %v5755_v8, %v6931_v2 }
 0xb4d   : > { %v5757_v54 = vpop.eup %5756  ;;  %5766 = vrsqrt.f32 %v2643_v56  ;;  %v2644_v28 = vadd.f32 1e-05, %v2628_v58  ;;  %v2629_v52 = vmul.f32 0.0078125, %v2606_v48 }
 0xb4e   : > { %v2608_v38 = vpop.xlane.xlu1 %2607  ;;  %v2670_v50 = vmul.f32 %v5757_v54, %v6934_v35  ;;  %v2691_v18 = vmul.f32 %v7013_v15, %v2669_v10 }
 0xb4f   : > { %v5759_v23 = vpop.eup %5758  ;;  %5768 = vrsqrt.f32 %v2644_v28  ;;  %v2645_v14 = vadd.f32 1e-05, %v2629_v52  ;;  %v2630_v24 = vmul.f32 0.0078125, %v2608_v38 }
 0xb50   : > { %v2671_v2 = vmul.f32 %v5759_v23, %v6939_v61  ;;  %v2610_v47 = vpop.xlane.xlu0 %2609  ;;  %v2692_v11 = vmul.f32 %v7013_v15, %v2670_v50  ;;  %v2713_v36 = vadd.f32 %v7021_v1, %v2691_v18 }
 0xb51   : > { %v5761_v45 = vpop.eup %5760  ;;  %5770 = vrsqrt.f32 %v2645_v14  ;;  %v2646_v30 = vadd.f32 1e-05, %v2630_v24  ;;  %v2631_v35 = vmul.f32 0.0078125, %v2610_v47 }
 0xb52   : > { %v2693_v25 = vmul.f32 %v7013_v15, %v2671_v2  ;;  %v2672_v4 = vmul.f32 %v5761_v45, %v6944_v41  ;;  %v2612_v44 = vpop.xlane.xlu1 %2611  ;;  %v2714_v62 = vadd.f32 %v7021_v1, %v2692_v11 }
 0xb53   : > { %v5763_v29 = vpop.eup %5762  ;;  %5772 = vrsqrt.f32 %v2646_v30  ;;  %v2647_v39 = vadd.f32 1e-05, %v2631_v35  ;;  %v2632_v61 = vmul.f32 0.0078125, %v2612_v44 }
 0xb54   : > { %v2694_v51 = vmul.f32 %v7013_v15, %v2672_v4  ;;  %v2614_v19 = vpop.xlane.xlu0 %2613  ;;  %v2729_v12 = vpack.c.bf16 %v2714_v62, %v2713_v36  ;;  %v2673_v13 = vmul.f32 %v5763_v29, %v6949_v57  ;;  %v2715_v58 = vadd.f32 %v7021_v1, %v2693_v25 }
 0xb55   : > { %v5765_v42 = vpop.eup %5764  ;;  %5774 = vrsqrt.f32 %v2647_v39  ;;  %v2648_v8 = vadd.f32 1e-05, %v2632_v61  ;;  %v2633_v56 = vmul.f32 0.0078125, %v2614_v19 }
 0xb56   : > { %v2616_v41 = vpop.xlane.xlu1 %2615  ;;  %5264 = vmatprep.mubr.bf16.mxu1 %v2729_v12  ;;  %v2716_v48 = vadd.f32 %v7021_v1, %v2694_v51  ;;  %v2674_v10 = vmul.f32 %v5765_v42, %v6954_v60  ;;  %v2695_v54 = vmul.f32 %v7013_v15, %v2673_v13 }
 0xb57   : > { %v5767_v28 = vpop.eup %5766  ;;  %5776 = vrsqrt.f32 %v2648_v8  ;;  %v2649_v52 = vadd.f32 1e-05, %v2633_v56  ;;  %v2634_v38 = vmul.f32 0.0078125, %v2616_v41 }
 0xb58   : > { %v2618_v50 = vpop.xlane.xlu0 %2617  ;;  %v2730_v57 = vpack.c.bf16 %v2716_v48, %v2715_v58  ;;  %v2696_v18 = vmul.f32 %v7013_v15, %v2674_v10  ;;  %v2675_v23 = vmul.f32 %v5767_v28, %v6959_v27  ;;  %v2717_v60 = vadd.f32 %v7021_v1, %v2695_v54 }
 0xb59   : > { %v5769_v14 = vpop.eup %5768  ;;  %5778 = vrsqrt.f32 %v2649_v52  ;;  %v2650_v24 = vadd.f32 1e-05, %v2634_v38  ;;  %v2635_v2 = vmul.f32 0.0078125, %v2618_v50 }
 0xb5a   : > { %v2620_v47 = vpop.xlane.xlu1 %2619  ;;  %5265 = vmatmul.mubr.bf16.vlgmr.msra.gmra.mrb[48].mxu1 %v2730_v57  ;;  %v2718_v11 = vadd.f32 %v7021_v1, %v2696_v18  ;;  %v2676_v45 = vmul.f32 %v5769_v14, %v6964_v31  ;;  %v2697_v30 = vmul.f32 %v7013_v15, %v2675_v23 }
 0xb5b   : > { %v5771_v35 = vpop.eup %5770  ;;  %5780 = vrsqrt.f32 %v2650_v24  ;;  %v2651_v25 = vadd.f32 1e-05, %v2635_v2  ;;  %v2636_v4 = vmul.f32 0.0078125, %v2620_v47 }
 0xb5c   : > { %v2731_v44 = vpack.c.bf16 %v2718_v11, %v2717_v60  ;;  %v2698_v27 = vmul.f32 %v7013_v15, %v2676_v45  ;;  %v2677_v36 = vmul.f32 %v5771_v35, %v6969_v33  ;;  %v2719_v39 = vadd.f32 %v7021_v1, %v2697_v30  ;;  %v5617_v35 = vld [vmem:[#allocation5 + $0xf8] sm:$0xff]  }
 0xb5d   : > { %v5773_v62 = vpop.eup %5772  ;;  %5782 = vrsqrt.f32 %v2651_v25  ;;  %v2652_v29 = vadd.f32 1e-05, %v2636_v4 }
 0xb5e   : > { %5268 = vmatprep.mubr.bf16.mxu1 %v2731_v44  ;;  %v2720_v61 = vadd.f32 %v7021_v1, %v2698_v27  ;;  %v2678_v31 = vmul.f32 %v5773_v62, %v6974_v46  ;;  %v2699_v51 = vmul.f32 %v7013_v15, %v2677_v36 }
 0xb5f   : > { %v5775_v19 = vpop.eup %5774  ;;  %5784 = vrsqrt.f32 %v2652_v29 }
 0xb60   : > { %v2732_v12 = vpack.c.bf16 %v2720_v61, %v2719_v39  ;;  %v2700_v13 = vmul.f32 %v7013_v15, %v2678_v31  ;;  %v2679_v42 = vmul.f32 %v5775_v19, %v6979_v37  ;;  %v2721_v8 = vadd.f32 %v7021_v1, %v2699_v51 }
 0xb61   : > { %v5777_v33 = vpop.eup %5776 }
 0xb62   : > { %5269 = vmatmul.mubr.bf16.gmra.mrb[52].mxu1 %v2732_v12  ;;  %v2722_v56 = vadd.f32 %v7021_v1, %v2700_v13  ;;  %v2680_v41 = vmul.f32 %v5777_v33, %v6984_v26  ;;  %v2701_v58 = vmul.f32 %v7013_v15, %v2679_v42 }
 0xb63   : > { %v5779_v46 = vpop.eup %5778 }
 0xb64   : > { %v2733_v48 = vpack.c.bf16 %v2722_v56, %v2721_v8  ;;  %v2702_v10 = vmul.f32 %v7013_v15, %v2680_v41  ;;  %v2681_v54 = vmul.f32 %v5779_v46, %v6989_v7  ;;  %v2723_v37 = vadd.f32 %v7021_v1, %v2701_v58 }
 0xb65   : > { %v5781_v28 = vpop.eup %5780 }
 0xb66   : > { %5272 = vmatprep.mubr.bf16.mxu1 %v2733_v48  ;;  %v2724_v52 = vadd.f32 %v7021_v1, %v2702_v10  ;;  %v2682_v38 = vmul.f32 %v5781_v28, %v6994_v0  ;;  %v2703_v50 = vmul.f32 %v7013_v15, %v2681_v54 }
 0xb67   : > { %v5783_v57 = vpop.eup %5782 }
 0xb68   : > { %v2734_v26 = vpack.c.bf16 %v2724_v52, %v2723_v37  ;;  %v2704_v18 = vmul.f32 %v7013_v15, %v2682_v38  ;;  %v2683_v23 = vmul.f32 %v5783_v57, %v6999_v3  ;;  %v2725_v7 = vadd.f32 %v7021_v1, %v2703_v50  ;;  %v5616_v3 = vld [vmem:[#allocation5 + $0xf0] sm:$0xff]  }
 0xb69   : > { %v5785_v14 = vpop.eup %5784  ;;  %5292 = vmatprep.subr.bf16.mxu0 %v5616_v3 }
 0xb6a   : > { %5273 = vmatmul.mubr.bf16.gmra.mrb[56].mxu1 %v2734_v26  ;;  %v2726_v24 = vadd.f32 %v7021_v1, %v2704_v18  ;;  %v2684_v2 = vmul.f32 %v5785_v14, %v7004_v55  ;;  %v2705_v47 = vmul.f32 %v7013_v15, %v2683_v23  ;;  %5293 = vmatpush3.bf16.msra.mxu0 %v5616_v3  ;;  %v4737_v55 = vld [vmem:[%s7690_s6 + $0x3] ss:$0 sm:$0xff] }
 0xb6b   : > { %5294 = vmatprep.subr.bf16.mxu0 %v5617_v35 }
 0xb6c   : > { %v2735_v60 = vpack.c.bf16 %v2726_v24, %v2725_v7  ;;  %v2706_v0 = vmul.f32 %v7013_v15, %v2684_v2  ;;  %v2727_v11 = vadd.f32 %v7021_v1, %v2705_v47 }
 0xb6e   : > { %5276 = vmatprep.mubr.bf16.mxu1 %v2735_v60  ;;  %v2728_v45 = vadd.f32 %v7021_v1, %v2706_v0  ;;  %5295 = vmatpush3.bf16.msra.mxu0 %v5617_v35 }
 0xb70   : > { %v2736_v30 = vpack.c.bf16 %v2728_v45, %v2727_v11 }
 0xb72   : > { %5277 = vmatmul.mubr.bf16.gmra.mrb[60].mxu1 %v2736_v30 }
 0xc2d   : > { %v5266_v25 = vpop.f32.mrb[48].mxu1 }
 0xc2e   : > { %v2834_v4 = vadd.f32 %v5266_v25, %v4737_v55  ;;  %v2825_v15 = vpop.f32.mrb[49].mxu1 }
 0xc2f   : > { %v2826_v44 = vadd.f32 %v4737_v55, %v2825_v15  ;;  %v5267_v27 = vpop.f32.mrb[50].mxu1 }
 0xc30   : > { %v2837_v36 = vadd.f32 %v5267_v27, %v4737_v55  ;;  %v2828_v62 = vpop.f32.mrb[51].mxu1  ;;  %v2890_v29 = vmax.f32 %v2834_v4, 0.0 }
 0xc31   : > { %v2829_v1 = vadd.f32 %v4737_v55, %v2828_v62  ;;  %v2888_v61 = vmax.f32 %v2826_v44, 0.0 }
 0xc32   : > { %v2891_v39 = vmax.f32 %v2837_v36, 0.0 }
 0xc33   : > { %v2889_v31 = vmax.f32 %v2829_v1, 0.0 }
 0xc34   : > { %v2905_v51 = vpack.c.bf16 %v2891_v39, %v2890_v29  ;;  %v7074_v39 = vld [vmem:[%s7692_s8 + $0x3] ss:$0 sm:$0xff] }
 0xc35   : > { %v2904_v19 = vpack.c.bf16 %v2889_v31, %v2888_v61  ;;  %v5270_v12 = vpop.f32.mrb[52].mxu1 }
 0xc36   : > { %v2850_v13 = vadd.f32 %v5270_v12, %v4737_v55  ;;  %v2841_v42 = vpop.f32.mrb[53].mxu1 }
 0xc37   : > { %v2842_v33 = vadd.f32 %v4737_v55, %v2841_v42  ;;  %v5271_v8 = vpop.f32.mrb[54].mxu1  ;;  %5296 = vmatprep.mubr.bf16.mxu0 %v2904_v19 }
 0xc38   : > { %v2853_v56 = vadd.f32 %v5271_v8, %v4737_v55  ;;  %v2844_v41 = vpop.f32.mrb[55].mxu1  ;;  %5297 = vmatmul.mubr.bf16.vlgmr.msra.gmra.mrb[64].mxu0 %v2905_v51  ;;  %v2894_v46 = vmax.f32 %v2850_v13, 0.0 }
 0xc39   : > { %v2845_v58 = vadd.f32 %v4737_v55, %v2844_v41  ;;  %v2892_v10 = vmax.f32 %v2842_v33, 0.0 }
 0xc3a   : > { %v2895_v48 = vmax.f32 %v2853_v56, 0.0 }
 0xc3b   : > { %v2893_v54 = vmax.f32 %v2845_v58, 0.0 }
 0xc3c   : > { %v2907_v28 = vpack.c.bf16 %v2895_v48, %v2894_v46 }
 0xc3d   : > { %v2906_v37 = vpack.c.bf16 %v2893_v54, %v2892_v10  ;;  %v5274_v52 = vpop.f32.mrb[56].mxu1 }
 0xc3e   : > { %v2866_v38 = vadd.f32 %v5274_v52, %v4737_v55  ;;  %v2857_v50 = vpop.f32.mrb[57].mxu1 }
 0xc3f   : > { %v2858_v57 = vadd.f32 %v4737_v55, %v2857_v50  ;;  %v5275_v26 = vpop.f32.mrb[58].mxu1  ;;  %5300 = vmatprep.mubr.bf16.mxu0 %v2906_v37 }
 0xc40   : > { %v2869_v18 = vadd.f32 %v5275_v26, %v4737_v55  ;;  %v2860_v23 = vpop.f32.mrb[59].mxu1  ;;  %5301 = vmatmul.mubr.bf16.gmra.mrb[68].mxu0 %v2907_v28  ;;  %v2898_v7 = vmax.f32 %v2866_v38, 0.0 }
 0xc41   : > { %v2861_v14 = vadd.f32 %v4737_v55, %v2860_v23  ;;  %v2896_v2 = vmax.f32 %v2858_v57, 0.0 }
 0xc42   : > { %v2899_v24 = vmax.f32 %v2869_v18, 0.0 }
 0xc43   : > { %v2897_v47 = vmax.f32 %v2861_v14, 0.0 }
 0xc44   : > { %v2909_v60 = vpack.c.bf16 %v2899_v24, %v2898_v7 }
 0xc45   : > { %v2908_v0 = vpack.c.bf16 %v2897_v47, %v2896_v2  ;;  %v5278_v11 = vpop.f32.mrb[60].mxu1 }
 0xc46   : > { %v2882_v45 = vadd.f32 %v5278_v11, %v4737_v55  ;;  %v2873_v30 = vpop.f32.mrb[61].mxu1 }
 0xc47   : > { %v2874_v3 = vadd.f32 %v4737_v55, %v2873_v30  ;;  %v5279_v35 = vpop.f32.mrb[62].mxu1  ;;  %5304 = vmatprep.mubr.bf16.mxu0 %v2908_v0 }
 0xc48   : > { %v2885_v25 = vadd.f32 %v5279_v35, %v4737_v55  ;;  %v2876_v4 = vpop.f32.mrb[63].mxu1  ;;  %5305 = vmatmul.mubr.bf16.gmra.mrb[72].mxu0 %v2909_v60  ;;  %v2902_v44 = vmax.f32 %v2882_v45, 0.0 }
 0xc49   : > { %v2877_v15 = vadd.f32 %v4737_v55, %v2876_v4  ;;  %v2900_v36 = vmax.f32 %v2874_v3, 0.0 }
 0xc4a   : > { %v2903_v27 = vmax.f32 %v2885_v25, 0.0 }
 0xc4b   : > { %v2901_v62 = vmax.f32 %v2877_v15, 0.0 }
 0xc4c   : > { %v2911_v1 = vpack.c.bf16 %v2903_v27, %v2902_v44 }
 0xc4d   : > { %v2910_v29 = vpack.c.bf16 %v2901_v62, %v2900_v36 }
 0xc4f   : > { %5308 = vmatprep.mubr.bf16.mxu0 %v2910_v29 }
 0xc50   : > { %5309 = vmatmul.mubr.bf16.gmra.mrb[76].mxu0 %v2911_v1 }
 0xd0b   : > { %v5298_v61 = vpop.f32.mrb[64].mxu0 }
 0xd0c   : > { %v3000_v31 = vpop.f32.mrb[65].mxu0  ;;  %v3009_v51 = vadd.f32 %v5298_v61, %v7074_v39 }
 0xd0d   : > { %v3001_v19 = vadd.f32 %v7074_v39, %v3000_v31  ;;  %v5299_v55 = vpop.f32.mrb[66].mxu0 }
 0xd0e   : > { %v3003_v12 = vpop.f32.mrb[67].mxu0  ;;  %v3012_v42 = vadd.f32 %v5299_v55, %v7074_v39  ;;  %v3065_v8 = vmax.f32 %v3009_v51, 0.0 }
 0xd0f   : > { %v3063_v13 = vmax.f32 %v3001_v19, 0.0  ;;  %v3004_v33 = vadd.f32 %v7074_v39, %v3003_v12 }
 0xd10   : > { %v3066_v58 = vmax.f32 %v3012_v42, 0.0  ;;  %v7088_v54 = vadd.f32 %v3065_v8, %v6862_v53 }
 0xd11   : > { %v7081_v56 = vadd.f32 %v3063_v13, %v6855_v49  ;;  %v3064_v41 = vmax.f32 %v3004_v33, 0.0 }
 0xd12   : > { %v7094_v38 = vadd.f32 %v3066_v58, %v6868_v9 }
 0xd13   : > { %v7084_v46 = vadd.f32 %v3064_v41, %v6858_v17  ;;  %3137 = vadd.xlane.f32.xlu0 %v7081_v56  ;;  %v5302_v48 = vpop.f32.mrb[68].mxu0 }
 0xd14   : > { %v3016_v10 = vpop.f32.mrb[69].mxu0  ;;  %v3025_v28 = vadd.f32 %v5302_v48, %v7074_v39 }
 0xd15   : > { %v3017_v37 = vadd.f32 %v7074_v39, %v3016_v10  ;;  %3139 = vadd.xlane.f32.xlu1 %v7084_v46  ;;  %v5303_v49 = vpop.f32.mrb[70].mxu0 }
 0xd16   : > { %v3019_v52 = vpop.f32.mrb[71].mxu0  ;;  %v3028_v50 = vadd.f32 %v5303_v49, %v7074_v39  ;;  %v3069_v53 = vmax.f32 %v3025_v28, 0.0 }
 0xd17   : > { %v3067_v17 = vmax.f32 %v3017_v37, 0.0  ;;  %v3020_v57 = vadd.f32 %v7074_v39, %v3019_v52  ;;  %3141 = vadd.xlane.f32.xlu0 %v7088_v54 }
 0xd18   : > { %v3070_v23 = vmax.f32 %v3028_v50, 0.0  ;;  %v7108_v24 = vadd.f32 %v3069_v53, %v6882_v5 }
 0xd19   : > { %v7100_v26 = vadd.f32 %v3067_v17, %v6874_v6  ;;  %v3068_v18 = vmax.f32 %v3020_v57, 0.0  ;;  %3143 = vadd.xlane.f32.xlu1 %v7094_v38 }
 0xd1a   : > { %v7114_v0 = vadd.f32 %v3070_v23, %v6888_v20 }
 0xd1b   : > { %v7104_v14 = vadd.f32 %v3068_v18, %v6878_v63  ;;  %3145 = vadd.xlane.f32.xlu0 %v7100_v26  ;;  %v5306_v9 = vpop.f32.mrb[72].mxu0 }
 0xd1c   : > { %v3032_v7 = vpop.f32.mrb[73].mxu0  ;;  %v3041_v2 = vadd.f32 %v5306_v9, %v7074_v39 }
 0xd1d   : > { %v3033_v47 = vadd.f32 %v7074_v39, %v3032_v7  ;;  %3147 = vadd.xlane.f32.xlu1 %v7104_v14  ;;  %v5307_v6 = vpop.f32.mrb[74].mxu0 }
 0xd1e   : > { %v3035_v60 = vpop.f32.mrb[75].mxu0  ;;  %v3044_v11 = vadd.f32 %v5307_v6, %v7074_v39  ;;  %v3073_v5 = vmax.f32 %v3041_v2, 0.0 }
 0xd1f   : > { %v3071_v63 = vmax.f32 %v3033_v47, 0.0  ;;  %v3036_v45 = vadd.f32 %v7074_v39, %v3035_v60  ;;  %3149 = vadd.xlane.f32.xlu0 %v7108_v24 }
 0xd20   : > { %v3074_v35 = vmax.f32 %v3044_v11, 0.0  ;;  %v7128_v15 = vadd.f32 %v3073_v5, %v6902_v16 }
 0xd21   : > { %v7120_v30 = vadd.f32 %v3071_v63, %v6894_v43  ;;  %v3072_v3 = vmax.f32 %v3036_v45, 0.0  ;;  %3151 = vadd.xlane.f32.xlu1 %v7114_v0 }
 0xd22   : > { %v7134_v62 = vadd.f32 %v3074_v35, %v6908_v32 }
 0xd23   : > { %v7124_v25 = vadd.f32 %v3072_v3, %v6898_v34  ;;  %3153 = vadd.xlane.f32.xlu0 %v7120_v30  ;;  %v5310_v20 = vpop.f32.mrb[76].mxu0 }
 0xd24   : > { %v3048_v4 = vpop.f32.mrb[77].mxu0  ;;  %v3057_v44 = vadd.f32 %v5310_v20, %v7074_v39 }
 0xd25   : > { %v3049_v27 = vadd.f32 %v7074_v39, %v3048_v4  ;;  %3155 = vadd.xlane.f32.xlu1 %v7124_v25  ;;  %v5311_v43 = vpop.f32.mrb[78].mxu0 }
 0xd26   : > { %v3051_v36 = vpop.f32.mrb[79].mxu0  ;;  %v3060_v1 = vadd.f32 %v5311_v43, %v7074_v39  ;;  %v3077_v16 = vmax.f32 %v3057_v44, 0.0 }
 0xd27   : > { %v3075_v34 = vmax.f32 %v3049_v27, 0.0  ;;  %v3052_v29 = vadd.f32 %v7074_v39, %v3051_v36  ;;  %3157 = vadd.xlane.f32.xlu0 %v7128_v15 }
 0xd28   : > { %v3078_v51 = vmax.f32 %v3060_v1, 0.0  ;;  %v7148_v32 = vadd.f32 %v3077_v16, %v6922_v22  ;;  %v5619_v1 = vld [vmem:[#allocation2 + $0x108] sm:$0xff]  }
 0xd29   : > { %v7140_v61 = vadd.f32 %v3075_v34, %v6914_v59  ;;  %v3076_v31 = vmax.f32 %v3052_v29, 0.0  ;;  %3159 = vadd.xlane.f32.xlu1 %v7134_v62  ;;  %v5618_v59 = vld [vmem:[#allocation2 + $0x100] sm:$0xff]  }
 0xd2a   : > { %v7152_v39 = vadd.f32 %v3078_v51, %v6926_v40  ;;  %5312 = vmatprep.subr.bf16.mxu1 %v5618_v59 }
 0xd2b   : > { %v7144_v19 = vadd.f32 %v3076_v31, %v6918_v21  ;;  %3161 = vadd.xlane.f32.xlu0 %v7140_v61  ;;  %5313 = vmatpush3.bf16.msra.mxu1 %v5618_v59 }
 0xd2c   : > { %5314 = vmatprep.subr.bf16.mxu1 %v5619_v1 }
 0xd2d   : > { %3163 = vadd.xlane.f32.xlu1 %v7144_v19 }
 0xd2f   : > { %3165 = vadd.xlane.f32.xlu0 %v7148_v32  ;;  %5315 = vmatpush3.bf16.msra.mxu1 %v5619_v1 }
 0xd31   : > { %3167 = vadd.xlane.f32.xlu1 %v7152_v39 }
 0xda0   : > { %v3138_v55 = vpop.xlane.xlu0 %3137 }
 0xda1   : > { %v3169_v21 = vmul.f32 0.0078125, %v3138_v55 }
 0xda2   : > { %v3140_v12 = vpop.xlane.xlu1 %3139 }
 0xda3   : > { %v7157_v13 = vsub.f32 %v7081_v56, %v3169_v21  ;;  %v3170_v22 = vmul.f32 0.0078125, %v3140_v12 }
 0xda4   : > { %v3142_v42 = vpop.xlane.xlu0 %3141 }
 0xda5   : > { %v7160_v33 = vsub.f32 %v7084_v46, %v3170_v22  ;;  %v3171_v40 = vmul.f32 0.0078125, %v3142_v42  ;;  %v3201_v8 = vmul.f32 %v7157_v13, %v7157_v13  ;;  %v5620_v22 = vld [vmem:[#allocation2 + $0x110] sm:$0xff]  }
 0xda6   : > { %v3144_v41 = vpop.xlane.xlu1 %3143  ;;  %5316 = vmatprep.subr.bf16.mxu1 %v5620_v22 }
 0xda7   : > { %v7165_v58 = vsub.f32 %v7088_v54, %v3171_v40  ;;  %v3172_v48 = vmul.f32 0.0078125, %v3144_v41  ;;  %3217 = vadd.xlane.f32.xlu0 %v3201_v8  ;;  %v3202_v10 = vmul.f32 %v7160_v33, %v7160_v33  ;;  %5317 = vmatpush3.bf16.msra.mxu1 %v5620_v22 }
 0xda8   : > { %v3146_v28 = vpop.xlane.xlu0 %3145 }
 0xda9   : > { %v7170_v37 = vsub.f32 %v7094_v38, %v3172_v48  ;;  %v3173_v49 = vmul.f32 0.0078125, %v3146_v28  ;;  %3219 = vadd.xlane.f32.xlu1 %v3202_v10  ;;  %v3203_v52 = vmul.f32 %v7165_v58, %v7165_v58 }
 0xdaa   : > { %v3148_v17 = vpop.xlane.xlu1 %3147 }
 0xdab   : > { %v7175_v50 = vsub.f32 %v7100_v26, %v3173_v49  ;;  %v3174_v57 = vmul.f32 0.0078125, %v3148_v17  ;;  %3221 = vadd.xlane.f32.xlu0 %v3203_v52  ;;  %v3204_v53 = vmul.f32 %v7170_v37, %v7170_v37  ;;  %v5621_v52 = vld [vmem:[#allocation2 + $0x118] sm:$0xff]  }
 0xdac   : > { %v3150_v18 = vpop.xlane.xlu0 %3149  ;;  %5318 = vmatprep.subr.bf16.mxu1 %v5621_v52 }
 0xdad   : > { %v7180_v23 = vsub.f32 %v7104_v14, %v3174_v57  ;;  %v3175_v9 = vmul.f32 0.0078125, %v3150_v18  ;;  %3223 = vadd.xlane.f32.xlu1 %v3204_v53  ;;  %v3205_v7 = vmul.f32 %v7175_v50, %v7175_v50  ;;  %5319 = vmatpush3.bf16.msra.mxu1 %v5621_v52 }
 0xdae   : > { %v3152_v2 = vpop.xlane.xlu1 %3151 }
 0xdaf   : > { %v7185_v47 = vsub.f32 %v7108_v24, %v3175_v9  ;;  %v3176_v6 = vmul.f32 0.0078125, %v3152_v2  ;;  %3225 = vadd.xlane.f32.xlu0 %v3205_v7  ;;  %v3206_v60 = vmul.f32 %v7180_v23, %v7180_v23  ;;  %v5622_v7 = vld [vmem:[#allocation2 + $0x120] sm:$0xff]  }
 0xdb0   : > { %v3154_v63 = vpop.xlane.xlu0 %3153  ;;  %5320 = vmatprep.subr.bf16.mxu1 %v5622_v7 }
 0xdb1   : > { %v7190_v11 = vsub.f32 %v7114_v0, %v3176_v6  ;;  %v3177_v45 = vmul.f32 0.0078125, %v3154_v63  ;;  %3227 = vadd.xlane.f32.xlu1 %v3206_v60  ;;  %v3207_v5 = vmul.f32 %v7185_v47, %v7185_v47  ;;  %5321 = vmatpush3.bf16.msra.mxu1 %v5622_v7  ;;  %v5623_v6 = vld [vmem:[#allocation2 + $0x128] sm:$0xff]   ;;  %v5624_v60 = vld [vmem:[#allocation2 + $0x130] sm:$0xff]   ;;  %v5625_v63 = vld [vmem:[#allocation2 + $0x138] sm:$0xff]  }
 0xdb2   : > { %v3156_v3 = vpop.xlane.xlu1 %3155  ;;  %5322 = vmatprep.subr.bf16.mxu1 %v5623_v6 }
 0xdb3   : > { %v7195_v35 = vsub.f32 %v7120_v30, %v3177_v45  ;;  %v3178_v20 = vmul.f32 0.0078125, %v3156_v3  ;;  %3229 = vadd.xlane.f32.xlu0 %v3207_v5  ;;  %v3208_v4 = vmul.f32 %v7190_v11, %v7190_v11  ;;  %v5626_v45 = vld [vmem:[#allocation5 + $0x100] sm:$0xff]   ;;  %v5627_v5 = vld [vmem:[#allocation5 + $0x108] sm:$0xff]   ;;  %v5628_v3 = vld [vmem:[#allocation5 + $0x110] sm:$0xff]  }
 0xdb4   : > { %v3158_v44 = vpop.xlane.xlu0 %3157  ;;  %5344 = vmatprep.subr.bf16.mxu0 %v5626_v45 }
 0xdb5   : > { %v7200_v27 = vsub.f32 %v7124_v25, %v3178_v20  ;;  %v3179_v43 = vmul.f32 0.0078125, %v3158_v44  ;;  %3231 = vadd.xlane.f32.xlu1 %v3208_v4  ;;  %v3209_v36 = vmul.f32 %v7195_v35, %v7195_v35  ;;  %5323 = vmatpush3.bf16.msra.mxu1 %v5623_v6  ;;  %v5629_v20 = vld [vmem:[#allocation5 + $0x118] sm:$0xff]   ;;  %v5630_v4 = vld [vmem:[#allocation5 + $0x120] sm:$0xff]   ;;  %v5631_v44 = vld [vmem:[#allocation5 + $0x128] sm:$0xff]  }
 0xdb6   : > { %v3160_v34 = vpop.xlane.xlu1 %3159  ;;  %5324 = vmatprep.subr.bf16.mxu1 %v5624_v60  ;;  %5345 = vmatpush3.bf16.msra.mxu0 %v5626_v45 }
 0xdb7   : > { %v7205_v29 = vsub.f32 %v7128_v15, %v3179_v43  ;;  %v3180_v16 = vmul.f32 0.0078125, %v3160_v34  ;;  %3233 = vadd.xlane.f32.xlu0 %v3209_v36  ;;  %v3210_v31 = vmul.f32 %v7200_v27, %v7200_v27  ;;  %5346 = vmatprep.subr.bf16.mxu0 %v5627_v5 }
 0xdb8   : > { %v3162_v51 = vpop.xlane.xlu0 %3161 }
 0xdb9   : > { %v7210_v59 = vsub.f32 %v7134_v62, %v3180_v16  ;;  %v3181_v55 = vmul.f32 0.0078125, %v3162_v51  ;;  %3235 = vadd.xlane.f32.xlu1 %v3210_v31  ;;  %v3211_v21 = vmul.f32 %v7205_v29, %v7205_v29  ;;  %5325 = vmatpush3.bf16.msra.mxu1 %v5624_v60 }
 0xdba   : > { %v3164_v12 = vpop.xlane.xlu1 %3163  ;;  %5326 = vmatprep.subr.bf16.mxu1 %v5625_v63  ;;  %5347 = vmatpush3.bf16.msra.mxu0 %v5627_v5 }
 0xdbb   : > { %v7215_v42 = vsub.f32 %v7140_v61, %v3181_v55  ;;  %v3182_v40 = vmul.f32 0.0078125, %v3164_v12  ;;  %3237 = vadd.xlane.f32.xlu0 %v3211_v21  ;;  %v3212_v8 = vmul.f32 %v7210_v59, %v7210_v59  ;;  %5348 = vmatprep.subr.bf16.mxu0 %v5628_v3 }
 0xdbc   : > { %v3166_v41 = vpop.xlane.xlu0 %3165 }
 0xdbd   : > { %v7220_v48 = vsub.f32 %v7144_v19, %v3182_v40  ;;  %v3183_v10 = vmul.f32 0.0078125, %v3166_v41  ;;  %3239 = vadd.xlane.f32.xlu1 %v3212_v8  ;;  %v3213_v28 = vmul.f32 %v7215_v42, %v7215_v42  ;;  %5327 = vmatpush3.bf16.msra.mxu1 %v5625_v63 }
 0xdbe   : > { %v3168_v49 = vpop.xlane.xlu1 %3167  ;;  %5349 = vmatpush3.bf16.msra.mxu0 %v5628_v3 }
 0xdbf   : > { %v7225_v17 = vsub.f32 %v7148_v32, %v3183_v10  ;;  %v3184_v57 = vmul.f32 0.0078125, %v3168_v49  ;;  %3241 = vadd.xlane.f32.xlu0 %v3213_v28  ;;  %v3214_v53 = vmul.f32 %v7220_v48, %v7220_v48  ;;  %5350 = vmatprep.subr.bf16.mxu0 %v5629_v20 }
 0xdc1   : > { %v7230_v18 = vsub.f32 %v7152_v39, %v3184_v57  ;;  %3243 = vadd.xlane.f32.xlu1 %v3214_v53  ;;  %v3215_v9 = vmul.f32 %v7225_v17, %v7225_v17 }
 0xdc2   : > { %5351 = vmatpush3.bf16.msra.mxu0 %v5629_v20 }
 0xdc3   : > { %3245 = vadd.xlane.f32.xlu0 %v3215_v9  ;;  %v3216_v2 = vmul.f32 %v7230_v18, %v7230_v18  ;;  %5352 = vmatprep.subr.bf16.mxu0 %v5630_v4 }
 0xdc5   : > { %3247 = vadd.xlane.f32.xlu1 %v3216_v2  ;;  %v7239_v2 = vld [vmem:[%s7687_s3 + $0x4] ss:$0 sm:$0xff] }
 0xdc6   : > { %5353 = vmatpush3.bf16.msra.mxu0 %v5630_v4 }
 0xdc7   : > { %5354 = vmatprep.subr.bf16.mxu0 %v5631_v44 }
 0xdca   : > { %5355 = vmatpush3.bf16.msra.mxu0 %v5631_v44 }
 0xe34   : > { %v3218_v43 = vpop.xlane.xlu0 %3217 }
 0xe35   : > { %v3249_v36 = vmul.f32 0.0078125, %v3218_v43 }
 0xe36   : > { %v3220_v34 = vpop.xlane.xlu1 %3219 }
 0xe37   : > { %v3265_v1 = vadd.f32 1e-05, %v3249_v36  ;;  %v3250_v16 = vmul.f32 0.0078125, %v3220_v34 }
 0xe38   : > { %v3222_v31 = vpop.xlane.xlu0 %3221 }
 0xe39   : > { %5786 = vrsqrt.f32 %v3265_v1  ;;  %v3266_v51 = vadd.f32 1e-05, %v3250_v16  ;;  %v3251_v55 = vmul.f32 0.0078125, %v3222_v31  ;;  %v7247_v16 = vld [vmem:[%s7688_s4 + $0x4] ss:$0 sm:$0xff] }
 0xe3a   : > { %v3224_v21 = vpop.xlane.xlu1 %3223 }
 0xe3b   : > { %5788 = vrsqrt.f32 %v3266_v51  ;;  %v3267_v12 = vadd.f32 1e-05, %v3251_v55  ;;  %v3252_v22 = vmul.f32 0.0078125, %v3224_v21 }
 0xe3c   : > { %v3226_v40 = vpop.xlane.xlu0 %3225 }
 0xe3d   : > { %5790 = vrsqrt.f32 %v3267_v12  ;;  %v3268_v8 = vadd.f32 1e-05, %v3252_v22  ;;  %v3253_v41 = vmul.f32 0.0078125, %v3226_v40 }
 0xe3e   : > { %v3228_v10 = vpop.xlane.xlu1 %3227 }
 0xe3f   : > { %5792 = vrsqrt.f32 %v3268_v8  ;;  %v3269_v28 = vadd.f32 1e-05, %v3253_v41  ;;  %v3254_v49 = vmul.f32 0.0078125, %v3228_v10 }
 0xe40   : > { %v3230_v52 = vpop.xlane.xlu0 %3229 }
 0xe41   : > { %5794 = vrsqrt.f32 %v3269_v28  ;;  %v3270_v57 = vadd.f32 1e-05, %v3254_v49  ;;  %v3255_v53 = vmul.f32 0.0078125, %v3230_v52 }
 0xe42   : > { %v3232_v9 = vpop.xlane.xlu1 %3231 }
 0xe43   : > { %v5787_v7 = vpop.eup %5786  ;;  %5796 = vrsqrt.f32 %v3270_v57  ;;  %v3271_v6 = vadd.f32 1e-05, %v3255_v53  ;;  %v3256_v60 = vmul.f32 0.0078125, %v3232_v9 }
 0xe44   : > { %v3234_v63 = vpop.xlane.xlu0 %3233  ;;  %v3297_v45 = vmul.f32 %v5787_v7, %v7157_v13 }
 0xe45   : > { %v5789_v5 = vpop.eup %5788  ;;  %5798 = vrsqrt.f32 %v3271_v6  ;;  %v3272_v3 = vadd.f32 1e-05, %v3256_v60  ;;  %v3257_v20 = vmul.f32 0.0078125, %v3234_v63 }
 0xe46   : > { %v3236_v4 = vpop.xlane.xlu1 %3235  ;;  %v3298_v44 = vmul.f32 %v5789_v5, %v7160_v33  ;;  %v3319_v43 = vmul.f32 %v7239_v2, %v3297_v45 }
 0xe47   : > { %v5791_v36 = vpop.eup %5790  ;;  %5800 = vrsqrt.f32 %v3272_v3  ;;  %v3273_v34 = vadd.f32 1e-05, %v3257_v20  ;;  %v3258_v1 = vmul.f32 0.0078125, %v3236_v4 }
 0xe48   : > { %v3299_v13 = vmul.f32 %v5791_v36, %v7165_v58  ;;  %v3238_v31 = vpop.xlane.xlu0 %3237  ;;  %v3320_v51 = vmul.f32 %v7239_v2, %v3298_v44  ;;  %v3341_v8 = vadd.f32 %v7247_v16, %v3319_v43 }
 0xe49   : > { %v5793_v55 = vpop.eup %5792  ;;  %5802 = vrsqrt.f32 %v3273_v34  ;;  %v3274_v21 = vadd.f32 1e-05, %v3258_v1  ;;  %v3259_v33 = vmul.f32 0.0078125, %v3238_v31 }
 0xe4a   : > { %v3321_v12 = vmul.f32 %v7239_v2, %v3299_v13  ;;  %v3300_v22 = vmul.f32 %v5793_v55, %v7170_v37  ;;  %v3240_v40 = vpop.xlane.xlu1 %3239  ;;  %v3342_v41 = vadd.f32 %v7247_v16, %v3320_v51 }
 0xe4b   : > { %v5795_v10 = vpop.eup %5794  ;;  %5804 = vrsqrt.f32 %v3274_v21  ;;  %v3275_v28 = vadd.f32 1e-05, %v3259_v33  ;;  %v3260_v58 = vmul.f32 0.0078125, %v3240_v40 }
 0xe4c   : > { %v3322_v49 = vmul.f32 %v7239_v2, %v3300_v22  ;;  %v3242_v52 = vpop.xlane.xlu0 %3241  ;;  %v3357_v57 = vpack.c.bf16 %v3342_v41, %v3341_v8  ;;  %v3301_v53 = vmul.f32 %v5795_v10, %v7175_v50  ;;  %v3343_v60 = vadd.f32 %v7247_v16, %v3321_v12 }
 0xe4d   : > { %v5797_v9 = vpop.eup %5796  ;;  %5806 = vrsqrt.f32 %v3275_v28  ;;  %v3276_v7 = vadd.f32 1e-05, %v3260_v58  ;;  %v3261_v6 = vmul.f32 0.0078125, %v3242_v52 }
 0xe4e   : > { %v3244_v37 = vpop.xlane.xlu1 %3243  ;;  %5328 = vmatprep.mubr.bf16.mxu1 %v3357_v57  ;;  %v3344_v63 = vadd.f32 %v7247_v16, %v3322_v49  ;;  %v3302_v45 = vmul.f32 %v5797_v9, %v7180_v23  ;;  %v3323_v5 = vmul.f32 %v7239_v2, %v3301_v53 }
 0xe4f   : > { %v5799_v3 = vpop.eup %5798  ;;  %5808 = vrsqrt.f32 %v3276_v7  ;;  %v3277_v20 = vadd.f32 1e-05, %v3261_v6  ;;  %v3262_v4 = vmul.f32 0.0078125, %v3244_v37 }
 0xe50   : > { %v3246_v44 = vpop.xlane.xlu0 %3245  ;;  %v3358_v50 = vpack.c.bf16 %v3344_v63, %v3343_v60  ;;  %v3324_v43 = vmul.f32 %v7239_v2, %v3302_v45  ;;  %v3303_v36 = vmul.f32 %v5799_v3, %v7185_v47  ;;  %v3345_v23 = vadd.f32 %v7247_v16, %v3323_v5 }
 0xe51   : > { %v5801_v34 = vpop.eup %5800  ;;  %5810 = vrsqrt.f32 %v3277_v20  ;;  %v3278_v1 = vadd.f32 1e-05, %v3262_v4  ;;  %v3263_v13 = vmul.f32 0.0078125, %v3246_v44 }
 0xe52   : > { %v3248_v31 = vpop.xlane.xlu1 %3247  ;;  %5329 = vmatmul.mubr.bf16.vlgmr.msra.gmra.mrb[64].mxu1 %v3358_v50  ;;  %v3346_v51 = vadd.f32 %v7247_v16, %v3324_v43  ;;  %v3304_v55 = vmul.f32 %v5801_v34, %v7190_v11  ;;  %v3325_v21 = vmul.f32 %v7239_v2, %v3303_v36 }
 0xe53   : > { %v5803_v33 = vpop.eup %5802  ;;  %5812 = vrsqrt.f32 %v3278_v1  ;;  %v3279_v12 = vadd.f32 1e-05, %v3263_v13  ;;  %v3264_v22 = vmul.f32 0.0078125, %v3248_v31 }
 0xe54   : > { %v3359_v40 = vpack.c.bf16 %v3346_v51, %v3345_v23  ;;  %v3326_v47 = vmul.f32 %v7239_v2, %v3304_v55  ;;  %v3305_v8 = vmul.f32 %v5803_v33, %v7195_v35  ;;  %v3347_v28 = vadd.f32 %v7247_v16, %v3325_v21  ;;  %v5633_v33 = vld [vmem:[#allocation5 + $0x138] sm:$0xff]  }
 0xe55   : > { %v5805_v41 = vpop.eup %5804  ;;  %5814 = vrsqrt.f32 %v3279_v12  ;;  %v3280_v10 = vadd.f32 1e-05, %v3264_v22 }
 0xe56   : > { %5332 = vmatprep.mubr.bf16.mxu1 %v3359_v40  ;;  %v3348_v58 = vadd.f32 %v7247_v16, %v3326_v47  ;;  %v3306_v11 = vmul.f32 %v5805_v41, %v7200_v27  ;;  %v3327_v49 = vmul.f32 %v7239_v2, %v3305_v8 }
 0xe57   : > { %v5807_v52 = vpop.eup %5806  ;;  %5816 = vrsqrt.f32 %v3280_v10 }
 0xe58   : > { %v3360_v57 = vpack.c.bf16 %v3348_v58, %v3347_v28  ;;  %v3328_v53 = vmul.f32 %v7239_v2, %v3306_v11  ;;  %v3307_v9 = vmul.f32 %v5807_v52, %v7205_v29  ;;  %v3349_v7 = vadd.f32 %v7247_v16, %v3327_v49 }
 0xe59   : > { %v5809_v35 = vpop.eup %5808 }
 0xe5a   : > { %5333 = vmatmul.mubr.bf16.gmra.mrb[68].mxu1 %v3360_v57  ;;  %v3350_v6 = vadd.f32 %v7247_v16, %v3328_v53  ;;  %v3308_v37 = vmul.f32 %v5809_v35, %v7210_v59  ;;  %v3329_v60 = vmul.f32 %v7239_v2, %v3307_v9 }
 0xe5b   : > { %v5811_v27 = vpop.eup %5810 }
 0xe5c   : > { %v3361_v63 = vpack.c.bf16 %v3350_v6, %v3349_v7  ;;  %v3330_v45 = vmul.f32 %v7239_v2, %v3308_v37  ;;  %v3309_v5 = vmul.f32 %v5811_v27, %v7215_v42  ;;  %v3351_v29 = vadd.f32 %v7247_v16, %v3329_v60 }
 0xe5d   : > { %v5813_v3 = vpop.eup %5812 }
 0xe5e   : > { %5336 = vmatprep.mubr.bf16.mxu1 %v3361_v63  ;;  %v3352_v20 = vadd.f32 %v7247_v16, %v3330_v45  ;;  %v3310_v4 = vmul.f32 %v5813_v3, %v7220_v48  ;;  %v3331_v44 = vmul.f32 %v7239_v2, %v3309_v5 }
 0xe5f   : > { %v5815_v50 = vpop.eup %5814 }
 0xe60   : > { %v3362_v59 = vpack.c.bf16 %v3352_v20, %v3351_v29  ;;  %v3332_v43 = vmul.f32 %v7239_v2, %v3310_v4  ;;  %v3311_v36 = vmul.f32 %v5815_v50, %v7225_v17  ;;  %v3353_v42 = vadd.f32 %v7247_v16, %v3331_v44  ;;  %v5632_v17 = vld [vmem:[#allocation5 + $0x130] sm:$0xff]  }
 0xe61   : > { %v5817_v34 = vpop.eup %5816  ;;  %5356 = vmatprep.subr.bf16.mxu0 %v5632_v17 }
 0xe62   : > { %5337 = vmatmul.mubr.bf16.gmra.mrb[72].mxu1 %v3362_v59  ;;  %v3354_v1 = vadd.f32 %v7247_v16, %v3332_v43  ;;  %v3312_v13 = vmul.f32 %v5817_v34, %v7230_v18  ;;  %v3333_v31 = vmul.f32 %v7239_v2, %v3311_v36  ;;  %5357 = vmatpush3.bf16.msra.mxu0 %v5632_v17  ;;  %v4761_v18 = vld [vmem:[%s7690_s6 + $0x4] ss:$0 sm:$0xff] }
 0xe63   : > { %5358 = vmatprep.subr.bf16.mxu0 %v5633_v33 }
 0xe64   : > { %v3363_v23 = vpack.c.bf16 %v3354_v1, %v3353_v42  ;;  %v3334_v48 = vmul.f32 %v7239_v2, %v3312_v13  ;;  %v3355_v51 = vadd.f32 %v7247_v16, %v3333_v31 }
 0xe66   : > { %5340 = vmatprep.mubr.bf16.mxu1 %v3363_v23  ;;  %v3356_v55 = vadd.f32 %v7247_v16, %v3334_v48  ;;  %5359 = vmatpush3.bf16.msra.mxu0 %v5633_v33 }
 0xe68   : > { %v3364_v21 = vpack.c.bf16 %v3356_v55, %v3355_v51 }
 0xe6a   : > { %5341 = vmatmul.mubr.bf16.gmra.mrb[76].mxu1 %v3364_v21 }
 0xf25   : > { %v5330_v12 = vpop.f32.mrb[64].mxu1 }
 0xf26   : > { %v3462_v22 = vadd.f32 %v5330_v12, %v4761_v18  ;;  %v3453_v2 = vpop.f32.mrb[65].mxu1 }
 0xf27   : > { %v3454_v40 = vadd.f32 %v4761_v18, %v3453_v2  ;;  %v5331_v47 = vpop.f32.mrb[66].mxu1 }
 0xf28   : > { %v3465_v8 = vadd.f32 %v5331_v47, %v4761_v18  ;;  %v3456_v41 = vpop.f32.mrb[67].mxu1  ;;  %v3518_v10 = vmax.f32 %v3462_v22, 0.0 }
 0xf29   : > { %v3457_v16 = vadd.f32 %v4761_v18, %v3456_v41  ;;  %v3516_v58 = vmax.f32 %v3454_v40, 0.0 }
 0xf2a   : > { %v3519_v28 = vmax.f32 %v3465_v8, 0.0 }
 0xf2b   : > { %v3517_v11 = vmax.f32 %v3457_v16, 0.0 }
 0xf2c   : > { %v3533_v49 = vpack.c.bf16 %v3519_v28, %v3518_v10  ;;  %v7300_v28 = vld [vmem:[%s7692_s8 + $0x4] ss:$0 sm:$0xff] }
 0xf2d   : > { %v3532_v52 = vpack.c.bf16 %v3517_v11, %v3516_v58  ;;  %v5334_v57 = vpop.f32.mrb[68].mxu1 }
 0xf2e   : > { %v3478_v53 = vadd.f32 %v5334_v57, %v4761_v18  ;;  %v3469_v9 = vpop.f32.mrb[69].mxu1 }
 0xf2f   : > { %v3470_v35 = vadd.f32 %v4761_v18, %v3469_v9  ;;  %v5335_v7 = vpop.f32.mrb[70].mxu1  ;;  %5360 = vmatprep.mubr.bf16.mxu0 %v3532_v52 }
 0xf30   : > { %v3481_v6 = vadd.f32 %v5335_v7, %v4761_v18  ;;  %v3472_v37 = vpop.f32.mrb[71].mxu1  ;;  %5361 = vmatmul.mubr.bf16.vlgmr.msra.gmra.mrb[80].mxu0 %v3533_v49  ;;  %v3522_v27 = vmax.f32 %v3478_v53, 0.0 }
 0xf31   : > { %v3473_v60 = vadd.f32 %v4761_v18, %v3472_v37  ;;  %v3520_v45 = vmax.f32 %v3470_v35, 0.0 }
 0xf32   : > { %v3523_v63 = vmax.f32 %v3481_v6, 0.0 }
 0xf33   : > { %v3521_v5 = vmax.f32 %v3473_v60, 0.0 }
 0xf34   : > { %v3535_v3 = vpack.c.bf16 %v3523_v63, %v3522_v27 }
 0xf35   : > { %v3534_v29 = vpack.c.bf16 %v3521_v5, %v3520_v45  ;;  %v5338_v20 = vpop.f32.mrb[72].mxu1 }
 0xf36   : > { %v3494_v4 = vadd.f32 %v5338_v20, %v4761_v18  ;;  %v3485_v44 = vpop.f32.mrb[73].mxu1 }
 0xf37   : > { %v3486_v50 = vadd.f32 %v4761_v18, %v3485_v44  ;;  %v5339_v59 = vpop.f32.mrb[74].mxu1  ;;  %5364 = vmatprep.mubr.bf16.mxu0 %v3534_v29 }
 0xf38   : > { %v3497_v43 = vadd.f32 %v5339_v59, %v4761_v18  ;;  %v3488_v36 = vpop.f32.mrb[75].mxu1  ;;  %5365 = vmatmul.mubr.bf16.gmra.mrb[84].mxu0 %v3535_v3  ;;  %v3526_v42 = vmax.f32 %v3494_v4, 0.0 }
 0xf39   : > { %v3489_v34 = vadd.f32 %v4761_v18, %v3488_v36  ;;  %v3524_v13 = vmax.f32 %v3486_v50, 0.0 }
 0xf3a   : > { %v3527_v1 = vmax.f32 %v3497_v43, 0.0 }
 0xf3b   : > { %v3525_v31 = vmax.f32 %v3489_v34, 0.0 }
 0xf3c   : > { %v3537_v23 = vpack.c.bf16 %v3527_v1, %v3526_v42 }
 0xf3d   : > { %v3536_v48 = vpack.c.bf16 %v3525_v31, %v3524_v13  ;;  %v5342_v51 = vpop.f32.mrb[76].mxu1 }
 0xf3e   : > { %v3510_v55 = vadd.f32 %v5342_v51, %v4761_v18  ;;  %v3501_v21 = vpop.f32.mrb[77].mxu1 }
 0xf3f   : > { %v3502_v17 = vadd.f32 %v4761_v18, %v3501_v21  ;;  %v5343_v33 = vpop.f32.mrb[78].mxu1  ;;  %5368 = vmatprep.mubr.bf16.mxu0 %v3536_v48 }
 0xf40   : > { %v3513_v12 = vadd.f32 %v5343_v33, %v4761_v18  ;;  %v3504_v22 = vpop.f32.mrb[79].mxu1  ;;  %5369 = vmatmul.mubr.bf16.gmra.mrb[88].mxu0 %v3537_v23  ;;  %v3530_v40 = vmax.f32 %v3510_v55, 0.0 }
 0xf41   : > { %v3505_v2 = vadd.f32 %v4761_v18, %v3504_v22  ;;  %v3528_v8 = vmax.f32 %v3502_v17, 0.0 }
 0xf42   : > { %v3531_v47 = vmax.f32 %v3513_v12, 0.0 }
 0xf43   : > { %v3529_v41 = vmax.f32 %v3505_v2, 0.0 }
 0xf44   : > { %v3539_v16 = vpack.c.bf16 %v3531_v47, %v3530_v40 }
 0xf45   : > { %v3538_v10 = vpack.c.bf16 %v3529_v41, %v3528_v8 }
 0xf47   : > { %5372 = vmatprep.mubr.bf16.mxu0 %v3538_v10 }
 0xf48   : > { %5373 = vmatmul.mubr.bf16.gmra.mrb[92].mxu0 %v3539_v16 }
0x1003   : > { %v5362_v58 = vpop.f32.mrb[80].mxu0 }
0x1004   : > { %v3628_v11 = vpop.f32.mrb[81].mxu0  ;;  %v3637_v49 = vadd.f32 %v5362_v58, %v7300_v28 }
0x1005   : > { %v3629_v52 = vadd.f32 %v7300_v28, %v3628_v11  ;;  %v5363_v18 = vpop.f32.mrb[82].mxu0 }
0x1006   : > { %v3631_v57 = vpop.f32.mrb[83].mxu0  ;;  %v3640_v9 = vadd.f32 %v5363_v18, %v7300_v28  ;;  %v3693_v7 = vmax.f32 %v3637_v49, 0.0 }
0x1007   : > { %v3691_v53 = vmax.f32 %v3629_v52, 0.0  ;;  %v3632_v35 = vadd.f32 %v7300_v28, %v3631_v57 }
0x1008   : > { %v3694_v60 = vmax.f32 %v3640_v9, 0.0  ;;  %v7314_v5 = vadd.f32 %v3693_v7, %v7088_v54 }
0x1009   : > { %v7307_v6 = vadd.f32 %v3691_v53, %v7081_v56  ;;  %v3692_v37 = vmax.f32 %v3632_v35, 0.0 }
0x100a   : > { %v7320_v4 = vadd.f32 %v3694_v60, %v7094_v38 }
0x100b   : > { %v7310_v27 = vadd.f32 %v3692_v37, %v7084_v46  ;;  %3765 = vadd.xlane.f32.xlu0 %v7307_v6  ;;  %v5366_v63 = vpop.f32.mrb[84].mxu0 }
0x100c   : > { %v3644_v45 = vpop.f32.mrb[85].mxu0  ;;  %v3653_v3 = vadd.f32 %v5366_v63, %v7300_v28 }
0x100d   : > { %v3645_v29 = vadd.f32 %v7300_v28, %v3644_v45  ;;  %3767 = vadd.xlane.f32.xlu1 %v7310_v27  ;;  %v5367_v56 = vpop.f32.mrb[86].mxu0 }
0x100e   : > { %v3647_v20 = vpop.f32.mrb[87].mxu0  ;;  %v3656_v44 = vadd.f32 %v5367_v56, %v7300_v28  ;;  %v3697_v54 = vmax.f32 %v3653_v3, 0.0 }
0x100f   : > { %v3695_v46 = vmax.f32 %v3645_v29, 0.0  ;;  %v3648_v50 = vadd.f32 %v7300_v28, %v3647_v20  ;;  %3769 = vadd.xlane.f32.xlu0 %v7314_v5 }
0x1010   : > { %v3698_v36 = vmax.f32 %v3656_v44, 0.0  ;;  %v7334_v1 = vadd.f32 %v3697_v54, %v7108_v24 }
0x1011   : > { %v7326_v59 = vadd.f32 %v3695_v46, %v7100_v26  ;;  %v3696_v43 = vmax.f32 %v3648_v50, 0.0  ;;  %3771 = vadd.xlane.f32.xlu1 %v7320_v4 }
0x1012   : > { %v7340_v48 = vadd.f32 %v3698_v36, %v7114_v0 }
0x1013   : > { %v7330_v34 = vadd.f32 %v3696_v43, %v7104_v14  ;;  %3773 = vadd.xlane.f32.xlu0 %v7326_v59  ;;  %v5370_v38 = vpop.f32.mrb[88].mxu0 }
0x1014   : > { %v3660_v42 = vpop.f32.mrb[89].mxu0  ;;  %v3669_v13 = vadd.f32 %v5370_v38, %v7300_v28 }
0x1015   : > { %v3661_v31 = vadd.f32 %v7300_v28, %v3660_v42  ;;  %3775 = vadd.xlane.f32.xlu1 %v7330_v34  ;;  %v5371_v26 = vpop.f32.mrb[90].mxu0 }
0x1016   : > { %v3663_v23 = vpop.f32.mrb[91].mxu0  ;;  %v3672_v51 = vadd.f32 %v5371_v26, %v7300_v28  ;;  %v3701_v24 = vmax.f32 %v3669_v13, 0.0 }
0x1017   : > { %v3699_v14 = vmax.f32 %v3661_v31, 0.0  ;;  %v3664_v55 = vadd.f32 %v7300_v28, %v3663_v23  ;;  %3777 = vadd.xlane.f32.xlu0 %v7334_v1 }
0x1018   : > { %v3702_v33 = vmax.f32 %v3672_v51, 0.0  ;;  %v7354_v2 = vadd.f32 %v3701_v24, %v7128_v15 }
0x1019   : > { %v7346_v21 = vadd.f32 %v3699_v14, %v7120_v30  ;;  %v3700_v17 = vmax.f32 %v3664_v55, 0.0  ;;  %3779 = vadd.xlane.f32.xlu1 %v7340_v48 }
0x101a   : > { %v7360_v41 = vadd.f32 %v3702_v33, %v7134_v62 }
0x101b   : > { %v7350_v12 = vadd.f32 %v3700_v17, %v7124_v25  ;;  %3781 = vadd.xlane.f32.xlu0 %v7346_v21  ;;  %v5374_v0 = vpop.f32.mrb[92].mxu0 }
0x101c   : > { %v3676_v22 = vpop.f32.mrb[93].mxu0  ;;  %v3685_v40 = vadd.f32 %v5374_v0, %v7300_v28 }
0x101d   : > { %v3677_v47 = vadd.f32 %v7300_v28, %v3676_v22  ;;  %3783 = vadd.xlane.f32.xlu1 %v7350_v12  ;;  %v5375_v30 = vpop.f32.mrb[94].mxu0 }
0x101e   : > { %v3679_v8 = vpop.f32.mrb[95].mxu0  ;;  %v3688_v16 = vadd.f32 %v5375_v30, %v7300_v28  ;;  %v3705_v15 = vmax.f32 %v3685_v40, 0.0 }
0x101f   : > { %v3703_v25 = vmax.f32 %v3677_v47, 0.0  ;;  %v3680_v10 = vadd.f32 %v7300_v28, %v3679_v8  ;;  %3785 = vadd.xlane.f32.xlu0 %v7354_v2 }
0x1020   : > { %v3706_v49 = vmax.f32 %v3688_v16, 0.0  ;;  %v7374_v62 = vadd.f32 %v3705_v15, %v7148_v32  ;;  %v5635_v16 = vld [vmem:[#allocation2 + $0x148] sm:$0xff]  }
0x1021   : > { %v7366_v58 = vadd.f32 %v3703_v25, %v7140_v61  ;;  %v3704_v11 = vmax.f32 %v3680_v10, 0.0  ;;  %3787 = vadd.xlane.f32.xlu1 %v7360_v41  ;;  %v5634_v61 = vld [vmem:[#allocation2 + $0x140] sm:$0xff]  }
0x1022   : > { %v7378_v28 = vadd.f32 %v3706_v49, %v7152_v39  ;;  %5376 = vmatprep.subr.bf16.mxu1 %v5634_v61 }
0x1023   : > { %v7370_v52 = vadd.f32 %v3704_v11, %v7144_v19  ;;  %3789 = vadd.xlane.f32.xlu0 %v7366_v58  ;;  %5377 = vmatpush3.bf16.msra.mxu1 %v5634_v61 }
0x1024   : > { %5378 = vmatprep.subr.bf16.mxu1 %v5635_v16 }
0x1025   : > { %3791 = vadd.xlane.f32.xlu1 %v7370_v52 }
0x1027   : > { %3793 = vadd.xlane.f32.xlu0 %v7374_v62  ;;  %5379 = vmatpush3.bf16.msra.mxu1 %v5635_v16 }
0x1029   : > { %3795 = vadd.xlane.f32.xlu1 %v7378_v28 }
0x1098   : > { %v3766_v18 = vpop.xlane.xlu0 %3765 }
0x1099   : > { %v3797_v19 = vmul.f32 0.0078125, %v3766_v18 }
0x109a   : > { %v3768_v57 = vpop.xlane.xlu1 %3767 }
0x109b   : > { %v7383_v53 = vsub.f32 %v7307_v6, %v3797_v19  ;;  %v3798_v32 = vmul.f32 0.0078125, %v3768_v57 }
0x109c   : > { %v3770_v9 = vpop.xlane.xlu0 %3769 }
0x109d   : > { %v7386_v35 = vsub.f32 %v7310_v27, %v3798_v32  ;;  %v3799_v39 = vmul.f32 0.0078125, %v3770_v9  ;;  %v3829_v7 = vmul.f32 %v7383_v53, %v7383_v53  ;;  %v5636_v32 = vld [vmem:[#allocation2 + $0x150] sm:$0xff]  }
0x109e   : > { %v3772_v37 = vpop.xlane.xlu1 %3771  ;;  %5380 = vmatprep.subr.bf16.mxu1 %v5636_v32 }
0x109f   : > { %v7391_v60 = vsub.f32 %v7314_v5, %v3799_v39  ;;  %v3800_v63 = vmul.f32 0.0078125, %v3772_v37  ;;  %3845 = vadd.xlane.f32.xlu0 %v3829_v7  ;;  %v3830_v45 = vmul.f32 %v7386_v35, %v7386_v35  ;;  %5381 = vmatpush3.bf16.msra.mxu1 %v5636_v32 }
0x10a0   : > { %v3774_v3 = vpop.xlane.xlu0 %3773 }
0x10a1   : > { %v7396_v29 = vsub.f32 %v7320_v4, %v3800_v63  ;;  %v3801_v56 = vmul.f32 0.0078125, %v3774_v3  ;;  %3847 = vadd.xlane.f32.xlu1 %v3830_v45  ;;  %v3831_v20 = vmul.f32 %v7391_v60, %v7391_v60 }
0x10a2   : > { %v3776_v46 = vpop.xlane.xlu1 %3775 }
0x10a3   : > { %v7401_v44 = vsub.f32 %v7326_v59, %v3801_v56  ;;  %v3802_v50 = vmul.f32 0.0078125, %v3776_v46  ;;  %3849 = vadd.xlane.f32.xlu0 %v3831_v20  ;;  %v3832_v54 = vmul.f32 %v7396_v29, %v7396_v29  ;;  %v5637_v20 = vld [vmem:[#allocation2 + $0x158] sm:$0xff]  }
0x10a4   : > { %v3778_v43 = vpop.xlane.xlu0 %3777  ;;  %5382 = vmatprep.subr.bf16.mxu1 %v5637_v20 }
0x10a5   : > { %v7406_v36 = vsub.f32 %v7330_v34, %v3802_v50  ;;  %v3803_v38 = vmul.f32 0.0078125, %v3778_v43  ;;  %3851 = vadd.xlane.f32.xlu1 %v3832_v54  ;;  %v3833_v42 = vmul.f32 %v7401_v44, %v7401_v44  ;;  %5383 = vmatpush3.bf16.msra.mxu1 %v5637_v20 }
0x10a6   : > { %v3780_v13 = vpop.xlane.xlu1 %3779 }
0x10a7   : > { %v7411_v31 = vsub.f32 %v7334_v1, %v3803_v38  ;;  %v3804_v26 = vmul.f32 0.0078125, %v3780_v13  ;;  %3853 = vadd.xlane.f32.xlu0 %v3833_v42  ;;  %v3834_v23 = vmul.f32 %v7406_v36, %v7406_v36  ;;  %v5638_v42 = vld [vmem:[#allocation2 + $0x160] sm:$0xff]  }
0x10a8   : > { %v3782_v14 = vpop.xlane.xlu0 %3781  ;;  %5384 = vmatprep.subr.bf16.mxu1 %v5638_v42 }
0x10a9   : > { %v7416_v51 = vsub.f32 %v7340_v48, %v3804_v26  ;;  %v3805_v55 = vmul.f32 0.0078125, %v3782_v14  ;;  %3855 = vadd.xlane.f32.xlu1 %v3834_v23  ;;  %v3835_v24 = vmul.f32 %v7411_v31, %v7411_v31  ;;  %5385 = vmatpush3.bf16.msra.mxu1 %v5638_v42  ;;  %v5639_v26 = vld [vmem:[#allocation2 + $0x168] sm:$0xff]   ;;  %v5640_v23 = vld [vmem:[#allocation2 + $0x170] sm:$0xff]   ;;  %v5641_v14 = vld [vmem:[#allocation2 + $0x178] sm:$0xff]  }
0x10aa   : > { %v3784_v17 = vpop.xlane.xlu1 %3783  ;;  %5386 = vmatprep.subr.bf16.mxu1 %v5639_v26 }
0x10ab   : > { %v7421_v33 = vsub.f32 %v7346_v21, %v3805_v55  ;;  %v3806_v0 = vmul.f32 0.0078125, %v3784_v17  ;;  %3857 = vadd.xlane.f32.xlu0 %v3835_v24  ;;  %v3836_v22 = vmul.f32 %v7416_v51, %v7416_v51  ;;  %v5642_v55 = vld [vmem:[#allocation5 + $0x140] sm:$0xff]   ;;  %v5643_v24 = vld [vmem:[#allocation5 + $0x148] sm:$0xff]   ;;  %v5644_v17 = vld [vmem:[#allocation5 + $0x150] sm:$0xff]  }
0x10ac   : > { %v3786_v40 = vpop.xlane.xlu0 %3785  ;;  %5408 = vmatprep.subr.bf16.mxu0 %v5642_v55 }
0x10ad   : > { %v7426_v47 = vsub.f32 %v7350_v12, %v3806_v0  ;;  %v3807_v30 = vmul.f32 0.0078125, %v3786_v40  ;;  %3859 = vadd.xlane.f32.xlu1 %v3836_v22  ;;  %v3837_v8 = vmul.f32 %v7421_v33, %v7421_v33  ;;  %5387 = vmatpush3.bf16.msra.mxu1 %v5639_v26  ;;  %v5645_v0 = vld [vmem:[#allocation5 + $0x158] sm:$0xff]   ;;  %v5646_v22 = vld [vmem:[#allocation5 + $0x160] sm:$0xff]   ;;  %v5647_v40 = vld [vmem:[#allocation5 + $0x168] sm:$0xff]  }
0x10ae   : > { %v3788_v25 = vpop.xlane.xlu1 %3787  ;;  %5388 = vmatprep.subr.bf16.mxu1 %v5640_v23  ;;  %5409 = vmatpush3.bf16.msra.mxu0 %v5642_v55 }
0x10af   : > { %v7431_v10 = vsub.f32 %v7354_v2, %v3807_v30  ;;  %v3808_v15 = vmul.f32 0.0078125, %v3788_v25  ;;  %3861 = vadd.xlane.f32.xlu0 %v3837_v8  ;;  %v3838_v11 = vmul.f32 %v7426_v47, %v7426_v47  ;;  %5410 = vmatprep.subr.bf16.mxu0 %v5643_v24 }
0x10b0   : > { %v3790_v49 = vpop.xlane.xlu0 %3789 }
0x10b1   : > { %v7436_v61 = vsub.f32 %v7360_v41, %v3808_v15  ;;  %v3809_v18 = vmul.f32 0.0078125, %v3790_v49  ;;  %3863 = vadd.xlane.f32.xlu1 %v3838_v11  ;;  %v3839_v19 = vmul.f32 %v7431_v10, %v7431_v10  ;;  %5389 = vmatpush3.bf16.msra.mxu1 %v5640_v23 }
0x10b2   : > { %v3792_v57 = vpop.xlane.xlu1 %3791  ;;  %5390 = vmatprep.subr.bf16.mxu1 %v5641_v14  ;;  %5411 = vmatpush3.bf16.msra.mxu0 %v5643_v24 }
0x10b3   : > { %v7441_v9 = vsub.f32 %v7366_v58, %v3809_v18  ;;  %v3810_v39 = vmul.f32 0.0078125, %v3792_v57  ;;  %3865 = vadd.xlane.f32.xlu0 %v3839_v19  ;;  %v3840_v7 = vmul.f32 %v7436_v61, %v7436_v61  ;;  %5412 = vmatprep.subr.bf16.mxu0 %v5644_v17 }
0x10b4   : > { %v3794_v37 = vpop.xlane.xlu0 %3793 }
0x10b5   : > { %v7446_v63 = vsub.f32 %v7370_v52, %v3810_v39  ;;  %v3811_v45 = vmul.f32 0.0078125, %v3794_v37  ;;  %3867 = vadd.xlane.f32.xlu1 %v3840_v7  ;;  %v3841_v3 = vmul.f32 %v7441_v9, %v7441_v9  ;;  %5391 = vmatpush3.bf16.msra.mxu1 %v5641_v14 }
0x10b6   : > { %v3796_v56 = vpop.xlane.xlu1 %3795  ;;  %5413 = vmatpush3.bf16.msra.mxu0 %v5644_v17 }
0x10b7   : > { %v7451_v46 = vsub.f32 %v7374_v62, %v3811_v45  ;;  %v3812_v50 = vmul.f32 0.0078125, %v3796_v56  ;;  %3869 = vadd.xlane.f32.xlu0 %v3841_v3  ;;  %v3842_v54 = vmul.f32 %v7446_v63, %v7446_v63  ;;  %5414 = vmatprep.subr.bf16.mxu0 %v5645_v0 }
0x10b9   : > { %v7456_v43 = vsub.f32 %v7378_v28, %v3812_v50  ;;  %3871 = vadd.xlane.f32.xlu1 %v3842_v54  ;;  %v3843_v38 = vmul.f32 %v7451_v46, %v7451_v46 }
0x10ba   : > { %5415 = vmatpush3.bf16.msra.mxu0 %v5645_v0 }
0x10bb   : > { %3873 = vadd.xlane.f32.xlu0 %v3843_v38  ;;  %v3844_v13 = vmul.f32 %v7456_v43, %v7456_v43  ;;  %5416 = vmatprep.subr.bf16.mxu0 %v5646_v22 }
0x10bd   : > { %3875 = vadd.xlane.f32.xlu1 %v3844_v13  ;;  %v7465_v13 = vld [vmem:[%s7687_s3 + $0x5] ss:$0 sm:$0xff] }
0x10be   : > { %5417 = vmatpush3.bf16.msra.mxu0 %v5646_v22 }
0x10bf   : > { %5418 = vmatprep.subr.bf16.mxu0 %v5647_v40 }
0x10c2   : > { %5419 = vmatpush3.bf16.msra.mxu0 %v5647_v40 }
0x112c   : > { %v3846_v30 = vpop.xlane.xlu0 %3845 }
0x112d   : > { %v3877_v8 = vmul.f32 0.0078125, %v3846_v30 }
0x112e   : > { %v3848_v25 = vpop.xlane.xlu1 %3847 }
0x112f   : > { %v3893_v16 = vadd.f32 1e-05, %v3877_v8  ;;  %v3878_v15 = vmul.f32 0.0078125, %v3848_v25 }
0x1130   : > { %v3850_v11 = vpop.xlane.xlu0 %3849 }
0x1131   : > { %5818 = vrsqrt.f32 %v3893_v16  ;;  %v3894_v49 = vadd.f32 1e-05, %v3878_v15  ;;  %v3879_v18 = vmul.f32 0.0078125, %v3850_v11  ;;  %v7473_v15 = vld [vmem:[%s7688_s4 + $0x5] ss:$0 sm:$0xff] }
0x1132   : > { %v3852_v19 = vpop.xlane.xlu1 %3851 }
0x1133   : > { %5820 = vrsqrt.f32 %v3894_v49  ;;  %v3895_v57 = vadd.f32 1e-05, %v3879_v18  ;;  %v3880_v32 = vmul.f32 0.0078125, %v3852_v19 }
0x1134   : > { %v3854_v39 = vpop.xlane.xlu0 %3853 }
0x1135   : > { %5822 = vrsqrt.f32 %v3895_v57  ;;  %v3896_v7 = vadd.f32 1e-05, %v3880_v32  ;;  %v3881_v37 = vmul.f32 0.0078125, %v3854_v39 }
0x1136   : > { %v3856_v45 = vpop.xlane.xlu1 %3855 }
0x1137   : > { %5824 = vrsqrt.f32 %v3896_v7  ;;  %v3897_v3 = vadd.f32 1e-05, %v3881_v37  ;;  %v3882_v56 = vmul.f32 0.0078125, %v3856_v45 }
0x1138   : > { %v3858_v20 = vpop.xlane.xlu0 %3857 }
0x1139   : > { %5826 = vrsqrt.f32 %v3897_v3  ;;  %v3898_v50 = vadd.f32 1e-05, %v3882_v56  ;;  %v3883_v54 = vmul.f32 0.0078125, %v3858_v20 }
0x113a   : > { %v3860_v38 = vpop.xlane.xlu1 %3859 }
0x113b   : > { %v5819_v42 = vpop.eup %5818  ;;  %5828 = vrsqrt.f32 %v3898_v50  ;;  %v3899_v26 = vadd.f32 1e-05, %v3883_v54  ;;  %v3884_v23 = vmul.f32 0.0078125, %v3860_v38 }
0x113c   : > { %v3862_v14 = vpop.xlane.xlu0 %3861  ;;  %v3925_v55 = vmul.f32 %v5819_v42, %v7383_v53 }
0x113d   : > { %v5821_v24 = vpop.eup %5820  ;;  %5830 = vrsqrt.f32 %v3899_v26  ;;  %v3900_v17 = vadd.f32 1e-05, %v3884_v23  ;;  %v3885_v0 = vmul.f32 0.0078125, %v3862_v14 }
0x113e   : > { %v3864_v22 = vpop.xlane.xlu1 %3863  ;;  %v3926_v40 = vmul.f32 %v5821_v24, %v7386_v35  ;;  %v3947_v30 = vmul.f32 %v7465_v13, %v3925_v55 }
0x113f   : > { %v5823_v8 = vpop.eup %5822  ;;  %5832 = vrsqrt.f32 %v3900_v17  ;;  %v3901_v25 = vadd.f32 1e-05, %v3885_v0  ;;  %v3886_v16 = vmul.f32 0.0078125, %v3864_v22 }
0x1140   : > { %v3927_v53 = vmul.f32 %v5823_v8, %v7391_v60  ;;  %v3866_v11 = vpop.xlane.xlu0 %3865  ;;  %v3948_v49 = vmul.f32 %v7465_v13, %v3926_v40  ;;  %v3969_v7 = vadd.f32 %v7473_v15, %v3947_v30 }
0x1141   : > { %v5825_v18 = vpop.eup %5824  ;;  %5834 = vrsqrt.f32 %v3901_v25  ;;  %v3902_v19 = vadd.f32 1e-05, %v3886_v16  ;;  %v3887_v35 = vmul.f32 0.0078125, %v3866_v11 }
0x1142   : > { %v3949_v57 = vmul.f32 %v7465_v13, %v3927_v53  ;;  %v3928_v32 = vmul.f32 %v5825_v18, %v7396_v29  ;;  %v3868_v39 = vpop.xlane.xlu1 %3867  ;;  %v3970_v37 = vadd.f32 %v7473_v15, %v3948_v49 }
0x1143   : > { %v5827_v45 = vpop.eup %5826  ;;  %5836 = vrsqrt.f32 %v3902_v19  ;;  %v3903_v3 = vadd.f32 1e-05, %v3887_v35  ;;  %v3888_v60 = vmul.f32 0.0078125, %v3868_v39 }
0x1144   : > { %v3950_v56 = vmul.f32 %v7465_v13, %v3928_v32  ;;  %v3870_v20 = vpop.xlane.xlu0 %3869  ;;  %v3985_v50 = vpack.c.bf16 %v3970_v37, %v3969_v7  ;;  %v3929_v54 = vmul.f32 %v5827_v45, %v7401_v44  ;;  %v3971_v23 = vadd.f32 %v7473_v15, %v3949_v57 }
0x1145   : > { %v5829_v38 = vpop.eup %5828  ;;  %5838 = vrsqrt.f32 %v3903_v3  ;;  %v3904_v42 = vadd.f32 1e-05, %v3888_v60  ;;  %v3889_v26 = vmul.f32 0.0078125, %v3870_v20 }
0x1146   : > { %v3872_v29 = vpop.xlane.xlu1 %3871  ;;  %5392 = vmatprep.mubr.bf16.mxu1 %v3985_v50  ;;  %v3972_v14 = vadd.f32 %v7473_v15, %v3950_v56  ;;  %v3930_v55 = vmul.f32 %v5829_v38, %v7406_v36  ;;  %v3951_v24 = vmul.f32 %v7465_v13, %v3929_v54 }
0x1147   : > { %v5831_v17 = vpop.eup %5830  ;;  %5840 = vrsqrt.f32 %v3904_v42  ;;  %v3905_v0 = vadd.f32 1e-05, %v3889_v26  ;;  %v3890_v22 = vmul.f32 0.0078125, %v3872_v29 }
0x1148   : > { %v3874_v40 = vpop.xlane.xlu0 %3873  ;;  %v3986_v44 = vpack.c.bf16 %v3972_v14, %v3971_v23  ;;  %v3952_v30 = vmul.f32 %v7465_v13, %v3930_v55  ;;  %v3931_v8 = vmul.f32 %v5831_v17, %v7411_v31  ;;  %v3973_v36 = vadd.f32 %v7473_v15, %v3951_v24 }
0x1149   : > { %v5833_v25 = vpop.eup %5832  ;;  %5842 = vrsqrt.f32 %v3905_v0  ;;  %v3906_v16 = vadd.f32 1e-05, %v3890_v22  ;;  %v3891_v53 = vmul.f32 0.0078125, %v3874_v40 }
0x114a   : > { %v3876_v11 = vpop.xlane.xlu1 %3875  ;;  %5393 = vmatmul.mubr.bf16.vlgmr.msra.gmra.mrb[80].mxu1 %v3986_v44  ;;  %v3974_v49 = vadd.f32 %v7473_v15, %v3952_v30  ;;  %v3932_v18 = vmul.f32 %v5833_v25, %v7416_v51  ;;  %v3953_v19 = vmul.f32 %v7465_v13, %v3931_v8 }
0x114b   : > { %v5835_v35 = vpop.eup %5834  ;;  %5844 = vrsqrt.f32 %v3906_v16  ;;  %v3907_v57 = vadd.f32 1e-05, %v3891_v53  ;;  %v3892_v32 = vmul.f32 0.0078125, %v3876_v11 }
0x114c   : > { %v3987_v39 = vpack.c.bf16 %v3974_v49, %v3973_v36  ;;  %v3954_v31 = vmul.f32 %v7465_v13, %v3932_v18  ;;  %v3933_v7 = vmul.f32 %v5835_v35, %v7421_v33  ;;  %v3975_v3 = vadd.f32 %v7473_v15, %v3953_v19  ;;  %v5649_v35 = vld [vmem:[#allocation5 + $0x178] sm:$0xff]  }
0x114d   : > { %v5837_v37 = vpop.eup %5836  ;;  %5846 = vrsqrt.f32 %v3907_v57  ;;  %v3908_v45 = vadd.f32 1e-05, %v3892_v32  ;;  %v5653_v57 = vld [vmem:[%s7693_s9 + $0x18] sm:$0xff]   ;;  %v7535_v32 = vld [vmem:[%s7693_s9 + $0x20] sm:$0xff]  }
0x114e   : > { %5396 = vmatprep.mubr.bf16.mxu1 %v3987_v39  ;;  %v3976_v60 = vadd.f32 %v7473_v15, %v3954_v31  ;;  %v3934_v51 = vmul.f32 %v5837_v37, %v7426_v47  ;;  %v3955_v56 = vmul.f32 %v7465_v13, %v3933_v7  ;;  %v7542_v39 = vld [vmem:[%s7690_s6 + $0x5] ss:$0 sm:$0xff] }
0x114f   : > { %v5839_v20 = vpop.eup %5838  ;;  %5848 = vrsqrt.f32 %v3908_v45 }
0x1150   : > { %v3988_v50 = vpack.c.bf16 %v3976_v60, %v3975_v3  ;;  %v3956_v54 = vmul.f32 %v7465_v13, %v3934_v51  ;;  %v3935_v38 = vmul.f32 %v5839_v20, %v7431_v10  ;;  %v3977_v42 = vadd.f32 %v7473_v15, %v3955_v56 }
0x1151   : > { %v5841_v33 = vpop.eup %5840 }
0x1152   : > { %5397 = vmatmul.mubr.bf16.gmra.mrb[84].mxu1 %v3988_v50  ;;  %v3978_v26 = vadd.f32 %v7473_v15, %v3956_v54  ;;  %v3936_v29 = vmul.f32 %v5841_v33, %v7436_v61  ;;  %v3957_v23 = vmul.f32 %v7465_v13, %v3935_v38 }
0x1153   : > { %v5843_v47 = vpop.eup %5842 }
0x1154   : > { %v3989_v14 = vpack.c.bf16 %v3978_v26, %v3977_v42  ;;  %v3958_v55 = vmul.f32 %v7465_v13, %v3936_v29  ;;  %v3937_v24 = vmul.f32 %v5843_v47, %v7441_v9  ;;  %v3979_v10 = vadd.f32 %v7473_v15, %v3957_v23 }
0x1155   : > { %v5845_v17 = vpop.eup %5844 }
0x1156   : > { %5400 = vmatprep.mubr.bf16.mxu1 %v3989_v14  ;;  %v3980_v0 = vadd.f32 %v7473_v15, %v3958_v55  ;;  %v3938_v22 = vmul.f32 %v5845_v17, %v7446_v63  ;;  %v3959_v40 = vmul.f32 %v7465_v13, %v3937_v24 }
0x1157   : > { %v5847_v44 = vpop.eup %5846 }
0x1158   : > { %v3990_v61 = vpack.c.bf16 %v3980_v0, %v3979_v10  ;;  %v3960_v30 = vmul.f32 %v7465_v13, %v3938_v22  ;;  %v3939_v8 = vmul.f32 %v5847_v44, %v7451_v46  ;;  %v3981_v9 = vadd.f32 %v7473_v15, %v3959_v40  ;;  %v5648_v46 = vld [vmem:[#allocation5 + $0x170] sm:$0xff]  }
0x1159   : > { %v5849_v25 = vpop.eup %5848  ;;  %5420 = vmatprep.subr.bf16.mxu0 %v5648_v46 }
0x115a   : > { %5401 = vmatmul.mubr.bf16.gmra.mrb[88].mxu1 %v3990_v61  ;;  %v3982_v16 = vadd.f32 %v7473_v15, %v3960_v30  ;;  %v3940_v53 = vmul.f32 %v5849_v25, %v7456_v43  ;;  %v3961_v11 = vmul.f32 %v7465_v13, %v3939_v8  ;;  %5421 = vmatpush3.bf16.msra.mxu0 %v5648_v46  ;;  %v5650_v43 = vld [vmem:[%s7693_s9] sm:$0xff]  }
0x115b   : > { %5422 = vmatprep.subr.bf16.mxu0 %v5649_v35  ;;  %5472 = vmatprep.subr.bf16.mxu1 %v5650_v43 }
0x115c   : > { %v3991_v36 = vpack.c.bf16 %v3982_v16, %v3981_v9  ;;  %v3962_v63 = vmul.f32 %v7465_v13, %v3940_v53  ;;  %v3983_v49 = vadd.f32 %v7473_v15, %v3961_v11  ;;  %v5651_v13 = vld [vmem:[%s7693_s9 + $0x8] sm:$0xff]   ;;  %5480 = vmatpush3.bf16.msra.mxu1 %v5650_v43 }
0x115d   : > { %5473 = vmatprep.subr.bf16.mxu1 %v5651_v13 }
0x115e   : > { %5404 = vmatprep.mubr.bf16.mxu1 %v3991_v36  ;;  %v3984_v18 = vadd.f32 %v7473_v15, %v3962_v63  ;;  %5423 = vmatpush3.bf16.msra.mxu0 %v5649_v35  ;;  %v5652_v15 = vld [vmem:[%s7693_s9 + $0x10] sm:$0xff]  }
0x115f   : > { %5440 = vmatprep.subr.bf16.mxu0 %v5650_v43 }
0x1160   : > { %v3992_v19 = vpack.c.bf16 %v3984_v18, %v3983_v49  ;;  %5481 = vmatpush3.bf16.msra.mxu1 %v5651_v13 }
0x1161   : > { %5474 = vmatprep.subr.bf16.mxu1 %v5652_v15 }
0x1162   : > { %5405 = vmatmul.mubr.bf16.gmra.mrb[92].mxu1 %v3992_v19 }
0x1164   : > { %5482 = vmatpush3.bf16.msra.mxu1 %v5652_v15 }
0x1165   : > { %5475 = vmatprep.subr.bf16.mxu1 %v5653_v57 }
0x1168   : > { %5483 = vmatpush3.bf16.msra.mxu1 %v5653_v57 }
0x1169   : > { %5476 = vmatprep.subr.bf16.mxu1 %v7535_v32 }
0x116c   : > { %5484 = vmatpush3.bf16.msra.mxu1 %v7535_v32 }
0x121d   : > { %v5394_v31 = vpop.f32.mrb[80].mxu1 }
0x121e   : > { %v4090_v7 = vadd.f32 %v5394_v31, %v7542_v39  ;;  %v4081_v37 = vpop.f32.mrb[81].mxu1 }
0x121f   : > { %v4082_v45 = vadd.f32 %v7542_v39, %v4081_v37  ;;  %v5395_v3 = vpop.f32.mrb[82].mxu1 }
0x1220   : > { %v4093_v60 = vadd.f32 %v5395_v3, %v7542_v39  ;;  %v4084_v51 = vpop.f32.mrb[83].mxu1  ;;  %v4146_v20 = vmax.f32 %v4090_v7, 0.0 }
0x1221   : > { %v4085_v56 = vadd.f32 %v7542_v39, %v4084_v51  ;;  %v4144_v54 = vmax.f32 %v4082_v45, 0.0 }
0x1222   : > { %v4147_v50 = vmax.f32 %v4093_v60, 0.0 }
0x1223   : > { %v4145_v38 = vmax.f32 %v4085_v56, 0.0 }
0x1224   : > { %v4161_v33 = vpack.c.bf16 %v4147_v50, %v4146_v20 }
0x1225   : > { %v4160_v42 = vpack.c.bf16 %v4145_v38, %v4144_v54  ;;  %v5398_v26 = vpop.f32.mrb[84].mxu1  ;;  %v5655_v54 = vld [vmem:[%s7693_s9 + $0x28] sm:$0xff]   ;;  %v7574_v38 = vld [vmem:[%s7692_s8 + $0x5] ss:$0 sm:$0xff] }
0x1226   : > { %v4106_v29 = vadd.f32 %v5398_v26, %v7542_v39  ;;  %v4097_v23 = vpop.f32.mrb[85].mxu1  ;;  %5477 = vmatprep.subr.bf16.mxu1 %v5655_v54 }
0x1227   : > { %v4098_v47 = vadd.f32 %v7542_v39, %v4097_v23  ;;  %v5399_v14 = vpop.f32.mrb[86].mxu1  ;;  %5424 = vmatprep.mubr.bf16.mxu0 %v4160_v42  ;;  %5485 = vmatpush3.bf16.msra.mxu1 %v5655_v54 }
0x1228   : > { %v4109_v55 = vadd.f32 %v5399_v14, %v7542_v39  ;;  %v4100_v24 = vpop.f32.mrb[87].mxu1  ;;  %5425 = vmatmul.mubr.bf16.vlgmr.msra.gmra.mrb[96].mxu0 %v4161_v33  ;;  %v4150_v10 = vmax.f32 %v4106_v29, 0.0 }
0x1229   : > { %v4101_v17 = vadd.f32 %v7542_v39, %v4100_v24  ;;  %5441 = vmatpush3.bf16.msra.mxu0 %v5650_v43  ;;  %v4148_v22 = vmax.f32 %v4098_v47, 0.0 }
0x122a   : > { %v4151_v0 = vmax.f32 %v4109_v55, 0.0  ;;  %5442 = vmatprep.subr.bf16.mxu0 %v5651_v13 }
0x122b   : > { %v4149_v40 = vmax.f32 %v4101_v17, 0.0 }
0x122c   : > { %v4163_v44 = vpack.c.bf16 %v4151_v0, %v4150_v10 }
0x122d   : > { %v4162_v61 = vpack.c.bf16 %v4149_v40, %v4148_v22  ;;  %v5402_v30 = vpop.f32.mrb[88].mxu1  ;;  %5443 = vmatpush3.bf16.msra.mxu0 %v5651_v13 }
0x122e   : > { %v4122_v8 = vadd.f32 %v5402_v30, %v7542_v39  ;;  %v4113_v25 = vpop.f32.mrb[89].mxu1  ;;  %5444 = vmatprep.subr.bf16.mxu0 %v5652_v15 }
0x122f   : > { %v4114_v9 = vadd.f32 %v7542_v39, %v4113_v25  ;;  %v5403_v16 = vpop.f32.mrb[90].mxu1  ;;  %5428 = vmatprep.mubr.bf16.mxu0 %v4162_v61 }
0x1230   : > { %v4125_v53 = vadd.f32 %v5403_v16, %v7542_v39  ;;  %v4116_v11 = vpop.f32.mrb[91].mxu1  ;;  %5429 = vmatmul.mubr.bf16.gmra.mrb[100].mxu0 %v4163_v44  ;;  %v4154_v63 = vmax.f32 %v4122_v8, 0.0 }
0x1231   : > { %v4117_v36 = vadd.f32 %v7542_v39, %v4116_v11  ;;  %5445 = vmatpush3.bf16.msra.mxu0 %v5652_v15  ;;  %v4152_v18 = vmax.f32 %v4114_v9, 0.0 }
0x1232   : > { %v4155_v49 = vmax.f32 %v4125_v53, 0.0  ;;  %5446 = vmatprep.subr.bf16.mxu0 %v5653_v57 }
0x1233   : > { %v4153_v19 = vmax.f32 %v4117_v36, 0.0 }
0x1234   : > { %v4165_v46 = vpack.c.bf16 %v4155_v49, %v4154_v63 }
0x1235   : > { %v4164_v35 = vpack.c.bf16 %v4153_v19, %v4152_v18  ;;  %v5406_v43 = vpop.f32.mrb[92].mxu1  ;;  %5447 = vmatpush3.bf16.msra.mxu0 %v5653_v57 }
0x1236   : > { %v4138_v13 = vadd.f32 %v5406_v43, %v7542_v39  ;;  %v4129_v31 = vpop.f32.mrb[93].mxu1  ;;  %5448 = vmatprep.subr.bf16.mxu0 %v7535_v32 }
0x1237   : > { %v4130_v7 = vadd.f32 %v7542_v39, %v4129_v31  ;;  %v5407_v37 = vpop.f32.mrb[94].mxu1  ;;  %5432 = vmatprep.mubr.bf16.mxu0 %v4164_v35 }
0x1238   : > { %v4141_v15 = vadd.f32 %v5407_v37, %v7542_v39  ;;  %v4132_v45 = vpop.f32.mrb[95].mxu1  ;;  %5433 = vmatmul.mubr.bf16.gmra.mrb[104].mxu0 %v4165_v46  ;;  %v4158_v60 = vmax.f32 %v4138_v13, 0.0 }
0x1239   : > { %v4133_v3 = vadd.f32 %v7542_v39, %v4132_v45  ;;  %5449 = vmatpush3.bf16.msra.mxu0 %v7535_v32  ;;  %v4156_v57 = vmax.f32 %v4130_v7, 0.0  ;;  %v5656_v32 = vld [vmem:[%s7693_s9 + $0x30] sm:$0xff]   ;;  %v5657_v39 = vld [vmem:[%s7693_s9 + $0x38] sm:$0xff]  }
0x123a   : > { %v4159_v51 = vmax.f32 %v4141_v15, 0.0  ;;  %5450 = vmatprep.subr.bf16.mxu0 %v5655_v54  ;;  %5478 = vmatprep.subr.bf16.mxu1 %v5656_v32 }
0x123b   : > { %v4157_v56 = vmax.f32 %v4133_v3, 0.0  ;;  %5486 = vmatpush3.bf16.msra.mxu1 %v5656_v32 }
0x123c   : > { %v4167_v20 = vpack.c.bf16 %v4159_v51, %v4158_v60  ;;  %5479 = vmatprep.subr.bf16.mxu1 %v5657_v39 }
0x123d   : > { %v4166_v50 = vpack.c.bf16 %v4157_v56, %v4156_v57  ;;  %5451 = vmatpush3.bf16.msra.mxu0 %v5655_v54 }
0x123e   : > { %5452 = vmatprep.subr.bf16.mxu0 %v5656_v32 }
0x123f   : > { %5436 = vmatprep.mubr.bf16.mxu0 %v4166_v50  ;;  %5487 = vmatpush3.bf16.msra.mxu1 %v5657_v39 }
0x1240   : > { %5437 = vmatmul.mubr.bf16.gmra.mrb[108].mxu0 %v4167_v20 }
0x1241   : > { %5453 = vmatpush3.bf16.msra.mxu0 %v5656_v32 }
0x1242   : > { %5454 = vmatprep.subr.bf16.mxu0 %v5657_v39 }
0x1245   : > { %5455 = vmatpush3.bf16.msra.mxu0 %v5657_v39 }
0x12fb   : > { %v5426_v33 = vpop.f32.mrb[96].mxu0 }
0x12fc   : > { %v4265_v42 = vadd.f32 %v5426_v33, %v7574_v38  ;;  %v4256_v26 = vpop.f32.mrb[97].mxu0 }
0x12fd   : > { %v4257_v29 = vadd.f32 %v7574_v38, %v4256_v26  ;;  %v5427_v23 = vpop.f32.mrb[98].mxu0 }
0x12fe   : > { %v4321_v47 = vmax.f32 %v4265_v42, 0.0  ;;  %v4268_v14 = vadd.f32 %v5427_v23, %v7574_v38  ;;  %v4259_v55 = vpop.f32.mrb[99].mxu0 }
0x12ff   : > { %v4319_v24 = vmax.f32 %v4257_v29, 0.0  ;;  %v4260_v17 = vadd.f32 %v7574_v38, %v4259_v55 }
0x1300   : > { %v4322_v10 = vmax.f32 %v4268_v14, 0.0  ;;  %v4337_v22 = vadd.f32 %v4321_v47, %v7314_v5 }
0x1301   : > { %v4320_v0 = vmax.f32 %v4260_v17, 0.0  ;;  %v4335_v44 = vadd.f32 %v4319_v24, %v7307_v6 }
0x1302   : > { %v4338_v40 = vadd.f32 %v4322_v10, %v7320_v4 }
0x1303   : > { %v4336_v61 = vadd.f32 %v4320_v0, %v7310_v27  ;;  %v5430_v30 = vpop.f32.mrb[100].mxu0 }
0x1304   : > { %v4352_v8 = vpack.c.bf16 %v4338_v40, %v4337_v22  ;;  %v4281_v25 = vadd.f32 %v5430_v30, %v7574_v38  ;;  %v4272_v9 = vpop.f32.mrb[101].mxu0 }
0x1305   : > { %v4273_v16 = vadd.f32 %v7574_v38, %v4272_v9  ;;  %v5431_v53 = vpop.f32.mrb[102].mxu0  ;;  %v4351_v11 = vpack.c.bf16 %v4336_v61, %v4335_v44 }
0x1306   : > { %v4325_v36 = vmax.f32 %v4281_v25, 0.0  ;;  %v4284_v63 = vadd.f32 %v5431_v53, %v7574_v38  ;;  %v4275_v49 = vpop.f32.mrb[103].mxu0 }
0x1307   : > { %v4323_v5 = vmax.f32 %v4273_v16, 0.0  ;;  %v4276_v4 = vadd.f32 %v7574_v38, %v4275_v49  ;;  %5456 = vmatprep.mubr.bf16.mxu0 %v4351_v11 }
0x1308   : > { %v4326_v6 = vmax.f32 %v4284_v63, 0.0  ;;  %5457 = vmatmul.mubr.bf16.vlgmr.msra.gmra.mrb[112].mxu0 %v4352_v8  ;;  %v4341_v18 = vadd.f32 %v4325_v36, %v7334_v1 }
0x1309   : > { %v4324_v27 = vmax.f32 %v4276_v4, 0.0  ;;  %v4339_v46 = vadd.f32 %v4323_v5, %v7326_v59 }
0x130a   : > { %v4342_v19 = vadd.f32 %v4326_v6, %v7340_v48 }
0x130b   : > { %v4340_v35 = vadd.f32 %v4324_v27, %v7330_v34  ;;  %v5434_v43 = vpop.f32.mrb[104].mxu0 }
0x130c   : > { %v4354_v13 = vpack.c.bf16 %v4342_v19, %v4341_v18  ;;  %v4297_v31 = vadd.f32 %v5434_v43, %v7574_v38  ;;  %v4288_v7 = vpop.f32.mrb[105].mxu0 }
0x130d   : > { %v4289_v37 = vadd.f32 %v7574_v38, %v4288_v7  ;;  %v5435_v15 = vpop.f32.mrb[106].mxu0  ;;  %v4353_v45 = vpack.c.bf16 %v4340_v35, %v4339_v46 }
0x130e   : > { %v4329_v3 = vmax.f32 %v4297_v31, 0.0  ;;  %v4300_v60 = vadd.f32 %v5435_v15, %v7574_v38  ;;  %v4291_v51 = vpop.f32.mrb[107].mxu0 }
0x130f   : > { %v4327_v1 = vmax.f32 %v4289_v37, 0.0  ;;  %v4292_v48 = vadd.f32 %v7574_v38, %v4291_v51  ;;  %5460 = vmatprep.mubr.bf16.mxu1 %v4353_v45 }
0x1310   : > { %v4330_v59 = vmax.f32 %v4300_v60, 0.0  ;;  %5461 = vmatmul.mubr.bf16.vlgmr.msra.gmra.mrb[96].mxu1 %v4354_v13  ;;  %v4345_v57 = vadd.f32 %v4329_v3, %v7354_v2 }
0x1311   : > { %v4328_v34 = vmax.f32 %v4292_v48, 0.0  ;;  %v4343_v20 = vadd.f32 %v4327_v1, %v7346_v21 }
0x1312   : > { %v4346_v56 = vadd.f32 %v4330_v59, %v7360_v41 }
0x1313   : > { %v4344_v50 = vadd.f32 %v4328_v34, %v7350_v12  ;;  %v5438_v54 = vpop.f32.mrb[108].mxu0 }
0x1314   : > { %v4313_v32 = vadd.f32 %v5438_v54, %v7574_v38  ;;  %v4304_v39 = vpop.f32.mrb[109].mxu0  ;;  %v4356_v33 = vpack.c.bf16 %v4346_v56, %v4345_v57 }
0x1315   : > { %v4305_v42 = vadd.f32 %v7574_v38, %v4304_v39  ;;  %v5439_v26 = vpop.f32.mrb[110].mxu0  ;;  %v4355_v29 = vpack.c.bf16 %v4344_v50, %v4343_v20 }
0x1316   : > { %v4333_v23 = vmax.f32 %v4313_v32, 0.0  ;;  %v4316_v47 = vadd.f32 %v5439_v26, %v7574_v38  ;;  %v4307_v2 = vpop.f32.mrb[111].mxu0 }
0x1317   : > { %v4331_v41 = vmax.f32 %v4305_v42, 0.0  ;;  %v4308_v21 = vadd.f32 %v7574_v38, %v4307_v2  ;;  %5464 = vmatprep.mubr.bf16.mxu1 %v4355_v29  ;;  %v4803_v38 = vld [vmem:[%s7694_s10] ss:$0 sm:$0xff] }
0x1318   : > { %v4334_v12 = vmax.f32 %v4316_v47, 0.0  ;;  %5465 = vmatmul.mubr.bf16.gmra.mrb[100].mxu1 %v4356_v33  ;;  %v4349_v55 = vadd.f32 %v4333_v23, %v7374_v62 }
0x1319   : > { %v4332_v14 = vmax.f32 %v4308_v21, 0.0  ;;  %v4347_v17 = vadd.f32 %v4331_v41, %v7366_v58 }
0x131a   : > { %v4350_v24 = vadd.f32 %v4334_v12, %v7378_v28 }
0x131b   : > { %v4348_v10 = vadd.f32 %v4332_v14, %v7370_v52 }
0x131c   : > { %v4358_v0 = vpack.c.bf16 %v4350_v24, %v4349_v55 }
0x131d   : > { %v4357_v22 = vpack.c.bf16 %v4348_v10, %v4347_v17 }
0x131f   : > { %5468 = vmatprep.mubr.bf16.mxu1 %v4357_v22 }
0x1320   : > { %5469 = vmatmul.mubr.bf16.gmra.mrb[104].mxu1 %v4358_v0 }
0x13db   : > { %v5458_v40 = vpop.f32.mrb[112].mxu0 }
0x13dc   : > { %v4473_v44 = vadd.f32 %v5458_v40, %v4803_v38  ;;  %v4464_v62 = vpop.f32.mrb[113].mxu0 }
0x13dd   : > { %v4465_v61 = vadd.f32 %v4803_v38, %v4464_v62  ;;  %v5459_v28 = vpop.f32.mrb[114].mxu0 }
0x13de   : > { %4529 = vst [vmem:[%s7614_s16 + $0x10] sm:$0xff] %v4473_v44  ;;  %v4476_v58 = vadd.f32 %v5459_v28, %v4803_v38  ;;  %v4467_v52 = vpop.f32.mrb[115].mxu0 }
0x13df   : > { %4527 = vst [vmem:[%s7614_s16] sm:$0xff] %v4465_v61  ;;  %v4468_v30 = vadd.f32 %v4803_v38, %v4467_v52 }
0x13e0   : > { %4530 = vst [vmem:[%s7614_s16 + $0x18] sm:$0xff] %v4476_v58 }
0x13e1   : > { %4528 = vst [vmem:[%s7614_s16 + $0x8] sm:$0xff] %v4468_v30 }
0x13e3   : > { %v5462_v8 = vpop.f32.mrb[96].mxu1 }
0x13e4   : > { %v4489_v25 = vadd.f32 %v5462_v8, %v4803_v38  ;;  %v4480_v9 = vpop.f32.mrb[97].mxu1 }
0x13e5   : > { %v4481_v16 = vadd.f32 %v4803_v38, %v4480_v9  ;;  %v5463_v53 = vpop.f32.mrb[98].mxu1 }
0x13e6   : > { %4533 = vst [vmem:[%s7614_s16 + $0x30] sm:$0xff] %v4489_v25  ;;  %v4492_v11 = vadd.f32 %v5463_v53, %v4803_v38  ;;  %v4483_v36 = vpop.f32.mrb[99].mxu1 }
0x13e7   : > { %4531 = vst [vmem:[%s7614_s16 + $0x20] sm:$0xff] %v4481_v16  ;;  %v4484_v63 = vadd.f32 %v4803_v38, %v4483_v36 }
0x13e8   : > { %4534 = vst [vmem:[%s7614_s16 + $0x38] sm:$0xff] %v4492_v11 }
0x13e9   : > { %4532 = vst [vmem:[%s7614_s16 + $0x28] sm:$0xff] %v4484_v63 }
0x13eb   : > { %v5466_v49 = vpop.f32.mrb[100].mxu1 }
0x13ec   : > { %v4505_v5 = vadd.f32 %v5466_v49, %v4803_v38  ;;  %v4496_v4 = vpop.f32.mrb[101].mxu1 }
0x13ed   : > { %v4497_v6 = vadd.f32 %v4803_v38, %v4496_v4  ;;  %v5467_v27 = vpop.f32.mrb[102].mxu1 }
0x13ee   : > { %4537 = vst [vmem:[%s7614_s16 + $0x50] sm:$0xff] %v4505_v5  ;;  %v4508_v18 = vadd.f32 %v5467_v27, %v4803_v38  ;;  %v4499_v19 = vpop.f32.mrb[103].mxu1 }
0x13ef   : > { %4535 = vst [vmem:[%s7614_s16 + $0x40] sm:$0xff] %v4497_v6  ;;  %v4500_v46 = vadd.f32 %v4803_v38, %v4499_v19 }
0x13f0   : > { %4538 = vst [vmem:[%s7614_s16 + $0x58] sm:$0xff] %v4508_v18 }
0x13f1   : > { %4536 = vst [vmem:[%s7614_s16 + $0x48] sm:$0xff] %v4500_v46 }
0x13f3   : > { %v5470_v35 = vpop.f32.mrb[104].mxu1 }
0x13f4   : > { %v4521_v43 = vadd.f32 %v5470_v35, %v4803_v38  ;;  %v4512_v13 = vpop.f32.mrb[105].mxu1 }
0x13f5   : > { %v4513_v31 = vadd.f32 %v4803_v38, %v4512_v13  ;;  %v5471_v7 = vpop.f32.mrb[106].mxu1 }
0x13f6   : > { %4541 = vst [vmem:[%s7614_s16 + $0x70] sm:$0xff] %v4521_v43  ;;  %v4524_v37 = vadd.f32 %v5471_v7, %v4803_v38  ;;  %v4515_v15 = vpop.f32.mrb[107].mxu1 }
0x13f7   : > { %4539 = vst [vmem:[%s7614_s16 + $0x60] sm:$0xff] %v4513_v31  ;;  %v4516_v45 = vadd.f32 %v4803_v38, %v4515_v15 }
0x13f8   : > { %4542 = vst [vmem:[%s7614_s16 + $0x78] sm:$0xff] %v4524_v37 }
0x13f9   : > { %4540 = vst [vmem:[%s7614_s16 + $0x68] sm:$0xff] %v4516_v45 }
0x13fa   : > { %5919 = shalt.err (!%p5916_p11)
}
0x13fb   : > { %s5920_s23 = scalar_lea.hbm %s7634_s25, 2048  ;;  %s5924_s15 = scalar_lea.hbm %s7695_s11, 4096 }
0x13fc   : > { %p5921_p13 = scmp.ne.s32.totalorder %s7634_s25, %s5920_s23  ;;  %p5925_p6 = scmp.lt.u32.totalorder %s7634_s25, %s7695_s11 }
0x13fd   : > { %p5926_p9 = scmp.lt.u32.totalorder %s5924_s15, %s5920_s23  ;;  %p5928_p12 = scmp.lt.u32.totalorder %s5920_s23, %s7634_s25 }
0x13fe   : > { %p5922_p5 = pnand %p5921_p13, %p7718_p1 }
0x13ff   : > { %p5927_p10 = por %p5926_p9, %p5925_p6 }
0x1400   : > { %p5923_p0 = pneg %p5922_p5 }
0x1401   : > { %p5929_p2 = por %p5928_p12, %p5927_p10 }
0x1403   : > { %p5930_p3 = pnand %p5929_p2, %p5923_p0 }
0x1405   : > { %5933 = shalt.err (!%p5930_p3)
}
0x1406   : > { %s5983_s22 = smov 128   ;;  %s5984_s26 = smov 8  }
0x1407   : > { %5496 = dma.vmem_to_hbm [thread:$0]  (%p7718_p1), %s7636_s19, 2048, %s7634_s25, %s7643_s21, %s5983_s22, %s5983_s22, %s5984_s26  }
0x1408 PF: > { %s7719_s24 = sld [smem:[#allocation11_spill]]  ;;  %s7720_s30 = sld [smem:[#allocation15_spill]] }
0x1409   : > { %p5513_p4 = scmp.ge.s32.totalorder %s5976_s20, 2 }
0x140e   : > { %s4572_s14 = sand.u32 1, %s7719_s24   ;;  %p7721_p7 = scmp.ne.s32.totalorder %s7720_s30, 0 }
0x140f   : > { %s4573_s12 = scalar_lea.sflag [#allocation4], %s4572_s14 }
0x1410   : > { %p5506_p8 = pnand %p5513_p4, %p7721_p7 }
0x1412   : > { %5959 = dma.done.wait (!%p5506_p8), %s4573_s12, 2048  }
0x1413   : > { %5961 = vsyncadd (!%p5506_p8), %s4573_s12, 4294965248  ;;  %s7722_s20 = sld [smem:[#allocation13_spill]]  ;;  %s7723_s23 = sld [smem:[#allocation12_spill]] }
0x1414   : > { %s7724_s19 = sld [smem:[#allocation14_spill]]  ;;  %s7725_s17 = smov %s5968_s18 }
0x1419   : > { %p23_p11 = scmp.ge.s32.totalorder %s7722_s20, 4   ;;  %s7726_s18 = smov %s7723_s23 }
0x141b   :  { %25 = sbr.rel (!%p23_p11) target bundleno = 5 (0x5), region = 138 }
0x1422   :  { %4578 = vsyncpa [#allocation3], 1 }
0x1423   :  { %4580 = vsyncpa [#allocation3 + $0x1], 1 }
0x1424   :  { %4581 = vsyncpa [#allocation6], 1 }
0x1425   :  { %4582 = vsyncpa [#allocation4], 1 }
0x1426   :  { %4584 = vsyncpa [#allocation4 + $0x1], 1 }

</bundles_post_ra>
